<compile_context>
chip_gen: v6e
topology: v6e:2x2x1
jax: 0.10.0
libtpu: 0.0.40
codegen_flags: <defaults>
</compile_context>

<pallas_src>
import math
import functools

import jax
import jax.numpy as jnp
from jax import lax
from jax.experimental import pallas as pl
from jax.experimental.pallas import tpu as pltpu


# ----------------------------- Fused forward kernel --------------------------

def _poster_fused_kernel(
    # inputs (order must match `args` in poster_forward)
    src_ref, embw_ref, embb_ref, cls_ref, pe_ref,
    inw_ref, inb_ref, outw_ref, outb_ref,
    ln1g_ref, ln1b_ref, ff1w_ref, ff1b_ref, ff2w_ref, ff2b_ref,
    ln2g_ref, ln2b_ref,
    reg1w_ref, reg1b_ref, reg2w_ref, reg2b_ref,
    btw0_ref, bn0s_ref, bn0t_ref, btw1_ref, bn1s_ref, bn1t_ref, btw2_ref,
    # outputs
    bt_ref, reg_ref, cls_out_ref,
    # scratch
    x_scr, ctx_scr,
    *, B, S, P, H, Dh, Dt, eps):
    E = H * Dh
    Sx = S + 1
    M = B * P
    layer = pl.program_id(0)
    last = pl.num_programs(0) - 1

    # ---------------- PosTER embedding (layer 0 only) ----------------
    # TODO(synk): PosTEREmbedding source not provided; standard implementation
    # assumed (token Linear * sqrt(E) [folded into weights at init], learned CLS
    # token at position 0, sinusoidal positional encoding, dropout = identity).
    @pl.when(layer == 0)
    def _embed():
        tok = jnp.dot(src_ref[...].reshape(B * S, Dt), embw_ref[...],
                      preferred_element_type=jnp.float32) + embb_ref[...]   # (B*S, E)
        pe_tok = pe_ref[1:Sx, :]                                            # (S, E)
        cls_pe = cls_ref[...] + pe_ref[0:1, :]                              # (1, E)
        pad_blk = jnp.broadcast_to(cls_pe, (P - S, E))     # CLS row + padding rows
        for b in range(B):
            x_scr[b * P:b * P + S, :] = tok[b * S:(b + 1) * S, :] + pe_tok  # 8-row aligned
            x_scr[b * P + S:(b + 1) * P, :] = pad_blk                       # 8-row aligned

    # ---------------- One nn.TransformerEncoderLayer (every grid step) ----------------
    x = x_scr[...]                                                          # (M, E) resident
    scale = 1.0 / math.sqrt(Dh)

    # Fused QKV projection for all rows (padding rows are harmless, row-wise ops only).
    qkv = jnp.dot(x, inw_ref[0], preferred_element_type=jnp.float32) + inb_ref[0]
    seq = qkv.reshape(B, P, 3 * E)                      # leading-dim split, layout-clean

    def stack_heads(base):                              # -> (H*B, P, Dh), batched attention
        return jnp.concatenate(
            [seq[:, :, base + h * Dh:base + (h + 1) * Dh] for h in range(H)], axis=0)

    q = stack_heads(0)
    k = stack_heads(E)
    v = stack_heads(2 * E)

    s = jnp.einsum("bqd,bkd->bqk", q, k,
                   preferred_element_type=jnp.float32) * scale              # (H*B, P, P)
    kidx = lax.broadcasted_iota(jnp.int32, (1, 1, P), 2)
    s = jnp.where(kidx <= S, s, -1e30)                  # mask padded key positions
    s = s - jnp.max(s, axis=-1, keepdims=True)
    p = jnp.exp(s)
    # approx reciprocal (EUP slot); exact division would be needed for bit-parity.
    p = p * pl.reciprocal(jnp.sum(p, axis=-1, keepdims=True), approx=True)
    ctx = jnp.einsum("bqk,bkd->bqd", p, v,
                     preferred_element_type=jnp.float32)                    # (H*B, P, Dh)

    # Merge heads back along features via aligned 2-D scratch stores, then a SINGLE
    # (M,E)@(E,E) out-projection (contract dim E, not Dh).
    for h in range(H):
        ctx_scr[:, h * Dh:(h + 1) * Dh] = ctx[h * B:(h + 1) * B].reshape(M, Dh)
    attn = jnp.dot(ctx_scr[...], outw_ref[0],
                   preferred_element_type=jnp.float32) + outb_ref[0]

    def layer_norm(t, g, b):
        mu = jnp.mean(t, axis=-1, keepdims=True)
        var = jnp.mean(jnp.square(t - mu), axis=-1, keepdims=True)
        return (t - mu) * lax.rsqrt(var + eps) * g + b

    x = layer_norm(x + attn, ln1g_ref[0], ln1b_ref[0])      # post-norm (PyTorch default)
    h1 = jnp.maximum(
        jnp.dot(x, ff1w_ref[0], preferred_element_type=jnp.float32) + ff1b_ref[0], 0.0)
    ff = jnp.dot(h1, ff2w_ref[0], preferred_element_type=jnp.float32) + ff2b_ref[0]
    x = layer_norm(x + ff, ln2g_ref[0], ln2b_ref[0])
    x_scr[...] = x

    # ---------------- Heads (last layer only) ----------------
    @pl.when(layer == last)
    def _heads():
        # Gather the B CLS rows (sequence position 0) through the scratch (aligned rows).
        for b in range(B):
            ctx_scr[b:b + 1, :] = x[b * P + S:b * P + S + 1, :]
        cls_tok = ctx_scr[0:B, :]                                           # (B, E)
        cls_out_ref[...] = cls_tok

        # bt_head: Linear(no bias) -> BN(folded)+ReLU -> Linear -> BN+ReLU -> Linear
        hb = jnp.maximum(
            jnp.dot(cls_tok, btw0_ref[...], preferred_element_type=jnp.float32)
            * bn0s_ref[...] + bn0t_ref[...], 0.0)
        hb = jnp.maximum(
            jnp.dot(hb, btw1_ref[...], preferred_element_type=jnp.float32)
            * bn1s_ref[...] + bn1t_ref[...], 0.0)
        bt_ref[...] = jnp.dot(hb, btw2_ref[...], preferred_element_type=jnp.float32)

        # TODO(synk): RegressionHead source not provided; Linear(E,E//2)->ReLU->
        # Linear(E//2,Dt) assumed.  Applied to all rows (padding rows discarded) and
        # emitted directly as the flattened (B, Sx*Dt) slab: [CLS | tok0 | ... | tok_{S-1}].
        hr = jnp.maximum(
            jnp.dot(x, reg1w_ref[...], preferred_element_type=jnp.float32)
            + reg1b_ref[...], 0.0)
        rg = jnp.dot(hr, reg2w_ref[...],
                     preferred_element_type=jnp.float32) + reg2b_ref[...]   # (M, Dt)
        for b in range(B):
            reg_ref[b:b + 1, 0:Dt] = rg[b * P + S:b * P + S + 1, :]         # CLS first
            for i in range(S):
                reg_ref[b:b + 1, (i + 1) * Dt:(i + 2) * Dt] = rg[b * P + i:b * P + i + 1, :]


# ----------------------------- Host wrapper ----------------------------------

def poster_forward(params, src, cfg, enable_bt=True):
    """PosTER forward pass (inference semantics) as one fused Pallas call."""
    B, S, Dt = src.shape
    E, H, L = cfg["dim_embed"], cfg["nhead"], cfg["nlayers"]
    Sx = S + 1
    P = ((Sx + 7) // 8) * 8      # padded rows per batch: tokens [0,S), CLS at S, pads after

    enc = params["enc"]
    plain_pre = [src, params["emb_w"], params["emb_b"], params["cls_token"],
                 params["pos_enc"][:Sx]]
    stacked = [enc[k] for k in ("in_w", "in_b", "out_w", "out_b", "ln1_g", "ln1_b",
                                "ff1_w", "ff1_b", "ff2_w", "ff2_b", "ln2_g", "ln2_b")]
    plain_post = [params["reg1_w"], params["reg1_b"], params["reg2_w"], params["reg2_b"],
                  params["bt_w0"], params["bn0_s"], params["bn0_t"],
                  params["bt_w1"], params["bn1_s"], params["bn1_t"], params["bt_w2"]]
    args = plain_pre + stacked + plain_post

    def full(a):                 # whole array, loaded once (block index never changes)
        return pl.BlockSpec(a.shape, lambda l, nd=a.ndim: (0,) * nd)

    def per_layer(a):            # stacked per-layer weights streamed along the grid
        return pl.BlockSpec((1,) + a.shape[1:], lambda l: (l, 0, 0))

    in_specs = ([full(a) for a in plain_pre] + [per_layer(a) for a in stacked]
                + [full(a) for a in plain_post])

    grid_spec = pltpu.PrefetchScalarGridSpec(
        num_scalar_prefetch=0,
        grid=(L,),               # layer axis: sequential dependency ("arbitrary")
        in_specs=in_specs,
        out_specs=(pl.BlockSpec((B, 512), lambda l: (0, 0)),
                   pl.BlockSpec((B, Sx * Dt), lambda l: (0, 0)),
                   pl.BlockSpec((B, E), lambda l: (0, 0))),
        scratch_shapes=[pltpu.VMEM((B * P, E), jnp.float32),   # resident activation
                        pltpu.VMEM((B * P, E), jnp.float32)])  # head-merge / CLS staging

    bt_out, reg_flat, cls_tok = pl.pallas_call(
        functools.partial(_poster_fused_kernel, B=B, S=S, P=P, H=H, Dh=E // H,
                          Dt=Dt, eps=1e-5),
        out_shape=(jax.ShapeDtypeStruct((B, 512), jnp.float32),
                   jax.ShapeDtypeStruct((B, Sx * Dt), jnp.float32),
                   jax.ShapeDtypeStruct((B, E), jnp.float32)),
        grid_spec=grid_spec,
        compiler_params=pltpu.CompilerParams(
            dimension_semantics=("arbitrary",),
            vmem_limit_bytes=32 * 1024 * 1024),
    )(*args)

    if enable_bt:
        return bt_out, reg_flat
    return cls_tok, reg_flat


# ----------------------------- Parameters ------------------------------------

def init_params(key, cfg):
    Dt, E, F = cfg["dim_tokens"], cfg["dim_embed"], cfg["dim_ff"]
    L, max_len = cfg["nlayers"], cfg["max_len"]
    eps = 1e-5

    def dense(k, din, dout, scale=0.02):
        return (jax.random.normal(k, (din, dout), jnp.float32) * scale,
                jnp.zeros((1, dout), jnp.float32))

    keys = iter(jax.random.split(key, 64))
    p = {}

    # Embedding (sqrt(E) token scale folded into the weights once at init).
    w, b = dense(next(keys), Dt, E)
    p["emb_w"] = w * math.sqrt(E)
    p["emb_b"] = b * math.sqrt(E)
    p["cls_token"] = jax.random.normal(next(keys), (1, E), jnp.float32) * 0.02
    pos = jnp.arange(max_len, dtype=jnp.float32)[:, None]
    div = jnp.exp(jnp.arange(0, E, 2, dtype=jnp.float32) * (-math.log(10000.0) / E))
    pe = jnp.zeros((max_len, E), jnp.float32)
    p["pos_enc"] = pe.at[:, 0::2].set(jnp.sin(pos * div)).at[:, 1::2].set(jnp.cos(pos * div))

    names = ["in_w", "in_b", "out_w", "out_b", "ln1_g", "ln1_b",
             "ff1_w", "ff1_b", "ff2_w", "ff2_b", "ln2_g", "ln2_b"]
    enc = {n: [] for n in names}
    for _ in range(L):
        w, b = dense(next(keys), E, 3 * E); enc["in_w"].append(w); enc["in_b"].append(b)
        w, b = dense(next(keys), E, E); enc["out_w"].append(w); enc["out_b"].append(b)
        enc["ln1_g"].append(jnp.ones((1, E), jnp.float32))
        enc["ln1_b"].append(jnp.zeros((1, E), jnp.float32))
        w, b = dense(next(keys), E, F); enc["ff1_w"].append(w); enc["ff1_b"].append(b)
        w, b = dense(next(keys), F, E); enc["ff2_w"].append(w); enc["ff2_b"].append(b)
        enc["ln2_g"].append(jnp.ones((1, E), jnp.float32))
        enc["ln2_b"].append(jnp.zeros((1, E), jnp.float32))
    # Stack per-layer weights with a leading layer axis for the single fused call.
    p["enc"] = {k: jnp.stack(v, axis=0) for k, v in enc.items()}

    # RegressionHead (assumed form, see TODO in kernel).
    p["reg1_w"], p["reg1_b"] = dense(next(keys), E, E // 2)
    p["reg2_w"], p["reg2_b"] = dense(next(keys), E // 2, Dt)

    # token_prediction_layer exists in __init__ but is unused in forward -> omitted.

    # bt_head: Linear(E,512,no bias) -> [BatchNorm1d -> ReLU -> Linear(512,512,no bias)] x2
    # Inference BatchNorm folded to per-feature scale/shift at init.
    p["bt_w0"], _ = dense(next(keys), E, 512)
    p["bt_w1"], _ = dense(next(keys), 512, 512)
    p["bt_w2"], _ = dense(next(keys), 512, 512)
    for i in range(2):
        g = jnp.ones((1, 512), jnp.float32)
        bb = jnp.zeros((1, 512), jnp.float32)
        rm = jnp.zeros((1, 512), jnp.float32)
        rv = jnp.ones((1, 512), jnp.float32)
        s = g / jnp.sqrt(rv + eps)
        p[f"bn{i}_s"] = s
        p[f"bn{i}_t"] = bb - rm * s
    return p


# ----------------------------- main ------------------------------------------

if __name__ == "__main__":
    cfg = dict(dim_tokens=16, dim_embed=32, dim_ff=64, nlayers=2, nhead=4,
               dropout=0.1, max_len=100)

    key = jax.random.PRNGKey(0)
    k_param, k_src = jax.random.split(key)
    params = init_params(k_param, cfg)

    B, S = 2, 8
    src = jax.random.normal(k_src, (B, S, cfg["dim_tokens"]), jnp.float32)

    fwd = jax.jit(functools.partial(poster_forward, cfg=cfg, enable_bt=True))
    bt_out, reg_out = fwd(params, src)
    jax.block_until_ready((bt_out, reg_out))

    assert bt_out.shape == (B, 512)
    assert reg_out.shape == (B, (S + 1) * cfg["dim_tokens"])
    assert bool(jnp.all(jnp.isfinite(bt_out))) and bool(jnp.all(jnp.isfinite(reg_out)))
    print("KERNEL_OK")
</pallas_src>

<mosaic_0001>
module attributes {stable_mosaic.version = 11 : i64} {
  func.func @_poster_fused_kernel(%arg0: i32, %arg1: memref<2x8x16xf32, #tpu.memory_space<vmem>>, %arg2: memref<16x32xf32, #tpu.memory_space<vmem>>, %arg3: memref<1x32xf32, #tpu.memory_space<vmem>>, %arg4: memref<1x32xf32, #tpu.memory_space<vmem>>, %arg5: memref<9x32xf32, #tpu.memory_space<vmem>>, %arg6: memref<1x32x96xf32, #tpu.memory_space<vmem>>, %arg7: memref<1x1x96xf32, #tpu.memory_space<vmem>>, %arg8: memref<1x32x32xf32, #tpu.memory_space<vmem>>, %arg9: memref<1x1x32xf32, #tpu.memory_space<vmem>>, %arg10: memref<1x1x32xf32, #tpu.memory_space<vmem>>, %arg11: memref<1x1x32xf32, #tpu.memory_space<vmem>>, %arg12: memref<1x32x64xf32, #tpu.memory_space<vmem>>, %arg13: memref<1x1x64xf32, #tpu.memory_space<vmem>>, %arg14: memref<1x64x32xf32, #tpu.memory_space<vmem>>, %arg15: memref<1x1x32xf32, #tpu.memory_space<vmem>>, %arg16: memref<1x1x32xf32, #tpu.memory_space<vmem>>, %arg17: memref<1x1x32xf32, #tpu.memory_space<vmem>>, %arg18: memref<32x16xf32, #tpu.memory_space<vmem>>, %arg19: memref<1x16xf32, #tpu.memory_space<vmem>>, %arg20: memref<16x16xf32, #tpu.memory_space<vmem>>, %arg21: memref<1x16xf32, #tpu.memory_space<vmem>>, %arg22: memref<32x512xf32, #tpu.memory_space<vmem>>, %arg23: memref<1x512xf32, #tpu.memory_space<vmem>>, %arg24: memref<1x512xf32, #tpu.memory_space<vmem>>, %arg25: memref<512x512xf32, #tpu.memory_space<vmem>>, %arg26: memref<1x512xf32, #tpu.memory_space<vmem>>, %arg27: memref<1x512xf32, #tpu.memory_space<vmem>>, %arg28: memref<512x512xf32, #tpu.memory_space<vmem>>, %arg29: memref<2x512xf32, #tpu.memory_space<vmem>>, %arg30: memref<2x144xf32, #tpu.memory_space<vmem>>, %arg31: memref<2x32xf32, #tpu.memory_space<vmem>>, %arg32: memref<32x32xf32, #tpu.memory_space<vmem>>, %arg33: memref<32x32xf32, #tpu.memory_space<vmem>>) attributes {dimension_semantics = [#tpu.dimension_semantics<arbitrary>], iteration_bounds = array<i64: 2>, scalar_prefetch = 0 : i64, scratch_operands = 2 : i64, tpu.core_type = #tpu.core_type<tc>, window_params = [{pipeline_mode = #tpu.pipeline_mode<synchronous>, transform_indices = @transform_0, window_bounds = array<i64: 2, 8, 16>}, {pipeline_mode = #tpu.pipeline_mode<synchronous>, transform_indices = @transform_1, window_bounds = array<i64: 16, 32>}, {pipeline_mode = #tpu.pipeline_mode<synchronous>, transform_indices = @transform_2, window_bounds = array<i64: 1, 32>}, {pipeline_mode = #tpu.pipeline_mode<synchronous>, transform_indices = @transform_3, window_bounds = array<i64: 1, 32>}, {pipeline_mode = #tpu.pipeline_mode<synchronous>, transform_indices = @transform_4, window_bounds = array<i64: 9, 32>}, {transform_indices = @transform_5, window_bounds = array<i64: 1, 32, 96>}, {transform_indices = @transform_6, window_bounds = array<i64: 1, 1, 96>}, {transform_indices = @transform_7, window_bounds = array<i64: 1, 32, 32>}, {transform_indices = @transform_8, window_bounds = array<i64: 1, 1, 32>}, {transform_indices = @transform_9, window_bounds = array<i64: 1, 1, 32>}, {transform_indices = @transform_10, window_bounds = array<i64: 1, 1, 32>}, {transform_indices = @transform_11, window_bounds = array<i64: 1, 32, 64>}, {transform_indices = @transform_12, window_bounds = array<i64: 1, 1, 64>}, {transform_indices = @transform_13, window_bounds = array<i64: 1, 64, 32>}, {transform_indices = @transform_14, window_bounds = array<i64: 1, 1, 32>}, {transform_indices = @transform_15, window_bounds = array<i64: 1, 1, 32>}, {transform_indices = @transform_16, window_bounds = array<i64: 1, 1, 32>}, {pipeline_mode = #tpu.pipeline_mode<synchronous>, transform_indices = @transform_17, window_bounds = array<i64: 32, 16>}, {pipeline_mode = #tpu.pipeline_mode<synchronous>, transform_indices = @transform_18, window_bounds = array<i64: 1, 16>}, {pipeline_mode = #tpu.pipeline_mode<synchronous>, transform_indices = @transform_19, window_bounds = array<i64: 16, 16>}, {pipeline_mode = #tpu.pipeline_mode<synchronous>, transform_indices = @transform_20, window_bounds = array<i64: 1, 16>}, {pipeline_mode = #tpu.pipeline_mode<synchronous>, transform_indices = @transform_21, window_bounds = array<i64: 32, 512>}, {pipeline_mode = #tpu.pipeline_mode<synchronous>, transform_indices = @transform_22, window_bounds = array<i64: 1, 512>}, {pipeline_mode = #tpu.pipeline_mode<synchronous>, transform_indices = @transform_23, window_bounds = array<i64: 1, 512>}, {pipeline_mode = #tpu.pipeline_mode<synchronous>, transform_indices = @transform_24, window_bounds = array<i64: 512, 512>}, {pipeline_mode = #tpu.pipeline_mode<synchronous>, transform_indices = @transform_25, window_bounds = array<i64: 1, 512>}, {pipeline_mode = #tpu.pipeline_mode<synchronous>, transform_indices = @transform_26, window_bounds = array<i64: 1, 512>}, {pipeline_mode = #tpu.pipeline_mode<synchronous>, transform_indices = @transform_27, window_bounds = array<i64: 512, 512>}, {pipeline_mode = #tpu.pipeline_mode<synchronous>, transform_indices = @transform_28, window_bounds = array<i64: 2, 512>}, {pipeline_mode = #tpu.pipeline_mode<synchronous>, transform_indices = @transform_29, window_bounds = array<i64: 2, 144>}, {pipeline_mode = #tpu.pipeline_mode<synchronous>, transform_indices = @transform_30, window_bounds = array<i64: 2, 32>}]} {
    %c0_i32 = arith.constant 0 : i32
    %0 = arith.cmpi eq, %arg0, %c0_i32 : i32
    %1 = arith.extui %0 : i1 to i32
    %c0_i32_0 = arith.constant 0 : i32
    %2 = arith.cmpi ne, %1, %c0_i32_0 : i32
    scf.if %2 {
      %c0_68 = arith.constant 0 : index
      %c0_69 = arith.constant 0 : index
      %c0_70 = arith.constant 0 : index
      %142 = vector.load %arg1[%c0_68, %c0_69, %c0_70] : memref<2x8x16xf32, #tpu.memory_space<vmem>>, vector<2x8x16xf32>
      %143 = vector.shape_cast %142 : vector<2x8x16xf32> to vector<16x16xf32>
      %c0_71 = arith.constant 0 : index
      %c0_72 = arith.constant 0 : index
      %144 = vector.load %arg2[%c0_71, %c0_72] : memref<16x32xf32, #tpu.memory_space<vmem>>, vector<16x32xf32>
      %cst_73 = arith.constant dense<0.000000e+00> : vector<16x32xf32>
      %145 = tpu.matmul %143, %144, %cst_73 {dimension_numbers = #tpu.dot_dimension_numbers<[1], [0], [0], [1], [0, 0, 1, 1], [], []>} : vector<16x16xf32>, vector<16x32xf32>, vector<16x32xf32> -> vector<16x32xf32>
      %c0_74 = arith.constant 0 : index
      %c0_75 = arith.constant 0 : index
      %146 = vector.load %arg3[%c0_74, %c0_75] : memref<1x32xf32, #tpu.memory_space<vmem>>, vector<1x32xf32>
      %147 = vector.broadcast %146 : vector<1x32xf32> to vector<16x32xf32>
      %148 = arith.addf %145, %147 : vector<16x32xf32>
      %c1 = arith.constant 1 : index
      %c0_76 = arith.constant 0 : index
      %149 = vector.load %arg5[%c1, %c0_76] : memref<9x32xf32, #tpu.memory_space<vmem>>, vector<8x32xf32>
      %c0_77 = arith.constant 0 : index
      %c0_78 = arith.constant 0 : index
      %150 = vector.load %arg4[%c0_77, %c0_78] : memref<1x32xf32, #tpu.memory_space<vmem>>, vector<1x32xf32>
      %c0_79 = arith.constant 0 : index
      %c0_80 = arith.constant 0 : index
      %151 = vector.load %arg5[%c0_79, %c0_80] : memref<9x32xf32, #tpu.memory_space<vmem>>, vector<1x32xf32>
      %152 = arith.addf %150, %151 : vector<1x32xf32>
      %153 = vector.shape_cast %152 : vector<1x32xf32> to vector<1x32xf32>
      %154 = vector.broadcast %153 : vector<1x32xf32> to vector<8x32xf32>
      %155 = vector.extract_strided_slice %148 {offsets = [0, 0], sizes = [8, 32], strides = [1, 1]} : vector<16x32xf32> to vector<8x32xf32>
      %156 = arith.addf %155, %149 : vector<8x32xf32>
      %c0_81 = arith.constant 0 : index
      %c0_82 = arith.constant 0 : index
      %157 = vector.load %arg32[%c0_81, %c0_82] : memref<32x32xf32, #tpu.memory_space<vmem>>, vector<8x32xf32>
      tpu.vector_store %arg32[%c0_81, %c0_82], %156 {strides = array<i32>} : memref<32x32xf32, #tpu.memory_space<vmem>>, vector<8x32xf32>,
      %c8_83 = arith.constant 8 : index
      %c0_84 = arith.constant 0 : index
      %158 = vector.load %arg32[%c8_83, %c0_84] : memref<32x32xf32, #tpu.memory_space<vmem>>, vector<8x32xf32>
      tpu.vector_store %arg32[%c8_83, %c0_84], %154 {strides = array<i32>} : memref<32x32xf32, #tpu.memory_space<vmem>>, vector<8x32xf32>,
      %159 = vector.extract_strided_slice %148 {offsets = [8, 0], sizes = [8, 32], strides = [1, 1]} : vector<16x32xf32> to vector<8x32xf32>
      %160 = arith.addf %159, %149 : vector<8x32xf32>
      %c16_85 = arith.constant 16 : index
      %c0_86 = arith.constant 0 : index
      %161 = vector.load %arg32[%c16_85, %c0_86] : memref<32x32xf32, #tpu.memory_space<vmem>>, vector<8x32xf32>
      tpu.vector_store %arg32[%c16_85, %c0_86], %160 {strides = array<i32>} : memref<32x32xf32, #tpu.memory_space<vmem>>, vector<8x32xf32>,
      %c24_87 = arith.constant 24 : index
      %c0_88 = arith.constant 0 : index
      %162 = vector.load %arg32[%c24_87, %c0_88] : memref<32x32xf32, #tpu.memory_space<vmem>>, vector<8x32xf32>
      tpu.vector_store %arg32[%c24_87, %c0_88], %154 {strides = array<i32>} : memref<32x32xf32, #tpu.memory_space<vmem>>, vector<8x32xf32>,
    } else {
    }
    %c0 = arith.constant 0 : index
    %c0_1 = arith.constant 0 : index
    %3 = vector.load %arg32[%c0, %c0_1] : memref<32x32xf32, #tpu.memory_space<vmem>>, vector<32x32xf32>
    %c0_2 = arith.constant 0 : index
    %c0_3 = arith.constant 0 : index
    %c0_4 = arith.constant 0 : index
    %4 = vector.load %arg6[%c0_2, %c0_3, %c0_4] : memref<1x32x96xf32, #tpu.memory_space<vmem>>, vector<1x32x96xf32>
    %5 = vector.shape_cast %4 : vector<1x32x96xf32> to vector<32x96xf32>
    %cst = arith.constant dense<0.000000e+00> : vector<32x96xf32>
    %6 = tpu.matmul %3, %5, %cst {dimension_numbers = #tpu.dot_dimension_numbers<[1], [0], [0], [1], [0, 0, 1, 1], [], []>} : vector<32x32xf32>, vector<32x96xf32>, vector<32x96xf32> -> vector<32x96xf32>
    %c0_5 = arith.constant 0 : index
    %c0_6 = arith.constant 0 : index
    %c0_7 = arith.constant 0 : index
    %7 = vector.load %arg7[%c0_5, %c0_6, %c0_7] : memref<1x1x96xf32, #tpu.memory_space<vmem>>, vector<1x1x96xf32>
    %8 = vector.shape_cast %7 : vector<1x1x96xf32> to vector<1x96xf32>
    %9 = vector.broadcast %8 : vector<1x96xf32> to vector<32x96xf32>
    %10 = arith.addf %6, %9 : vector<32x96xf32>
    %11 = vector.shape_cast %10 : vector<32x96xf32> to vector<2x16x96xf32>
    %12 = vector.extract_strided_slice %11 {offsets = [0, 0, 0], sizes = [2, 16, 8], strides = [1, 1, 1]} : vector<2x16x96xf32> to vector<2x16x8xf32>
    %13 = vector.extract_strided_slice %11 {offsets = [0, 0, 8], sizes = [2, 16, 8], strides = [1, 1, 1]} : vector<2x16x96xf32> to vector<2x16x8xf32>
    %14 = vector.extract_strided_slice %11 {offsets = [0, 0, 16], sizes = [2, 16, 8], strides = [1, 1, 1]} : vector<2x16x96xf32> to vector<2x16x8xf32>
    %15 = vector.extract_strided_slice %11 {offsets = [0, 0, 24], sizes = [2, 16, 8], strides = [1, 1, 1]} : vector<2x16x96xf32> to vector<2x16x8xf32>
    %16 = tpu.concatenate %12, %13, %14, %15 in 0 : vector<2x16x8xf32>, vector<2x16x8xf32>, vector<2x16x8xf32>, vector<2x16x8xf32> -> vector<8x16x8xf32>
    %17 = vector.extract_strided_slice %11 {offsets = [0, 0, 32], sizes = [2, 16, 8], strides = [1, 1, 1]} : vector<2x16x96xf32> to vector<2x16x8xf32>
    %18 = vector.extract_strided_slice %11 {offsets = [0, 0, 40], sizes = [2, 16, 8], strides = [1, 1, 1]} : vector<2x16x96xf32> to vector<2x16x8xf32>
    %19 = vector.extract_strided_slice %11 {offsets = [0, 0, 48], sizes = [2, 16, 8], strides = [1, 1, 1]} : vector<2x16x96xf32> to vector<2x16x8xf32>
    %20 = vector.extract_strided_slice %11 {offsets = [0, 0, 56], sizes = [2, 16, 8], strides = [1, 1, 1]} : vector<2x16x96xf32> to vector<2x16x8xf32>
    %21 = tpu.concatenate %17, %18, %19, %20 in 0 : vector<2x16x8xf32>, vector<2x16x8xf32>, vector<2x16x8xf32>, vector<2x16x8xf32> -> vector<8x16x8xf32>
    %22 = vector.extract_strided_slice %11 {offsets = [0, 0, 64], sizes = [2, 16, 8], strides = [1, 1, 1]} : vector<2x16x96xf32> to vector<2x16x8xf32>
    %23 = vector.extract_strided_slice %11 {offsets = [0, 0, 72], sizes = [2, 16, 8], strides = [1, 1, 1]} : vector<2x16x96xf32> to vector<2x16x8xf32>
    %24 = vector.extract_strided_slice %11 {offsets = [0, 0, 80], sizes = [2, 16, 8], strides = [1, 1, 1]} : vector<2x16x96xf32> to vector<2x16x8xf32>
    %25 = vector.extract_strided_slice %11 {offsets = [0, 0, 88], sizes = [2, 16, 8], strides = [1, 1, 1]} : vector<2x16x96xf32> to vector<2x16x8xf32>
    %26 = tpu.concatenate %22, %23, %24, %25 in 0 : vector<2x16x8xf32>, vector<2x16x8xf32>, vector<2x16x8xf32>, vector<2x16x8xf32> -> vector<8x16x8xf32>
    "tpu.trace_start"() <{level = 10 : i32, message = "bqd,bkd->bqk"}> : () -> ()
    %cst_8 = arith.constant dense<0.000000e+00> : vector<8x16x16xf32>
    %27 = tpu.matmul %16, %21, %cst_8 {dimension_numbers = #tpu.dot_dimension_numbers<[2], [2], [1], [1], [0, 0, 0, 1, 1, 1], [0], [0]>} : vector<8x16x8xf32>, vector<8x16x8xf32>, vector<8x16x16xf32> -> vector<8x16x16xf32>
    "tpu.trace_stop"() : () -> ()
    %cst_9 = arith.constant 0.353553385 : f32
    %28 = vector.broadcast %cst_9 : f32 to vector<8x16x16xf32>
    %29 = arith.mulf %27, %28 : vector<8x16x16xf32>
    %30 = tpu.iota {dimensions = array<i32: 2>} : vector<1x1x16xi32>
    %c8_i32 = arith.constant 8 : i32
    %31 = vector.broadcast %c8_i32 : i32 to vector<1x1x16xi32>
    %32 = arith.cmpi sle, %30, %31 : vector<1x1x16xi32>
    %cst_10 = arith.constant -1.000000e+30 : f32
    %33 = vector.shape_cast %32 : vector<1x1x16xi1> to vector<1x1x16xi1>
    %34 = vector.broadcast %33 : vector<1x1x16xi1> to vector<8x16x16xi1>
    %35 = vector.broadcast %cst_10 : f32 to vector<8x16x16xf32>
    %36 = arith.select %34, %29, %35 : vector<8x16x16xi1>, vector<8x16x16xf32>
    %cst_11 = arith.constant dense<0xFF800000> : vector<8x16xf32>
    %37 = vector.multi_reduction <maximumf>, %36, %cst_11 [2] : vector<8x16x16xf32> to vector<8x16xf32>
    %38 = vector.shape_cast %37 : vector<8x16xf32> to vector<8x16x1xf32>
    %39 = vector.broadcast %38 : vector<8x16x1xf32> to vector<8x16x16xf32>
    %40 = arith.subf %36, %39 : vector<8x16x16xf32>
    %41 = math.exp %40 : vector<8x16x16xf32>
    %cst_12 = arith.constant dense<0.000000e+00> : vector<8x16xf32>
    %42 = vector.multi_reduction <add>, %41, %cst_12 [2] : vector<8x16x16xf32> to vector<8x16xf32>
    %43 = vector.shape_cast %42 : vector<8x16xf32> to vector<8x16x1xf32>
    %44 = tpu.reciprocal %43 {approx = true} : vector<8x16x1xf32> -> vector<8x16x1xf32>
    %45 = vector.broadcast %44 : vector<8x16x1xf32> to vector<8x16x16xf32>
    %46 = arith.mulf %41, %45 : vector<8x16x16xf32>
    "tpu.trace_start"() <{level = 10 : i32, message = "bqk,bkd->bqd"}> : () -> ()
    %cst_13 = arith.constant dense<0.000000e+00> : vector<8x16x8xf32>
    %47 = tpu.matmul %46, %26, %cst_13 {dimension_numbers = #tpu.dot_dimension_numbers<[2], [1], [1], [2], [0, 0, 0, 1, 1, 2], [0], [0]>} : vector<8x16x16xf32>, vector<8x16x8xf32>, vector<8x16x8xf32> -> vector<8x16x8xf32>
    "tpu.trace_stop"() : () -> ()
    %48 = vector.extract_strided_slice %47 {offsets = [0, 0, 0], sizes = [2, 16, 8], strides = [1, 1, 1]} : vector<8x16x8xf32> to vector<2x16x8xf32>
    %49 = vector.shape_cast %48 : vector<2x16x8xf32> to vector<32x8xf32>
    %c0_14 = arith.constant 0 : index
    %c0_15 = arith.constant 0 : index
    %50 = vector.load %arg33[%c0_14, %c0_15] : memref<32x32xf32, #tpu.memory_space<vmem>>, vector<32x8xf32>
    tpu.vector_store %arg33[%c0_14, %c0_15], %49 {strides = array<i32>} : memref<32x32xf32, #tpu.memory_space<vmem>>, vector<32x8xf32>,
    %51 = vector.extract_strided_slice %47 {offsets = [2, 0, 0], sizes = [2, 16, 8], strides = [1, 1, 1]} : vector<8x16x8xf32> to vector<2x16x8xf32>
    %52 = vector.shape_cast %51 : vector<2x16x8xf32> to vector<32x8xf32>
    %c0_16 = arith.constant 0 : index
    %c8 = arith.constant 8 : index
    %53 = vector.load %arg33[%c0_16, %c8] : memref<32x32xf32, #tpu.memory_space<vmem>>, vector<32x8xf32>
    tpu.vector_store %arg33[%c0_16, %c8], %52 {strides = array<i32>} : memref<32x32xf32, #tpu.memory_space<vmem>>, vector<32x8xf32>,
    %54 = vector.extract_strided_slice %47 {offsets = [4, 0, 0], sizes = [2, 16, 8], strides = [1, 1, 1]} : vector<8x16x8xf32> to vector<2x16x8xf32>
    %55 = vector.shape_cast %54 : vector<2x16x8xf32> to vector<32x8xf32>
    %c0_17 = arith.constant 0 : index
    %c16 = arith.constant 16 : index
    %56 = vector.load %arg33[%c0_17, %c16] : memref<32x32xf32, #tpu.memory_space<vmem>>, vector<32x8xf32>
    tpu.vector_store %arg33[%c0_17, %c16], %55 {strides = array<i32>} : memref<32x32xf32, #tpu.memory_space<vmem>>, vector<32x8xf32>,
    %57 = vector.extract_strided_slice %47 {offsets = [6, 0, 0], sizes = [2, 16, 8], strides = [1, 1, 1]} : vector<8x16x8xf32> to vector<2x16x8xf32>
    %58 = vector.shape_cast %57 : vector<2x16x8xf32> to vector<32x8xf32>
    %c0_18 = arith.constant 0 : index
    %c24 = arith.constant 24 : index
    %59 = vector.load %arg33[%c0_18, %c24] : memref<32x32xf32, #tpu.memory_space<vmem>>, vector<32x8xf32>
    tpu.vector_store %arg33[%c0_18, %c24], %58 {strides = array<i32>} : memref<32x32xf32, #tpu.memory_space<vmem>>, vector<32x8xf32>,
    %c0_19 = arith.constant 0 : index
    %c0_20 = arith.constant 0 : index
    %60 = vector.load %arg33[%c0_19, %c0_20] : memref<32x32xf32, #tpu.memory_space<vmem>>, vector<32x32xf32>
    %c0_21 = arith.constant 0 : index
    %c0_22 = arith.constant 0 : index
    %c0_23 = arith.constant 0 : index
    %61 = vector.load %arg8[%c0_21, %c0_22, %c0_23] : memref<1x32x32xf32, #tpu.memory_space<vmem>>, vector<1x32x32xf32>
    %62 = vector.shape_cast %61 : vector<1x32x32xf32> to vector<32x32xf32>
    %cst_24 = arith.constant dense<0.000000e+00> : vector<32x32xf32>
    %63 = tpu.matmul %60, %62, %cst_24 {dimension_numbers = #tpu.dot_dimension_numbers<[1], [0], [0], [1], [0, 0, 1, 1], [], []>} : vector<32x32xf32>, vector<32x32xf32>, vector<32x32xf32> -> vector<32x32xf32>
    %c0_25 = arith.constant 0 : index
    %c0_26 = arith.constant 0 : index
    %c0_27 = arith.constant 0 : index
    %64 = vector.load %arg9[%c0_25, %c0_26, %c0_27] : memref<1x1x32xf32, #tpu.memory_space<vmem>>, vector<1x1x32xf32>
    %65 = vector.shape_cast %64 : vector<1x1x32xf32> to vector<1x32xf32>
    %66 = vector.broadcast %65 : vector<1x32xf32> to vector<32x32xf32>
    %67 = arith.addf %63, %66 : vector<32x32xf32>
    %68 = arith.addf %3, %67 : vector<32x32xf32>
    %c0_28 = arith.constant 0 : index
    %c0_29 = arith.constant 0 : index
    %c0_30 = arith.constant 0 : index
    %69 = vector.load %arg10[%c0_28, %c0_29, %c0_30] : memref<1x1x32xf32, #tpu.memory_space<vmem>>, vector<1x1x32xf32>
    %70 = vector.shape_cast %69 : vector<1x1x32xf32> to vector<1x32xf32>
    %c0_31 = arith.constant 0 : index
    %c0_32 = arith.constant 0 : index
    %c0_33 = arith.constant 0 : index
    %71 = vector.load %arg11[%c0_31, %c0_32, %c0_33] : memref<1x1x32xf32, #tpu.memory_space<vmem>>, vector<1x1x32xf32>
    %72 = vector.shape_cast %71 : vector<1x1x32xf32> to vector<1x32xf32>
    %cst_34 = arith.constant dense<0.000000e+00> : vector<32xf32>
    %73 = vector.multi_reduction <add>, %68, %cst_34 [1] : vector<32x32xf32> to vector<32xf32>
    %74 = vector.shape_cast %73 : vector<32xf32> to vector<32x1xf32>
    %cst_35 = arith.constant 3.200000e+01 : f32
    %75 = vector.broadcast %cst_35 : f32 to vector<32x1xf32>
    %76 = arith.divf %74, %75 : vector<32x1xf32>
    %77 = vector.broadcast %76 : vector<32x1xf32> to vector<32x32xf32>
    %78 = arith.subf %68, %77 : vector<32x32xf32>
    %79 = arith.mulf %78, %78 : vector<32x32xf32>
    %cst_36 = arith.constant dense<0.000000e+00> : vector<32xf32>
    %80 = vector.multi_reduction <add>, %79, %cst_36 [1] : vector<32x32xf32> to vector<32xf32>
    %81 = vector.shape_cast %80 : vector<32xf32> to vector<32x1xf32>
    %cst_37 = arith.constant 3.200000e+01 : f32
    %82 = vector.broadcast %cst_37 : f32 to vector<32x1xf32>
    %83 = arith.divf %81, %82 : vector<32x1xf32>
    %84 = vector.broadcast %76 : vector<32x1xf32> to vector<32x32xf32>
    %85 = arith.subf %68, %84 : vector<32x32xf32>
    %cst_38 = arith.constant 9.99999974E-6 : f32
    %86 = vector.broadcast %cst_38 : f32 to vector<32x1xf32>
    %87 = arith.addf %83, %86 : vector<32x1xf32>
    %88 = math.rsqrt %87 : vector<32x1xf32>
    %89 = vector.broadcast %88 : vector<32x1xf32> to vector<32x32xf32>
    %90 = arith.mulf %85, %89 : vector<32x32xf32>
    %91 = vector.broadcast %70 : vector<1x32xf32> to vector<32x32xf32>
    %92 = arith.mulf %90, %91 : vector<32x32xf32>
    %93 = vector.broadcast %72 : vector<1x32xf32> to vector<32x32xf32>
    %94 = arith.addf %92, %93 : vector<32x32xf32>
    %c0_39 = arith.constant 0 : index
    %c0_40 = arith.constant 0 : index
    %c0_41 = arith.constant 0 : index
    %95 = vector.load %arg12[%c0_39, %c0_40, %c0_41] : memref<1x32x64xf32, #tpu.memory_space<vmem>>, vector<1x32x64xf32>
    %96 = vector.shape_cast %95 : vector<1x32x64xf32> to vector<32x64xf32>
    %cst_42 = arith.constant dense<0.000000e+00> : vector<32x64xf32>
    %97 = tpu.matmul %94, %96, %cst_42 {dimension_numbers = #tpu.dot_dimension_numbers<[1], [0], [0], [1], [0, 0, 1, 1], [], []>} : vector<32x32xf32>, vector<32x64xf32>, vector<32x64xf32> -> vector<32x64xf32>
    %c0_43 = arith.constant 0 : index
    %c0_44 = arith.constant 0 : index
    %c0_45 = arith.constant 0 : index
    %98 = vector.load %arg13[%c0_43, %c0_44, %c0_45] : memref<1x1x64xf32, #tpu.memory_space<vmem>>, vector<1x1x64xf32>
    %99 = vector.shape_cast %98 : vector<1x1x64xf32> to vector<1x64xf32>
    %100 = vector.broadcast %99 : vector<1x64xf32> to vector<32x64xf32>
    %101 = arith.addf %97, %100 : vector<32x64xf32>
    %cst_46 = arith.constant 0.000000e+00 : f32
    %102 = vector.broadcast %cst_46 : f32 to vector<32x64xf32>
    %103 = arith.maximumf %101, %102 : vector<32x64xf32>
    %c0_47 = arith.constant 0 : index
    %c0_48 = arith.constant 0 : index
    %c0_49 = arith.constant 0 : index
    %104 = vector.load %arg14[%c0_47, %c0_48, %c0_49] : memref<1x64x32xf32, #tpu.memory_space<vmem>>, vector<1x64x32xf32>
    %105 = vector.shape_cast %104 : vector<1x64x32xf32> to vector<64x32xf32>
    %cst_50 = arith.constant dense<0.000000e+00> : vector<32x32xf32>
    %106 = tpu.matmul %103, %105, %cst_50 {dimension_numbers = #tpu.dot_dimension_numbers<[1], [0], [0], [1], [0, 0, 1, 1], [], []>} : vector<32x64xf32>, vector<64x32xf32>, vector<32x32xf32> -> vector<32x32xf32>
    %c0_51 = arith.constant 0 : index
    %c0_52 = arith.constant 0 : index
    %c0_53 = arith.constant 0 : index
    %107 = vector.load %arg15[%c0_51, %c0_52, %c0_53] : memref<1x1x32xf32, #tpu.memory_space<vmem>>, vector<1x1x32xf32>
    %108 = vector.shape_cast %107 : vector<1x1x32xf32> to vector<1x32xf32>
    %109 = vector.broadcast %108 : vector<1x32xf32> to vector<32x32xf32>
    %110 = arith.addf %106, %109 : vector<32x32xf32>
    %111 = arith.addf %94, %110 : vector<32x32xf32>
    %c0_54 = arith.constant 0 : index
    %c0_55 = arith.constant 0 : index
    %c0_56 = arith.constant 0 : index
    %112 = vector.load %arg16[%c0_54, %c0_55, %c0_56] : memref<1x1x32xf32, #tpu.memory_space<vmem>>, vector<1x1x32xf32>
    %113 = vector.shape_cast %112 : vector<1x1x32xf32> to vector<1x32xf32>
    %c0_57 = arith.constant 0 : index
    %c0_58 = arith.constant 0 : index
    %c0_59 = arith.constant 0 : index
    %114 = vector.load %arg17[%c0_57, %c0_58, %c0_59] : memref<1x1x32xf32, #tpu.memory_space<vmem>>, vector<1x1x32xf32>
    %115 = vector.shape_cast %114 : vector<1x1x32xf32> to vector<1x32xf32>
    %cst_60 = arith.constant dense<0.000000e+00> : vector<32xf32>
    %116 = vector.multi_reduction <add>, %111, %cst_60 [1] : vector<32x32xf32> to vector<32xf32>
    %117 = vector.shape_cast %116 : vector<32xf32> to vector<32x1xf32>
    %cst_61 = arith.constant 3.200000e+01 : f32
    %118 = vector.broadcast %cst_61 : f32 to vector<32x1xf32>
    %119 = arith.divf %117, %118 : vector<32x1xf32>
    %120 = vector.broadcast %119 : vector<32x1xf32> to vector<32x32xf32>
    %121 = arith.subf %111, %120 : vector<32x32xf32>
    %122 = arith.mulf %121, %121 : vector<32x32xf32>
    %cst_62 = arith.constant dense<0.000000e+00> : vector<32xf32>
    %123 = vector.multi_reduction <add>, %122, %cst_62 [1] : vector<32x32xf32> to vector<32xf32>
    %124 = vector.shape_cast %123 : vector<32xf32> to vector<32x1xf32>
    %cst_63 = arith.constant 3.200000e+01 : f32
    %125 = vector.broadcast %cst_63 : f32 to vector<32x1xf32>
    %126 = arith.divf %124, %125 : vector<32x1xf32>
    %127 = vector.broadcast %119 : vector<32x1xf32> to vector<32x32xf32>
    %128 = arith.subf %111, %127 : vector<32x32xf32>
    %cst_64 = arith.constant 9.99999974E-6 : f32
    %129 = vector.broadcast %cst_64 : f32 to vector<32x1xf32>
    %130 = arith.addf %126, %129 : vector<32x1xf32>
    %131 = math.rsqrt %130 : vector<32x1xf32>
    %132 = vector.broadcast %131 : vector<32x1xf32> to vector<32x32xf32>
    %133 = arith.mulf %128, %132 : vector<32x32xf32>
    %134 = vector.broadcast %113 : vector<1x32xf32> to vector<32x32xf32>
    %135 = arith.mulf %133, %134 : vector<32x32xf32>
    %136 = vector.broadcast %115 : vector<1x32xf32> to vector<32x32xf32>
    %137 = arith.addf %135, %136 : vector<32x32xf32>
    %c0_65 = arith.constant 0 : index
    %c0_66 = arith.constant 0 : index
    %138 = vector.load %arg32[%c0_65, %c0_66] : memref<32x32xf32, #tpu.memory_space<vmem>>, vector<32x32xf32>
    tpu.vector_store %arg32[%c0_65, %c0_66], %137 {strides = array<i32>} : memref<32x32xf32, #tpu.memory_space<vmem>>, vector<32x32xf32>,
    %c1_i32 = arith.constant 1 : i32
    %139 = arith.cmpi eq, %arg0, %c1_i32 : i32
    %140 = arith.extui %139 : i1 to i32
    %c0_i32_67 = arith.constant 0 : i32
    %141 = arith.cmpi ne, %140, %c0_i32_67 : i32
    scf.if %141 {
      %142 = vector.extract_strided_slice %137 {offsets = [8, 0], sizes = [1, 32], strides = [1, 1]} : vector<32x32xf32> to vector<1x32xf32>
      %c0_68 = arith.constant 0 : index
      %c0_69 = arith.constant 0 : index
      %143 = vector.load %arg33[%c0_68, %c0_69] : memref<32x32xf32, #tpu.memory_space<vmem>>, vector<1x32xf32>
      tpu.vector_store %arg33[%c0_68, %c0_69], %142 {strides = array<i32>} : memref<32x32xf32, #tpu.memory_space<vmem>>, vector<1x32xf32>,
      %144 = vector.extract_strided_slice %137 {offsets = [24, 0], sizes = [1, 32], strides = [1, 1]} : vector<32x32xf32> to vector<1x32xf32>
      %c1 = arith.constant 1 : index
      %c0_70 = arith.constant 0 : index
      %145 = vector.load %arg33[%c1, %c0_70] : memref<32x32xf32, #tpu.memory_space<vmem>>, vector<1x32xf32>
      tpu.vector_store %arg33[%c1, %c0_70], %144 {strides = array<i32>} : memref<32x32xf32, #tpu.memory_space<vmem>>, vector<1x32xf32>,
      %c0_71 = arith.constant 0 : index
      %c0_72 = arith.constant 0 : index
      %146 = vector.load %arg33[%c0_71, %c0_72] : memref<32x32xf32, #tpu.memory_space<vmem>>, vector<2x32xf32>
      %c0_73 = arith.constant 0 : index
      %c0_74 = arith.constant 0 : index
      %147 = vector.load %arg31[%c0_73, %c0_74] : memref<2x32xf32, #tpu.memory_space<vmem>>, vector<2x32xf32>
      tpu.vector_store %arg31[%c0_73, %c0_74], %146 {strides = array<i32>} : memref<2x32xf32, #tpu.memory_space<vmem>>, vector<2x32xf32>,
      %c0_75 = arith.constant 0 : index
      %c0_76 = arith.constant 0 : index
      %148 = vector.load %arg22[%c0_75, %c0_76] : memref<32x512xf32, #tpu.memory_space<vmem>>, vector<32x512xf32>
      %cst_77 = arith.constant dense<0.000000e+00> : vector<2x512xf32>
      %149 = tpu.matmul %146, %148, %cst_77 {dimension_numbers = #tpu.dot_dimension_numbers<[1], [0], [0], [1], [0, 0, 1, 1], [], []>} : vector<2x32xf32>, vector<32x512xf32>, vector<2x512xf32> -> vector<2x512xf32>
      %c0_78 = arith.constant 0 : index
      %c0_79 = arith.constant 0 : index
      %150 = vector.load %arg23[%c0_78, %c0_79] : memref<1x512xf32, #tpu.memory_space<vmem>>, vector<1x512xf32>
      %151 = vector.broadcast %150 : vector<1x512xf32> to vector<2x512xf32>
      %152 = arith.mulf %149, %151 : vector<2x512xf32>
      %c0_80 = arith.constant 0 : index
      %c0_81 = arith.constant 0 : index
      %153 = vector.load %arg24[%c0_80, %c0_81] : memref<1x512xf32, #tpu.memory_space<vmem>>, vector<1x512xf32>
      %154 = vector.broadcast %153 : vector<1x512xf32> to vector<2x512xf32>
      %155 = arith.addf %152, %154 : vector<2x512xf32>
      %cst_82 = arith.constant 0.000000e+00 : f32
      %156 = vector.broadcast %cst_82 : f32 to vector<2x512xf32>
      %157 = arith.maximumf %155, %156 : vector<2x512xf32>
      %c0_83 = arith.constant 0 : index
      %c0_84 = arith.constant 0 : index
      %158 = vector.load %arg25[%c0_83, %c0_84] : memref<512x512xf32, #tpu.memory_space<vmem>>, vector<512x512xf32>
      %cst_85 = arith.constant dense<0.000000e+00> : vector<2x512xf32>
      %159 = tpu.matmul %157, %158, %cst_85 {dimension_numbers = #tpu.dot_dimension_numbers<[1], [0], [0], [1], [0, 0, 1, 1], [], []>} : vector<2x512xf32>, vector<512x512xf32>, vector<2x512xf32> -> vector<2x512xf32>
      %c0_86 = arith.constant 0 : index
      %c0_87 = arith.constant 0 : index
      %160 = vector.load %arg26[%c0_86, %c0_87] : memref<1x512xf32, #tpu.memory_space<vmem>>, vector<1x512xf32>
      %161 = vector.broadcast %160 : vector<1x512xf32> to vector<2x512xf32>
      %162 = arith.mulf %159, %161 : vector<2x512xf32>
      %c0_88 = arith.constant 0 : index
      %c0_89 = arith.constant 0 : index
      %163 = vector.load %arg27[%c0_88, %c0_89] : memref<1x512xf32, #tpu.memory_space<vmem>>, vector<1x512xf32>
      %164 = vector.broadcast %163 : vector<1x512xf32> to vector<2x512xf32>
      %165 = arith.addf %162, %164 : vector<2x512xf32>
      %cst_90 = arith.constant 0.000000e+00 : f32
      %166 = vector.broadcast %cst_90 : f32 to vector<2x512xf32>
      %167 = arith.maximumf %165, %166 : vector<2x512xf32>
      %c0_91 = arith.constant 0 : index
      %c0_92 = arith.constant 0 : index
      %168 = vector.load %arg28[%c0_91, %c0_92] : memref<512x512xf32, #tpu.memory_space<vmem>>, vector<512x512xf32>
      %cst_93 = arith.constant dense<0.000000e+00> : vector<2x512xf32>
      %169 = tpu.matmul %167, %168, %cst_93 {dimension_numbers = #tpu.dot_dimension_numbers<[1], [0], [0], [1], [0, 0, 1, 1], [], []>} : vector<2x512xf32>, vector<512x512xf32>, vector<2x512xf32> -> vector<2x512xf32>
      %c0_94 = arith.constant 0 : index
      %c0_95 = arith.constant 0 : index
      %170 = vector.load %arg29[%c0_94, %c0_95] : memref<2x512xf32, #tpu.memory_space<vmem>>, vector<2x512xf32>
      tpu.vector_store %arg29[%c0_94, %c0_95], %169 {strides = array<i32>} : memref<2x512xf32, #tpu.memory_space<vmem>>, vector<2x512xf32>,
      %c0_96 = arith.constant 0 : index
      %c0_97 = arith.constant 0 : index
      %171 = vector.load %arg18[%c0_96, %c0_97] : memref<32x16xf32, #tpu.memory_space<vmem>>, vector<32x16xf32>
      %cst_98 = arith.constant dense<0.000000e+00> : vector<32x16xf32>
      %172 = tpu.matmul %137, %171, %cst_98 {dimension_numbers = #tpu.dot_dimension_numbers<[1], [0], [0], [1], [0, 0, 1, 1], [], []>} : vector<32x32xf32>, vector<32x16xf32>, vector<32x16xf32> -> vector<32x16xf32>
      %c0_99 = arith.constant 0 : index
      %c0_100 = arith.constant 0 : index
      %173 = vector.load %arg19[%c0_99, %c0_100] : memref<1x16xf32, #tpu.memory_space<vmem>>, vector<1x16xf32>
      %174 = vector.broadcast %173 : vector<1x16xf32> to vector<32x16xf32>
      %175 = arith.addf %172, %174 : vector<32x16xf32>
      %cst_101 = arith.constant 0.000000e+00 : f32
      %176 = vector.broadcast %cst_101 : f32 to vector<32x16xf32>
      %177 = arith.maximumf %175, %176 : vector<32x16xf32>
      %c0_102 = arith.constant 0 : index
      %c0_103 = arith.constant 0 : index
      %178 = vector.load %arg20[%c0_102, %c0_103] : memref<16x16xf32, #tpu.memory_space<vmem>>, vector<16x16xf32>
      %cst_104 = arith.constant dense<0.000000e+00> : vector<32x16xf32>
      %179 = tpu.matmul %177, %178, %cst_104 {dimension_numbers = #tpu.dot_dimension_numbers<[1], [0], [0], [1], [0, 0, 1, 1], [], []>} : vector<32x16xf32>, vector<16x16xf32>, vector<32x16xf32> -> vector<32x16xf32>
      %c0_105 = arith.constant 0 : index
      %c0_106 = arith.constant 0 : index
      %180 = vector.load %arg21[%c0_105, %c0_106] : memref<1x16xf32, #tpu.memory_space<vmem>>, vector<1x16xf32>
      %181 = vector.broadcast %180 : vector<1x16xf32> to vector<32x16xf32>
      %182 = arith.addf %179, %181 : vector<32x16xf32>
      %183 = vector.extract_strided_slice %182 {offsets = [8, 0], sizes = [1, 16], strides = [1, 1]} : vector<32x16xf32> to vector<1x16xf32>
      %c0_107 = arith.constant 0 : index
      %c0_108 = arith.constant 0 : index
      %184 = vector.load %arg30[%c0_107, %c0_108] : memref<2x144xf32, #tpu.memory_space<vmem>>, vector<1x16xf32>
      tpu.vector_store %arg30[%c0_107, %c0_108], %183 {strides = array<i32>} : memref<2x144xf32, #tpu.memory_space<vmem>>, vector<1x16xf32>,
      %185 = vector.extract_strided_slice %182 {offsets = [0, 0], sizes = [1, 16], strides = [1, 1]} : vector<32x16xf32> to vector<1x16xf32>
      %c0_109 = arith.constant 0 : index
      %c16_110 = arith.constant 16 : index
      %186 = vector.load %arg30[%c0_109, %c16_110] : memref<2x144xf32, #tpu.memory_space<vmem>>, vector<1x16xf32>
      tpu.vector_store %arg30[%c0_109, %c16_110], %185 {strides = array<i32>} : memref<2x144xf32, #tpu.memory_space<vmem>>, vector<1x16xf32>,
      %187 = vector.extract_strided_slice %182 {offsets = [1, 0], sizes = [1, 16], strides = [1, 1]} : vector<32x16xf32> to vector<1x16xf32>
      %c0_111 = arith.constant 0 : index
      %c32 = arith.constant 32 : index
      %188 = vector.load %arg30[%c0_111, %c32] : memref<2x144xf32, #tpu.memory_space<vmem>>, vector<1x16xf32>
      tpu.vector_store %arg30[%c0_111, %c32], %187 {strides = array<i32>} : memref<2x144xf32, #tpu.memory_space<vmem>>, vector<1x16xf32>,
      %189 = vector.extract_strided_slice %182 {offsets = [2, 0], sizes = [1, 16], strides = [1, 1]} : vector<32x16xf32> to vector<1x16xf32>
      %c0_112 = arith.constant 0 : index
      %c48 = arith.constant 48 : index
      %190 = vector.load %arg30[%c0_112, %c48] : memref<2x144xf32, #tpu.memory_space<vmem>>, vector<1x16xf32>
      tpu.vector_store %arg30[%c0_112, %c48], %189 {strides = array<i32>} : memref<2x144xf32, #tpu.memory_space<vmem>>, vector<1x16xf32>,
      %191 = vector.extract_strided_slice %182 {offsets = [3, 0], sizes = [1, 16], strides = [1, 1]} : vector<32x16xf32> to vector<1x16xf32>
      %c0_113 = arith.constant 0 : index
      %c64 = arith.constant 64 : index
      %192 = vector.load %arg30[%c0_113, %c64] : memref<2x144xf32, #tpu.memory_space<vmem>>, vector<1x16xf32>
      tpu.vector_store %arg30[%c0_113, %c64], %191 {strides = array<i32>} : memref<2x144xf32, #tpu.memory_space<vmem>>, vector<1x16xf32>,
      %193 = vector.extract_strided_slice %182 {offsets = [4, 0], sizes = [1, 16], strides = [1, 1]} : vector<32x16xf32> to vector<1x16xf32>
      %c0_114 = arith.constant 0 : index
      %c80 = arith.constant 80 : index
      %194 = vector.load %arg30[%c0_114, %c80] : memref<2x144xf32, #tpu.memory_space<vmem>>, vector<1x16xf32>
      tpu.vector_store %arg30[%c0_114, %c80], %193 {strides = array<i32>} : memref<2x144xf32, #tpu.memory_space<vmem>>, vector<1x16xf32>,
      %195 = vector.extract_strided_slice %182 {offsets = [5, 0], sizes = [1, 16], strides = [1, 1]} : vector<32x16xf32> to vector<1x16xf32>
      %c0_115 = arith.constant 0 : index
      %c96 = arith.constant 96 : index
      %196 = vector.load %arg30[%c0_115, %c96] : memref<2x144xf32, #tpu.memory_space<vmem>>, vector<1x16xf32>
      tpu.vector_store %arg30[%c0_115, %c96], %195 {strides = array<i32>} : memref<2x144xf32, #tpu.memory_space<vmem>>, vector<1x16xf32>,
      %197 = vector.extract_strided_slice %182 {offsets = [6, 0], sizes = [1, 16], strides = [1, 1]} : vector<32x16xf32> to vector<1x16xf32>
      %c0_116 = arith.constant 0 : index
      %c112 = arith.constant 112 : index
      %198 = vector.load %arg30[%c0_116, %c112] : memref<2x144xf32, #tpu.memory_space<vmem>>, vector<1x16xf32>
      tpu.vector_store %arg30[%c0_116, %c112], %197 {strides = array<i32>} : memref<2x144xf32, #tpu.memory_space<vmem>>, vector<1x16xf32>,
      %199 = vector.extract_strided_slice %182 {offsets = [7, 0], sizes = [1, 16], strides = [1, 1]} : vector<32x16xf32> to vector<1x16xf32>
      %c0_117 = arith.constant 0 : index
      %c128 = arith.constant 128 : index
      %200 = vector.load %arg30[%c0_117, %c128] : memref<2x144xf32, #tpu.memory_space<vmem>>, vector<1x16xf32>
      tpu.vector_store %arg30[%c0_117, %c128], %199 {strides = array<i32>} : memref<2x144xf32, #tpu.memory_space<vmem>>, vector<1x16xf32>,
      %201 = vector.extract_strided_slice %182 {offsets = [24, 0], sizes = [1, 16], strides = [1, 1]} : vector<32x16xf32> to vector<1x16xf32>
      %c1_118 = arith.constant 1 : index
      %c0_119 = arith.constant 0 : index
      %202 = vector.load %arg30[%c1_118, %c0_119] : memref<2x144xf32, #tpu.memory_space<vmem>>, vector<1x16xf32>
      tpu.vector_store %arg30[%c1_118, %c0_119], %201 {strides = array<i32>} : memref<2x144xf32, #tpu.memory_space<vmem>>, vector<1x16xf32>,
      %203 = vector.extract_strided_slice %182 {offsets = [16, 0], sizes = [1, 16], strides = [1, 1]} : vector<32x16xf32> to vector<1x16xf32>
      %c1_120 = arith.constant 1 : index
      %c16_121 = arith.constant 16 : index
      %204 = vector.load %arg30[%c1_120, %c16_121] : memref<2x144xf32, #tpu.memory_space<vmem>>, vector<1x16xf32>
      tpu.vector_store %arg30[%c1_120, %c16_121], %203 {strides = array<i32>} : memref<2x144xf32, #tpu.memory_space<vmem>>, vector<1x16xf32>,
      %205 = vector.extract_strided_slice %182 {offsets = [17, 0], sizes = [1, 16], strides = [1, 1]} : vector<32x16xf32> to vector<1x16xf32>
      %c1_122 = arith.constant 1 : index
      %c32_123 = arith.constant 32 : index
      %206 = vector.load %arg30[%c1_122, %c32_123] : memref<2x144xf32, #tpu.memory_space<vmem>>, vector<1x16xf32>
      tpu.vector_store %arg30[%c1_122, %c32_123], %205 {strides = array<i32>} : memref<2x144xf32, #tpu.memory_space<vmem>>, vector<1x16xf32>,
      %207 = vector.extract_strided_slice %182 {offsets = [18, 0], sizes = [1, 16], strides = [1, 1]} : vector<32x16xf32> to vector<1x16xf32>
      %c1_124 = arith.constant 1 : index
      %c48_125 = arith.constant 48 : index
      %208 = vector.load %arg30[%c1_124, %c48_125] : memref<2x144xf32, #tpu.memory_space<vmem>>, vector<1x16xf32>
      tpu.vector_store %arg30[%c1_124, %c48_125], %207 {strides = array<i32>} : memref<2x144xf32, #tpu.memory_space<vmem>>, vector<1x16xf32>,
      %209 = vector.extract_strided_slice %182 {offsets = [19, 0], sizes = [1, 16], strides = [1, 1]} : vector<32x16xf32> to vector<1x16xf32>
      %c1_126 = arith.constant 1 : index
      %c64_127 = arith.constant 64 : index
      %210 = vector.load %arg30[%c1_126, %c64_127] : memref<2x144xf32, #tpu.memory_space<vmem>>, vector<1x16xf32>
      tpu.vector_store %arg30[%c1_126, %c64_127], %209 {strides = array<i32>} : memref<2x144xf32, #tpu.memory_space<vmem>>, vector<1x16xf32>,
      %211 = vector.extract_strided_slice %182 {offsets = [20, 0], sizes = [1, 16], strides = [1, 1]} : vector<32x16xf32> to vector<1x16xf32>
      %c1_128 = arith.constant 1 : index
      %c80_129 = arith.constant 80 : index
      %212 = vector.load %arg30[%c1_128, %c80_129] : memref<2x144xf32, #tpu.memory_space<vmem>>, vector<1x16xf32>
      tpu.vector_store %arg30[%c1_128, %c80_129], %211 {strides = array<i32>} : memref<2x144xf32, #tpu.memory_space<vmem>>, vector<1x16xf32>,
      %213 = vector.extract_strided_slice %182 {offsets = [21, 0], sizes = [1, 16], strides = [1, 1]} : vector<32x16xf32> to vector<1x16xf32>
      %c1_130 = arith.constant 1 : index
      %c96_131 = arith.constant 96 : index
      %214 = vector.load %arg30[%c1_130, %c96_131] : memref<2x144xf32, #tpu.memory_space<vmem>>, vector<1x16xf32>
      tpu.vector_store %arg30[%c1_130, %c96_131], %213 {strides = array<i32>} : memref<2x144xf32, #tpu.memory_space<vmem>>, vector<1x16xf32>,
      %215 = vector.extract_strided_slice %182 {offsets = [22, 0], sizes = [1, 16], strides = [1, 1]} : vector<32x16xf32> to vector<1x16xf32>
      %c1_132 = arith.constant 1 : index
      %c112_133 = arith.constant 112 : index
      %216 = vector.load %arg30[%c1_132, %c112_133] : memref<2x144xf32, #tpu.memory_space<vmem>>, vector<1x16xf32>
      tpu.vector_store %arg30[%c1_132, %c112_133], %215 {strides = array<i32>} : memref<2x144xf32, #tpu.memory_space<vmem>>, vector<1x16xf32>,
      %217 = vector.extract_strided_slice %182 {offsets = [23, 0], sizes = [1, 16], strides = [1, 1]} : vector<32x16xf32> to vector<1x16xf32>
      %c1_134 = arith.constant 1 : index
      %c128_135 = arith.constant 128 : index
      %218 = vector.load %arg30[%c1_134, %c128_135] : memref<2x144xf32, #tpu.memory_space<vmem>>, vector<1x16xf32>
      tpu.vector_store %arg30[%c1_134, %c128_135], %217 {strides = array<i32>} : memref<2x144xf32, #tpu.memory_space<vmem>>, vector<1x16xf32>,
    } else {
    }
    return
  }
  func.func @transform_0(%arg0: i32) -> (i32, i32, i32) {
    %c0_i32 = arith.constant 0 : i32
    %c0_i32_0 = arith.constant 0 : i32
    %c0_i32_1 = arith.constant 0 : i32
    %c0_i32_2 = arith.constant 0 : i32
    return %c0_i32, %c0_i32_0, %c0_i32_1 : i32, i32, i32
  }
  func.func @transform_1(%arg0: i32) -> (i32, i32) {
    %c0_i32 = arith.constant 0 : i32
    %c0_i32_0 = arith.constant 0 : i32
    %c0_i32_1 = arith.constant 0 : i32
    return %c0_i32, %c0_i32_0 : i32, i32
  }
  func.func @transform_2(%arg0: i32) -> (i32, i32) {
    %c0_i32 = arith.constant 0 : i32
    %c0_i32_0 = arith.constant 0 : i32
    %c0_i32_1 = arith.constant 0 : i32
    return %c0_i32, %c0_i32_0 : i32, i32
  }
  func.func @transform_3(%arg0: i32) -> (i32, i32) {
    %c0_i32 = arith.constant 0 : i32
    %c0_i32_0 = arith.constant 0 : i32
    %c0_i32_1 = arith.constant 0 : i32
    return %c0_i32, %c0_i32_0 : i32, i32
  }
  func.func @transform_4(%arg0: i32) -> (i32, i32) {
    %c0_i32 = arith.constant 0 : i32
    %c0_i32_0 = arith.constant 0 : i32
    %c0_i32_1 = arith.constant 0 : i32
    return %c0_i32, %c0_i32_0 : i32, i32
  }
  func.func @transform_5(%arg0: i32) -> (i32, i32, i32) {
    %c0_i32 = arith.constant 0 : i32
    %c0_i32_0 = arith.constant 0 : i32
    %c0_i32_1 = arith.constant 0 : i32
    return %arg0, %c0_i32, %c0_i32_0 : i32, i32, i32
  }
  func.func @transform_6(%arg0: i32) -> (i32, i32, i32) {
    %c0_i32 = arith.constant 0 : i32
    %c0_i32_0 = arith.constant 0 : i32
    %c0_i32_1 = arith.constant 0 : i32
    return %arg0, %c0_i32, %c0_i32_0 : i32, i32, i32
  }
  func.func @transform_7(%arg0: i32) -> (i32, i32, i32) {
    %c0_i32 = arith.constant 0 : i32
    %c0_i32_0 = arith.constant 0 : i32
    %c0_i32_1 = arith.constant 0 : i32
    return %arg0, %c0_i32, %c0_i32_0 : i32, i32, i32
  }
  func.func @transform_8(%arg0: i32) -> (i32, i32, i32) {
    %c0_i32 = arith.constant 0 : i32
    %c0_i32_0 = arith.constant 0 : i32
    %c0_i32_1 = arith.constant 0 : i32
    return %arg0, %c0_i32, %c0_i32_0 : i32, i32, i32
  }
  func.func @transform_9(%arg0: i32) -> (i32, i32, i32) {
    %c0_i32 = arith.constant 0 : i32
    %c0_i32_0 = arith.constant 0 : i32
    %c0_i32_1 = arith.constant 0 : i32
    return %arg0, %c0_i32, %c0_i32_0 : i32, i32, i32
  }
  func.func @transform_10(%arg0: i32) -> (i32, i32, i32) {
    %c0_i32 = arith.constant 0 : i32
    %c0_i32_0 = arith.constant 0 : i32
    %c0_i32_1 = arith.constant 0 : i32
    return %arg0, %c0_i32, %c0_i32_0 : i32, i32, i32
  }
  func.func @transform_11(%arg0: i32) -> (i32, i32, i32) {
    %c0_i32 = arith.constant 0 : i32
    %c0_i32_0 = arith.constant 0 : i32
    %c0_i32_1 = arith.constant 0 : i32
    return %arg0, %c0_i32, %c0_i32_0 : i32, i32, i32
  }
  func.func @transform_12(%arg0: i32) -> (i32, i32, i32) {
    %c0_i32 = arith.constant 0 : i32
    %c0_i32_0 = arith.constant 0 : i32
    %c0_i32_1 = arith.constant 0 : i32
    return %arg0, %c0_i32, %c0_i32_0 : i32, i32, i32
  }
  func.func @transform_13(%arg0: i32) -> (i32, i32, i32) {
    %c0_i32 = arith.constant 0 : i32
    %c0_i32_0 = arith.constant 0 : i32
    %c0_i32_1 = arith.constant 0 : i32
    return %arg0, %c0_i32, %c0_i32_0 : i32, i32, i32
  }
  func.func @transform_14(%arg0: i32) -> (i32, i32, i32) {
    %c0_i32 = arith.constant 0 : i32
    %c0_i32_0 = arith.constant 0 : i32
    %c0_i32_1 = arith.constant 0 : i32
    return %arg0, %c0_i32, %c0_i32_0 : i32, i32, i32
  }
  func.func @transform_15(%arg0: i32) -> (i32, i32, i32) {
    %c0_i32 = arith.constant 0 : i32
    %c0_i32_0 = arith.constant 0 : i32
    %c0_i32_1 = arith.constant 0 : i32
    return %arg0, %c0_i32, %c0_i32_0 : i32, i32, i32
  }
  func.func @transform_16(%arg0: i32) -> (i32, i32, i32) {
    %c0_i32 = arith.constant 0 : i32
    %c0_i32_0 = arith.constant 0 : i32
    %c0_i32_1 = arith.constant 0 : i32
    return %arg0, %c0_i32, %c0_i32_0 : i32, i32, i32
  }
  func.func @transform_17(%arg0: i32) -> (i32, i32) {
    %c0_i32 = arith.constant 0 : i32
    %c0_i32_0 = arith.constant 0 : i32
    %c0_i32_1 = arith.constant 0 : i32
    return %c0_i32, %c0_i32_0 : i32, i32
  }
  func.func @transform_18(%arg0: i32) -> (i32, i32) {
    %c0_i32 = arith.constant 0 : i32
    %c0_i32_0 = arith.constant 0 : i32
    %c0_i32_1 = arith.constant 0 : i32
    return %c0_i32, %c0_i32_0 : i32, i32
  }
  func.func @transform_19(%arg0: i32) -> (i32, i32) {
    %c0_i32 = arith.constant 0 : i32
    %c0_i32_0 = arith.constant 0 : i32
    %c0_i32_1 = arith.constant 0 : i32
    return %c0_i32, %c0_i32_0 : i32, i32
  }
  func.func @transform_20(%arg0: i32) -> (i32, i32) {
    %c0_i32 = arith.constant 0 : i32
    %c0_i32_0 = arith.constant 0 : i32
    %c0_i32_1 = arith.constant 0 : i32
    return %c0_i32, %c0_i32_0 : i32, i32
  }
  func.func @transform_21(%arg0: i32) -> (i32, i32) {
    %c0_i32 = arith.constant 0 : i32
    %c0_i32_0 = arith.constant 0 : i32
    %c0_i32_1 = arith.constant 0 : i32
    return %c0_i32, %c0_i32_0 : i32, i32
  }
  func.func @transform_22(%arg0: i32) -> (i32, i32) {
    %c0_i32 = arith.constant 0 : i32
    %c0_i32_0 = arith.constant 0 : i32
    %c0_i32_1 = arith.constant 0 : i32
    return %c0_i32, %c0_i32_0 : i32, i32
  }
  func.func @transform_23(%arg0: i32) -> (i32, i32) {
    %c0_i32 = arith.constant 0 : i32
    %c0_i32_0 = arith.constant 0 : i32
    %c0_i32_1 = arith.constant 0 : i32
    return %c0_i32, %c0_i32_0 : i32, i32
  }
  func.func @transform_24(%arg0: i32) -> (i32, i32) {
    %c0_i32 = arith.constant 0 : i32
    %c0_i32_0 = arith.constant 0 : i32
    %c0_i32_1 = arith.constant 0 : i32
    return %c0_i32, %c0_i32_0 : i32, i32
  }
  func.func @transform_25(%arg0: i32) -> (i32, i32) {
    %c0_i32 = arith.constant 0 : i32
    %c0_i32_0 = arith.constant 0 : i32
    %c0_i32_1 = arith.constant 0 : i32
    return %c0_i32, %c0_i32_0 : i32, i32
  }
  func.func @transform_26(%arg0: i32) -> (i32, i32) {
    %c0_i32 = arith.constant 0 : i32
    %c0_i32_0 = arith.constant 0 : i32
    %c0_i32_1 = arith.constant 0 : i32
    return %c0_i32, %c0_i32_0 : i32, i32
  }
  func.func @transform_27(%arg0: i32) -> (i32, i32) {
    %c0_i32 = arith.constant 0 : i32
    %c0_i32_0 = arith.constant 0 : i32
    %c0_i32_1 = arith.constant 0 : i32
    return %c0_i32, %c0_i32_0 : i32, i32
  }
  func.func @transform_28(%arg0: i32) -> (i32, i32) {
    %c0_i32 = arith.constant 0 : i32
    %c0_i32_0 = arith.constant 0 : i32
    %c0_i32_1 = arith.constant 0 : i32
    return %c0_i32, %c0_i32_0 : i32, i32
  }
  func.func @transform_29(%arg0: i32) -> (i32, i32) {
    %c0_i32 = arith.constant 0 : i32
    %c0_i32_0 = arith.constant 0 : i32
    %c0_i32_1 = arith.constant 0 : i32
    return %c0_i32, %c0_i32_0 : i32, i32
  }
  func.func @transform_30(%arg0: i32) -> (i32, i32) {
    %c0_i32 = arith.constant 0 : i32
    %c0_i32_0 = arith.constant 0 : i32
    %c0_i32_1 = arith.constant 0 : i32
    return %c0_i32, %c0_i32_0 : i32, i32
  }
}

</mosaic_0001>

<bundles_post_ra>
// kernel: poster_forward.1
= control target key start
LH: loop header
LB: loop body
LE: loop exit
PB: predicated region body
PF: predicated region fallthrough
CT: control target
= control target key end

     0   :  { %s7422_s6 = smov 1   ;;  %s7423_s10 = smov 2   ;;  %s8673_s0 = inlined_call_operand.smem [shape: u32[31], index: -1, kind: input, shape index: {}] }
   0x1   :  { %s7503_s5 = sld [smem:[%s8673_s0]]   ;;  %s7424_s14 = smov 3  }
   0x2   :  { %s7508_s9 = sld [smem:[%s8673_s0 + %s7422_s6]]   ;;  %s7425_s18 = smov 4  }
   0x3   :  { %s7513_s13 = sld [smem:[%s8673_s0 + %s7423_s10]]   ;;  %s7426_s22 = smov 5  }
   0x4   :  { %s7518_s17 = sld [smem:[%s8673_s0 + %s7424_s14]]   ;;  %s7427_s26 = smov 6  }
   0x5   :  { %s7523_s21 = sld [smem:[%s8673_s0 + %s7425_s18]]   ;;  %s7428_s30 = smov 7  }
   0x6   :  { %s7528_s25 = sld [smem:[%s8673_s0 + %s7426_s22]]   ;;  %s7429_s4 = smov 8  }
   0x7   :  { %8707 = sst [smem:[#allocation50_spill]] %s7503_s5  ;;  %s7430_s10 = smov 9  }
   0x8   :  { %s7533_s29 = sld [smem:[%s8673_s0 + %s7427_s26]]   ;;  %s7431_s15 = smov 10  }
   0x9   :  { %8708 = sst [smem:[#allocation51_spill]] %s7513_s13  ;;  %s7432_s20 = smov 11  }
   0xa   :  { %s7538_s3 = sld [smem:[%s8673_s0 + %s7428_s30]]   ;;  %s7433_s26 = smov 12  }
   0xb   :  { %8709 = sst [smem:[#allocation52_spill]] %s7523_s21  ;;  %s7434_s1 = smov 13  }
   0xc   :  { %8710 = sst [smem:[#allocation53_spill]] %s7528_s25  ;;  %s7435_s7 = smov 14  }
   0xd   :  { %s7543_s8 = sld [smem:[%s8673_s0 + %s7429_s4]]   ;;  %s7437_s22 = smov 16  }
   0xe   :  { %8711 = sst [smem:[#allocation54_spill]] %s7533_s29  ;;  %s7438_s28 = smov 17  }
   0xf   :  { %s7548_s14 = sld [smem:[%s8673_s0 + %s7430_s10]]  }
  0x10   :  { %8712 = sst [smem:[#allocation55_spill]] %s7538_s3 }
  0x11   :  { %s7553_s19 = sld [smem:[%s8673_s0 + %s7431_s15]]   ;;  %s7436_s15 = smov 15  }
  0x12   :  { %s7558_s24 = sld [smem:[%s8673_s0 + %s7432_s20]]  }
  0x13   :  { %8713 = sst [smem:[#allocation56_spill]] %s7543_s8 }
  0x14   :  { %s7563_s30 = sld [smem:[%s8673_s0 + %s7433_s26]]  }
  0x15   :  { %8714 = sst [smem:[#allocation57_spill]] %s7548_s14 }
  0x16   :  { %s7568_s6 = sld [smem:[%s8673_s0 + %s7434_s1]]  }
  0x17   :  { %8715 = sst [smem:[#allocation58_spill]] %s7553_s19 }
  0x18   :  { %8716 = sst [smem:[#allocation59_spill]] %s7558_s24 }
  0x19   :  { %s7573_s12 = sld [smem:[%s8673_s0 + %s7435_s7]]   ;;  %s7439_s7 = smov 18  }
  0x1a   :  { %s7578_s20 = sld [smem:[%s8673_s0 + %s7436_s15]]   ;;  %s7440_s15 = smov 19  }
  0x1b   :  { %s7583_s27 = sld [smem:[%s8673_s0 + %s7437_s22]]   ;;  %s7441_s22 = smov 20  }
  0x1c   :  { %8717 = sst [smem:[#allocation60_spill]] %s7568_s6 }
  0x1d   :  { %s7588_s4 = sld [smem:[%s8673_s0 + %s7438_s28]]   ;;  %s7442_s28 = smov 21  }
  0x1e   :  { %s7593_s21 = sld [smem:[%s8673_s0 + %s7439_s7]]   ;;  %s7443_s7 = smov 22  }
  0x1f   :  { %8718 = sst [smem:[#allocation61_spill]] %s7573_s12 }
  0x20   :  { %s7598_s5 = sld [smem:[%s8673_s0 + %s7440_s15]]   ;;  %s7444_s15 = smov 23  }
  0x21   :  { %8719 = sst [smem:[#allocation62_spill]] %s7583_s27 }
  0x22   :  { %s7603_s6 = sld [smem:[%s8673_s0 + %s7441_s22]]   ;;  %s7445_s22 = smov 24  }
  0x23   :  { %8720 = sst [smem:[#allocation63_spill]] %s7588_s4 }
  0x24   :  { %8721 = sst [smem:[#allocation64_spill]] %s7593_s21 }
  0x25   :  { %s7608_s4 = sld [smem:[%s8673_s0 + %s7442_s28]]   ;;  %s7446_s28 = smov 25  }
  0x26   :  { %8722 = sst [smem:[#allocation65_spill]] %s7598_s5 }
  0x27   :  { %s7613_s21 = sld [smem:[%s8673_s0 + %s7443_s7]]   ;;  %s7447_s7 = smov 26  }
  0x28   :  { %s7618_s3 = sld [smem:[%s8673_s0 + %s7444_s15]]   ;;  %s7448_s15 = smov 27  }
  0x29   :  { %s7623_s25 = sld [smem:[%s8673_s0 + %s7445_s22]]   ;;  %s7449_s22 = smov 28  }
  0x2a   :  { %s7633_s8 = sld [smem:[%s8673_s0 + %s7447_s7]]   ;;  %s7451_s7 = smov 30  }
  0x2b   :  { %8723 = sst [smem:[#allocation66_spill]] %s7608_s4 }
  0x2c   :  { %s7628_s4 = sld [smem:[%s8673_s0 + %s7446_s28]]   ;;  %s7450_s28 = smov 29  }
  0x2d   :  { %8724 = sst [smem:[#allocation67_spill]] %s7613_s21 }
  0x2e   :  { %8725 = sst [smem:[#allocation68_spill]] %s7618_s3 }
  0x2f   :  { %8726 = sst [smem:[#allocation69_spill]] %s7623_s25 }
  0x30   :  { %8728 = sst [smem:[#allocation71_spill]] %s7633_s8 }
  0x31   :  { %s7638_s27 = sld [smem:[%s8673_s0 + %s7448_s15]]  }
  0x32   :  { %8727 = sst [smem:[#allocation70_spill]] %s7628_s4 }
  0x33   :  { %s7643_s12 = sld [smem:[%s8673_s0 + %s7449_s22]]  }
  0x34   :  { %s7648_s24 = sld [smem:[%s8673_s0 + %s7450_s28]]  }
  0x35   :  { %s7653_s14 = sld [smem:[%s8673_s0 + %s7451_s7]]  }
  0x39   :  { %8729 = sst [smem:[#allocation72_spill]] %s7643_s12 }
  0x3a   :  { %8730 = sst [smem:[#allocation73_spill]] %s7648_s24 }
  0x3b   :  { %8731 = sst [smem:[#allocation74_spill]] %s7653_s14 }
  0x3c   :  { %67 = vsyncpa [#allocation5], 0 }
  0x3d   :  { %68 = vsyncpa [#allocation8], 0 }
  0x3e   :  { %69 = vsyncpa [#allocation11], 0 }
  0x3f   :  { %71 = vsyncpa [#allocation11 + $0x1], 0 }
  0x40   :  { %72 = vsyncpa [#allocation14], 0 }
  0x41   :  { %74 = vsyncpa [#allocation14 + $0x1], 0 }
  0x42   :  { %75 = vsyncpa [#allocation17], 0 }
  0x43   :  { %77 = vsyncpa [#allocation17 + $0x1], 0 }
  0x44   :  { %78 = vsyncpa [#allocation20], 0 }
  0x45   :  { %80 = vsyncpa [#allocation20 + $0x1], 0 }
  0x46   :  { %81 = vsyncpa [#allocation23], 0 }
  0x47   :  { %82 = vsyncpa [#allocation26], 0 }
  0x48   :  { %83 = vsyncpa [#allocation29], 0 }
  0x49   :  { %84 = vsyncpa [#allocation32], 0 }
  0x4a   :  { %85 = vsyncpa [#allocation6], 0 }
  0x4b   :  { %86 = vsyncpa [#allocation36], 0  ;;  %s7655_s15 = smov 0   ;;  %s7657_s0 = smov 0  }
  0x4c   :  { %s7659_s16 = smov 0   ;;  %s7661_s18 = smov 0  }
  0x4d LB: > { %s8732_s19 = sld [smem:[#allocation58_spill]]  ;;  %s7452_s22 = smov [#allocation7]   ;;  %s7412_s0 = sphi %s7657_s0, %s8805_s0   ;;  %s7408_s15 = sphi %s7655_s15, %s8804_s15   ;;  %s7420_s18 = sphi %s7661_s18, %s8801_s18   ;;  %s7416_s16 = sphi %s7659_s16, %s8803_s16  }
  0x4e   : > { %s8733_s29 = sld [smem:[#allocation54_spill]]  ;;  %s837_s23 = sshll.u32 %s7452_s22, 4  ;;  %s838_s23 = int_to_ptr.vmem [resolvable:$true] %s837_s23 }
  0x4f   : > { %8734 = sst [smem:[#allocation75_spill]] %s7416_s16  ;;  %s7676_s26 = sadd.s32 4294967295, %s7420_s18  }
  0x50   : > { %p5943_p0 = scmp.ge.s32.totalorder %s7420_s18, 1  ;;  %p8682_p1 = scmp.eq.s32.totalorder %s7676_s26, 0 }
  0x51   : > { %p808_p2 = scmp.lt.s32.totalorder %s7420_s18, 3  ;;  %s7453_s1 = smov [#allocation22]  }
  0x52   : > { %s867_s2 = sshll.u32 %s7453_s1, 4  ;;  %s7454_s10 = smov [#allocation25]   ;;  %s7694_s2 = int_to_ptr.vmem [resolvable:$true] %s867_s2 }
  0x53   : > { %p7682_p4 = pnand %p5943_p0, %p808_p2  ;;  %s895_s11 = sshll.u32 %s7454_s10, 4  ;;  %s7696_s11 = int_to_ptr.vmem [resolvable:$true] %s895_s11 }
  0x54   : > { %s6771_s14 = scalar_lea.vmem %s838_s23, 16  ;;  %s6778_s1 = scalar_lea.vmem %s838_s23, 32 }
  0x55   : > { %s8735_s28 = scalar_select %p7682_p4, 1, 0 }
  0x56   : > { %p6491_p5 = pneg %p7682_p4  ;;  %p6772_p8 = scmp.ne.s32.totalorder %s838_s23, %s6771_s14 }
  0x57   : > { %p6779_p11 = scmp.lt.s32.totalorder %s838_s23, %s838_s23  ;;  %p6780_p12 = scmp.lt.s32.totalorder %s6778_s1, %s6771_s14 }
  0x58   : > { %p7690_p6 = pnand %p6491_p5, %p8682_p1 }
  0x59   : > { %p6781_p13 = por %p6780_p12, %p6779_p11 }
  0x5a   : > { %s8736_s7 = scalar_select %p7690_p6, 1, 0 }
  0x5b   : > { %p7700_p7 = pneg %p7690_p6 }
  0x5d   : > { %s8737_s22 = scalar_select %p7700_p7, 1, 0 }
  0x5e   : > { %p6774_p9 = pnand %p6772_p8, %p7700_p7 }
  0x60   : > { %p6775_p10 = pneg %p6774_p9 }
  0x62   : > { %p6782_p0 = pnand %p6781_p13, %p6775_p10 }
  0x64   : > { %6785 = shalt.err (!%p6782_p0)
}
  0x65   : > { %s8738_s13 = sld [smem:[#allocation51_spill]]  ;;  %s6797_s10 = scalar_lea.vmem %s7694_s2, 256 }
  0x66   : > { %p6798_p2 = scmp.ne.s32.totalorder %s7694_s2, %s6797_s10  ;;  %p6805_p9 = scmp.lt.s32.totalorder %s7694_s2, %s7694_s2 }
  0x67   : > { %p6806_p3 = scmp.lt.s32.totalorder %s6797_s10, %s6797_s10 }
  0x68   : > { %p6800_p5 = pnand %p6798_p2, %p7700_p7 }
  0x69   : > { %p6807_p1 = por %p6806_p3, %p6805_p9 }
  0x6a   : > { %p6801_p8 = pneg %p6800_p5 }
  0x6b   : > { %6497 = dma.hbm_to_vmem [thread:$0]  (!%p7690_p6), %s8738_s13, 16, %s838_s23, [#allocation8]  }
  0x6c   : > { %p6808_p11 = pnand %p6807_p1, %p6801_p8 }
  0x6e   : > { %6811 = shalt.err (!%p6808_p11)
}
  0x6f   : > { %s8683_s14 = smov 128   ;;  %s8739_s5 = sld [smem:[#allocation65_spill]] }
  0x70   : > { %s8685_s23 = smov 8   ;;  %s6823_s1 = scalar_lea.vmem %s7696_s11, 64 }
  0x71   : > { %p6824_p10 = scmp.ne.s32.totalorder %s7696_s11, %s6823_s1  ;;  %p6831_p12 = scmp.lt.s32.totalorder %s7696_s11, %s7696_s11 }
  0x72   : > { %p6832_p13 = scmp.lt.s32.totalorder %s6823_s1, %s6823_s1 }
  0x73   : > { %p6826_p3 = pnand %p6824_p10, %p7700_p7 }
  0x74   : > { %p6833_p0 = por %p6832_p13, %p6831_p12 }
  0x75   : > { %6503 = dma.hbm_to_vmem [thread:$0]  (!%p7690_p6), %s8739_s5, 256, %s7694_s2, [#allocation23], %s8683_s14, %s8683_s14, %s8685_s23  }
  0x76   : > { %p6827_p1 = pneg %p6826_p3 }
  0x78   : > { %p6834_p2 = pnand %p6833_p0, %p6827_p1 }
  0x7a   : > { %6837 = shalt.err (!%p6834_p2)
}
  0x7b   : > { %s8740_s21 = sld [smem:[#allocation67_spill]]  ;;  %s7457_s10 = smov [#allocation28]  }
  0x7c   : > { %s916_s13 = sshll.u32 %s7457_s10, 4  ;;  %s917_s13 = int_to_ptr.vmem [resolvable:$true] %s916_s13 }
  0x7d   : > { %s6849_s2 = scalar_lea.vmem %s917_s13, 32768  ;;  %p6857_p11 = scmp.lt.s32.totalorder %s917_s13, %s917_s13 }
  0x7e   : > { %p6850_p5 = scmp.ne.s32.totalorder %s917_s13, %s6849_s2  ;;  %p6858_p10 = scmp.lt.s32.totalorder %s6849_s2, %s6849_s2 }
  0x80   : > { %p6852_p8 = pnand %p6850_p5, %p7700_p7  ;;  %p6859_p3 = por %p6858_p10, %p6857_p11 }
  0x81   : > { %6509 = dma.hbm_to_vmem [thread:$0]  (!%p7690_p6), %s8740_s21, 64, %s7696_s11, [#allocation26]  }
  0x82   : > { %p6853_p9 = pneg %p6852_p8 }
  0x84   : > { %p6860_p12 = pnand %p6859_p3, %p6853_p9 }
  0x86   : > { %6863 = shalt.err (!%p6860_p12)
}
  0x87   : > { %s8687_s1 = smov 512   ;;  %s8741_s25 = sld [smem:[#allocation69_spill]] }
  0x88   : > { %s8688_s14 = smov 32   ;;  %s7460_s11 = smov [#allocation31]  }
  0x89   : > { %s941_s10 = sshll.u32 %s7460_s11, 4  ;;  %s942_s10 = int_to_ptr.vmem [resolvable:$true] %s941_s10 }
  0x8a   : > { %s6875_s23 = scalar_lea.vmem %s942_s10, 64  ;;  %p6883_p2 = scmp.lt.s32.totalorder %s942_s10, %s942_s10 }
  0x8b   : > { %p6876_p1 = scmp.ne.s32.totalorder %s942_s10, %s6875_s23  ;;  %p6884_p5 = scmp.lt.s32.totalorder %s6875_s23, %s6875_s23 }
  0x8d   : > { %6515 = dma.hbm_to_vmem [thread:$0]  (!%p7690_p6), %s8741_s25, 32768, %s917_s13, [#allocation29], %s8687_s1, %s8687_s1, %s8688_s14  }
  0x8e   : > { %p6878_p13 = pnand %p6876_p1, %p7700_p7  ;;  %p6885_p8 = por %p6884_p5, %p6883_p2 }
  0x90   : > { %p6879_p0 = pneg %p6878_p13 }
  0x92   : > { %p6886_p9 = pnand %p6885_p8, %p6879_p0 }
  0x94   : > { %6889 = shalt.err (!%p6886_p9)
}
  0x95   : > { %s8742_s8 = sld [smem:[#allocation71_spill]]  ;;  %s7746_s13 = sadd.s32 1, %s7420_s18  }
  0x96   : > { %8743 = sst [smem:[#allocation76_spill]] %s7746_s13  ;;  %s227_s23 = ssub.s32 %s7420_s18, %s7746_s13 }
  0x97   : > { %s230_s2 = sadd.s32 1, %s7416_s16  ;;  %p228_p11 = scmp.eq.s32.totalorder %s227_s23, 0 }
  0x98   : > { %p237_p10 = scmp.ne.s32.totalorder %s7416_s16, %s7412_s0  ;;  %p238_p3 = scmp.eq.s32.totalorder %s7420_s18, 0 }
  0x99   : > { %p243_p12 = scmp.ne.s32.totalorder %s7412_s0, %s7408_s15  ;;  %p8745_p13 = scmp.eq.s32.totalorder %s7676_s26, 0 }
  0x9a   : > { %s7757_s11 = scalar_select %p228_p11, %s7416_s16, %s230_s2  }
  0x9b   : > { %6521 = dma.hbm_to_vmem [thread:$0]  (!%p7690_p6), %s8742_s8, 64, %s942_s10, [#allocation32]  }
  0x9c   : > { %8744 = sst [smem:[#allocation77_spill]] %s7757_s11  ;;  %p239_p1 = por %p238_p3, %p237_p10 }
  0x9d   : > { %p7761_p0 = por %p8745_p13, %p243_p12  ;;  %p6561_p2 = scmp.lt.s32.totalorder %s7420_s18, 2 }
  0x9e   : > { %s7767_s10 = sand.u32 1, %s7420_s18   ;;  %s7770_s14 = sand.u32 1, %s7416_s16  }
  0x9f   : > { %s8746_s1 = scalar_select %p7761_p0, 1, 0 }
  0xa0   : > { %s7773_s23 = sshll.u32 %s7420_s18, 4  ;;  %s976_s2 = scalar_lea.vmem [#allocation10], %s7770_s14 }
  0xa1   : > { %s7777_s15 = scalar_lea.hbm %s8733_s29, %s7773_s23  ;;  %s983_s5 = sshll.u32 %s976_s2, 4  ;;  %s7780_s5 = int_to_ptr.vmem [resolvable:$true] %s983_s5 }
  0xa2   : > { %p7782_p5 = pnand %p6561_p2, %p239_p1  ;;  %s7788_s21 = scalar_lea.hbm %s8732_s19, %s7773_s23 }
  0xa3   : > { %s6890_s11 = scalar_lea.hbm %s7777_s15, 16  ;;  %s6895_s2 = scalar_lea.hbm %s8733_s29, 32 }
  0xa4   : > { %s8747_s8 = scalar_select %p7782_p5, 1, 0 }
  0xa5   : > { %p6891_p8 = scmp.ne.s32.totalorder %s7777_s15, %s6890_s11  ;;  %p7795_p9 = pneg %p7782_p5 }
  0xa6   : > { %p6896_p3 = scmp.lt.s32.totalorder %s7777_s15, %s8733_s29  ;;  %p6897_p12 = scmp.lt.s32.totalorder %s6895_s2, %s6890_s11 }
  0xa7   : > { %s8748_s16 = scalar_select %p7795_p9, 1, 0 }
  0xa8   : > { %p6893_p11 = pnand %p7795_p9, %p6891_p8  ;;  %p6898_p1 = por %p6897_p12, %p6896_p3 }
  0xaa   : > { %p6894_p10 = pneg %p6893_p11 }
  0xac   : > { %p6899_p13 = pnand %p6898_p1, %p6894_p10 }
  0xae   : > { %6902 = shalt.err (!%p6899_p13)
}
  0xaf   : > { %s6903_s25 = scalar_lea.vmem %s7780_s5, 16  ;;  %s7461_s13 = smov [#allocation10]  }
  0xb0   : > { %p6904_p2 = scmp.ne.s32.totalorder %s7780_s5, %s6903_s25  ;;  %s6908_s12 = sshll.u32 %s7461_s13, 4  ;;  %s6909_s12 = int_to_ptr.vmem [resolvable:$false] %s6908_s12 }
  0xb1   : > { %s6910_s24 = scalar_lea.vmem %s6909_s12, 32  ;;  %p6911_p8 = scmp.lt.s32.totalorder %s7780_s5, %s6909_s12 }
  0xb2   : > { %p6906_p0 = pnand %p6904_p2, %p7795_p9  ;;  %p6912_p11 = scmp.lt.s32.totalorder %s6910_s24, %s6903_s25 }
  0xb4   : > { %p6907_p4 = pneg %p6906_p0  ;;  %p6913_p6 = por %p6912_p11, %p6911_p8 }
  0xb6   : > { %p6914_p7 = pnand %p6913_p6, %p6907_p4 }
  0xb8   : > { %6917 = shalt.err (!%p6914_p7)
}
  0xb9   : > { %s8749_s11 = scalar_lea.sflag [#allocation11], %s7767_s10  ;;  %s1024_s12 = scalar_lea.vmem [#allocation13], %s7770_s14 }
  0xba   : > { %6528 = dma.hbm_to_vmem [thread:$0]  (!%p7782_p5), %s7777_s15, 16, %s7780_s5, %s8749_s11  }
  0xbb   : > { %s1031_s25 = sshll.u32 %s1024_s12, 4  ;;  %s8699_s24 = scalar_lea.sflag [#allocation14], %s7767_s10  ;;  %s1032_s25 = int_to_ptr.vmem [resolvable:$true] %s1031_s25 }
  0xbc   : > { %s6918_s13 = scalar_lea.hbm %s7788_s21, 16  ;;  %s6923_s2 = scalar_lea.hbm %s8732_s19, 32 }
  0xbd   : > { %p6919_p4 = scmp.ne.s32.totalorder %s7788_s21, %s6918_s13  ;;  %p6924_p0 = scmp.lt.s32.totalorder %s7788_s21, %s8732_s19 }
  0xbe   : > { %p6925_p10 = scmp.lt.s32.totalorder %s6923_s2, %s6918_s13 }
  0xbf   : > { %p6921_p6 = pnand %p6919_p4, %p7795_p9 }
  0xc0   : > { %p6926_p3 = por %p6925_p10, %p6924_p0 }
  0xc1   : > { %p6922_p7 = pneg %p6921_p6 }
  0xc3   : > { %p6927_p12 = pnand %p6926_p3, %p6922_p7 }
  0xc5   : > { %6930 = shalt.err (!%p6927_p12)
}
  0xc6   : > { %s6931_s29 = scalar_lea.vmem %s1032_s25, 16  ;;  %s7462_s5 = smov [#allocation13]  }
  0xc7   : > { %p6932_p1 = scmp.ne.s32.totalorder %s1032_s25, %s6931_s29  ;;  %s6936_s15 = sshll.u32 %s7462_s5, 4  ;;  %s6937_s15 = int_to_ptr.vmem [resolvable:$false] %s6936_s15 }
  0xc8   : > { %s6938_s11 = scalar_lea.vmem %s6937_s15, 32  ;;  %p6939_p8 = scmp.lt.s32.totalorder %s1032_s25, %s6937_s15 }
  0xc9   : > { %p6934_p13 = pnand %p6932_p1, %p7795_p9  ;;  %p6940_p11 = scmp.lt.s32.totalorder %s6938_s11, %s6931_s29 }
  0xcb   : > { %p6935_p2 = pneg %p6934_p13  ;;  %p6941_p4 = por %p6940_p11, %p6939_p8 }
  0xcd   : > { %p6942_p6 = pnand %p6941_p4, %p6935_p2 }
  0xcf   : > { %6945 = shalt.err (!%p6942_p6)
}
  0xd0   : > { %6534 = dma.hbm_to_vmem [thread:$0]  (!%p7782_p5), %s7788_s21, 16, %s1032_s25, %s8699_s24  }
  0xd1   : > { %s7833_s12 = scalar_lea.hbm %s7563_s30, %s7773_s23  ;;  %s1062_s29 = scalar_lea.vmem [#allocation16], %s7770_s14 }
  0xd2   : > { %s1069_s13 = sshll.u32 %s1062_s29, 4  ;;  %s8706_s2 = scalar_lea.sflag [#allocation17], %s7767_s10  ;;  %s1070_s13 = int_to_ptr.vmem [resolvable:$true] %s1069_s13 }
  0xd3   : > { %s6946_s5 = scalar_lea.hbm %s7833_s12, 16  ;;  %s6951_s15 = scalar_lea.hbm %s7563_s30, 32 }
  0xd4   : > { %p6947_p7 = scmp.ne.s32.totalorder %s7833_s12, %s6946_s5  ;;  %p6952_p3 = scmp.lt.s32.totalorder %s7833_s12, %s7563_s30 }
  0xd5   : > { %p6953_p12 = scmp.lt.s32.totalorder %s6951_s15, %s6946_s5 }
  0xd6   : > { %p6949_p0 = pnand %p6947_p7, %p7795_p9 }
  0xd7   : > { %p6954_p1 = por %p6953_p12, %p6952_p3 }
  0xd8   : > { %p6950_p10 = pneg %p6949_p0 }
  0xda   : > { %p6955_p13 = pnand %p6954_p1, %p6950_p10 }
  0xdc   : > { %6958 = shalt.err (!%p6955_p13)
}
  0xdd   : > { %s6959_s21 = scalar_lea.vmem %s1070_s13, 16  ;;  %s7463_s25 = smov [#allocation16]  }
  0xde   : > { %p6960_p2 = scmp.ne.s32.totalorder %s1070_s13, %s6959_s21  ;;  %s6964_s11 = sshll.u32 %s7463_s25, 4  ;;  %s6965_s11 = int_to_ptr.vmem [resolvable:$false] %s6964_s11 }
  0xdf   : > { %s6966_s29 = scalar_lea.vmem %s6965_s11, 32  ;;  %p6967_p4 = scmp.lt.s32.totalorder %s1070_s13, %s6965_s11 }
  0xe0   : > { %p6962_p8 = pnand %p6960_p2, %p7795_p9  ;;  %p6968_p6 = scmp.lt.s32.totalorder %s6966_s29, %s6959_s21 }
  0xe2   : > { %p6963_p11 = pneg %p6962_p8  ;;  %p6969_p7 = por %p6968_p6, %p6967_p4 }
  0xe4   : > { %p6970_p0 = pnand %p6969_p7, %p6963_p11 }
  0xe6   : > { %6973 = shalt.err (!%p6970_p0)
}
  0xe7   : > { %6540 = dma.hbm_to_vmem [thread:$0]  (!%p7782_p5), %s7833_s12, 16, %s1070_s13, %s8706_s2  }
  0xe8   : > { %s7853_s5 = scalar_lea.hbm %s7578_s20, %s7773_s23  ;;  %s1104_s15 = scalar_lea.vmem [#allocation19], %s7770_s14 }
  0xe9   : > { %s1111_s21 = sshll.u32 %s1104_s15, 4  ;;  %s7464_s25 = smov [#allocation4]   ;;  %s1112_s21 = int_to_ptr.vmem [resolvable:$true] %s1111_s21 }
  0xea   : > { %s823_s11 = sshll.u32 %s7464_s25, 4  ;;  %s8705_s29 = scalar_lea.sflag [#allocation20], %s7767_s10  ;;  %s824_s11 = int_to_ptr.vmem [resolvable:$true] %s823_s11 }
  0xeb   : > { %s6974_s24 = scalar_lea.hbm %s7853_s5, 16  ;;  %s6979_s19 = scalar_lea.hbm %s7578_s20, 32 }
  0xec   : > { %p6975_p10 = scmp.ne.s32.totalorder %s7853_s5, %s6974_s24  ;;  %p6980_p1 = scmp.lt.s32.totalorder %s7853_s5, %s7578_s20 }
  0xed   : > { %p6981_p13 = scmp.lt.s32.totalorder %s6979_s19, %s6974_s24 }
  0xee   : > { %p6977_p3 = pnand %p6975_p10, %p7795_p9 }
  0xef   : > { %p6982_p2 = por %p6981_p13, %p6980_p1 }
  0xf0   : > { %p6978_p12 = pneg %p6977_p3 }
  0xf2   : > { %p6983_p8 = pnand %p6982_p2, %p6978_p12 }
  0xf4   : > { %6986 = shalt.err (!%p6983_p8)
}
  0xf5   : > { %s6987_s12 = scalar_lea.vmem %s1112_s21, 16  ;;  %s7465_s13 = smov [#allocation19]  }
  0xf6   : > { %p6988_p11 = scmp.ne.s32.totalorder %s1112_s21, %s6987_s12  ;;  %s6992_s15 = sshll.u32 %s7465_s13, 4  ;;  %s6993_s15 = int_to_ptr.vmem [resolvable:$false] %s6992_s15 }
  0xf7   : > { %s6994_s25 = scalar_lea.vmem %s6993_s15, 32  ;;  %p6995_p7 = scmp.lt.s32.totalorder %s1112_s21, %s6993_s15 }
  0xf8   : > { %p6990_p4 = pnand %p6988_p11, %p7795_p9  ;;  %p6996_p0 = scmp.lt.s32.totalorder %s6994_s25, %s6987_s12 }
  0xfa   : > { %p6991_p6 = pneg %p6990_p4  ;;  %p6997_p10 = por %p6996_p0, %p6995_p7 }
  0xfc   : > { %p6998_p3 = pnand %p6997_p10, %p6991_p6 }
  0xfe   : > { %7001 = shalt.err (!%p6998_p3)
}
  0xff   : > { %6546 = dma.hbm_to_vmem [thread:$0]  (!%p7782_p5), %s7853_s5, 16, %s1112_s21, %s8705_s29  }
 0x100   : > { %s7013_s19 = scalar_lea.vmem %s824_s11, 256  ;;  %p8750_p1 = scmp.ne.s32.totalorder %s8737_s22, 0 }
 0x101   : > { %p7014_p12 = scmp.ne.s32.totalorder %s824_s11, %s7013_s19  ;;  %p7021_p8 = scmp.lt.s32.totalorder %s824_s11, %s824_s11 }
 0x102   : > { %p7022_p11 = scmp.lt.s32.totalorder %s7013_s19, %s7013_s19 }
 0x103   : > { %p7016_p13 = pnand %p7014_p12, %p8750_p1 }
 0x104   : > { %p7023_p4 = por %p7022_p11, %p7021_p8 }
 0x105   : > { %p7017_p2 = pneg %p7016_p13 }
 0x107   : > { %p7024_p9 = pnand %p7023_p4, %p7017_p2 }
 0x109   : > { %7027 = shalt.err (!%p7024_p9)
}
 0x10a   : > { %p8751_p6 = scmp.ne.s32.totalorder %s8736_s7, 0  ;;  %s8752_s24 = smov 8  }
 0x10b   : > { %s8753_s12 = smov 128   ;;  %s7466_s5 = smov [#allocation9]  }
 0x10c   : > { %6494 = dma.hbm_to_vmem [thread:$0]  (!%p8751_p6), %s7508_s9, 256, %s824_s11, [#allocation5], %s8753_s12, %s8753_s12, %s8752_s24  }
 0x10d   : > { %s848_s21 = sshll.u32 %s7466_s5, 4  ;;  %s7467_s13 = smov [#allocation24]   ;;  %s849_s21 = int_to_ptr.vmem [resolvable:$true] %s848_s21 }
 0x10e   : > { %s881_s15 = sshll.u32 %s7467_s13, 4  ;;  %s7039_s25 = scalar_lea.vmem %s849_s21, 16  ;;  %s882_s15 = int_to_ptr.vmem [resolvable:$true] %s881_s15 }
 0x10f   : > { %p7040_p7 = scmp.ne.s32.totalorder %s849_s21, %s7039_s25  ;;  %s7046_s19 = scalar_lea.vmem %s849_s21, 32 }
 0x110   : > { %p7047_p9 = scmp.lt.s32.totalorder %s849_s21, %s849_s21  ;;  %p7048_p3 = scmp.lt.s32.totalorder %s7046_s19, %s7039_s25 }
 0x111   : > { %p7042_p0 = pnand %p7040_p7, %p8750_p1 }
 0x112   : > { %p7049_p12 = por %p7048_p3, %p7047_p9 }
 0x113   : > { %p7043_p10 = pneg %p7042_p0 }
 0x115   : > { %p7050_p13 = pnand %p7049_p12, %p7043_p10 }
 0x117   : > { %7053 = shalt.err (!%p7050_p13)
}
 0x118   : > { %6500 = dma.hbm_to_vmem [thread:$0]  (!%p8751_p6), %s7518_s17, 16, %s849_s21, [#allocation8]  }
 0x119   : > { %s7065_s11 = scalar_lea.vmem %s882_s15, 16  ;;  %s7072_s5 = scalar_lea.vmem %s882_s15, 32 }
 0x11a   : > { %p7066_p2 = scmp.ne.s32.totalorder %s882_s15, %s7065_s11  ;;  %p7073_p4 = scmp.lt.s32.totalorder %s882_s15, %s882_s15 }
 0x11b   : > { %p7074_p7 = scmp.lt.s32.totalorder %s7072_s5, %s7065_s11 }
 0x11c   : > { %p7068_p8 = pnand %p7066_p2, %p8750_p1 }
 0x11d   : > { %p7075_p0 = por %p7074_p7, %p7073_p4 }
 0x11e   : > { %p7069_p11 = pneg %p7068_p8 }
 0x120   : > { %p7076_p5 = pnand %p7075_p0, %p7069_p11 }
 0x122   : > { %7079 = shalt.err (!%p7076_p5)
}
 0x123   : > { %6506 = dma.hbm_to_vmem [thread:$0]  (!%p8751_p6), %s7603_s6, 16, %s882_s15, [#allocation23]  }
 0x124   : > { %s7468_s13 = smov [#allocation27]   ;;  %s7469_s21 = smov [#allocation30]  }
 0x125   : > { %s906_s25 = sshll.u32 %s7468_s13, 4  ;;  %s930_s19 = sshll.u32 %s7469_s21, 4  ;;  %s907_s25 = int_to_ptr.vmem [resolvable:$true] %s906_s25  ;;  %s931_s19 = int_to_ptr.vmem [resolvable:$true] %s930_s19 }
 0x126   : > { %s7091_s29 = scalar_lea.vmem %s907_s25, 64  ;;  %p7099_p12 = scmp.lt.s32.totalorder %s907_s25, %s907_s25 }
 0x127   : > { %p7092_p10 = scmp.ne.s32.totalorder %s907_s25, %s7091_s29  ;;  %p7100_p13 = scmp.lt.s32.totalorder %s7091_s29, %s7091_s29 }
 0x129   : > { %p7094_p9 = pnand %p7092_p10, %p8750_p1  ;;  %p7101_p2 = por %p7100_p13, %p7099_p12 }
 0x12b   : > { %p7095_p3 = pneg %p7094_p9 }
 0x12d   : > { %p7102_p8 = pnand %p7101_p2, %p7095_p3 }
 0x12f   : > { %7105 = shalt.err (!%p7102_p8)
}
 0x130   : > { %s8754_s3 = sld [smem:[#allocation68_spill]]  ;;  %s7117_s15 = scalar_lea.vmem %s931_s19, 64 }
 0x131   : > { %p7118_p5 = scmp.ne.s32.totalorder %s931_s19, %s7117_s15  ;;  %p7125_p7 = scmp.lt.s32.totalorder %s931_s19, %s931_s19 }
 0x132   : > { %p7126_p0 = scmp.lt.s32.totalorder %s7117_s15, %s7117_s15 }
 0x133   : > { %p7120_p11 = pnand %p7118_p5, %p8750_p1 }
 0x134   : > { %p7127_p10 = por %p7126_p0, %p7125_p7 }
 0x135   : > { %p7121_p4 = pneg %p7120_p11 }
 0x136   : > { %6512 = dma.hbm_to_vmem [thread:$0]  (!%p8751_p6), %s8754_s3, 64, %s907_s25, [#allocation26]  }
 0x137   : > { %p7128_p9 = pnand %p7127_p10, %p7121_p4 }
 0x139   : > { %7131 = shalt.err (!%p7128_p9)
}
 0x13a   : > { %s8755_s4 = sld [smem:[#allocation70_spill]]  ;;  %s7470_s11 = smov [#allocation33]  }
 0x13b   : > { %s8756_s29 = sld [smem:[#allocation57_spill]]  ;;  %s951_s5 = sshll.u32 %s7470_s11, 4  ;;  %s952_s5 = int_to_ptr.vmem [resolvable:$true] %s951_s5 }
 0x13c   : > { %s7143_s25 = scalar_lea.vmem %s952_s5, 32768  ;;  %p7151_p2 = scmp.lt.s32.totalorder %s952_s5, %s952_s5 }
 0x13d   : > { %p7144_p3 = scmp.ne.s32.totalorder %s952_s5, %s7143_s25  ;;  %p7152_p8 = scmp.lt.s32.totalorder %s7143_s25, %s7143_s25 }
 0x13f   : > { %p7146_p12 = pnand %p7144_p3, %p8750_p1  ;;  %p7153_p5 = por %p7152_p8, %p7151_p2 }
 0x140   : > { %6518 = dma.hbm_to_vmem [thread:$0]  (!%p8751_p6), %s8755_s4, 64, %s931_s19, [#allocation29]  }
 0x141   : > { %s7901_s13 = scalar_lea.hbm %s8756_s29, %s7773_s23  ;;  %p7147_p13 = pneg %p7146_p12 }
 0x143   : > { %p7154_p11 = pnand %p7153_p5, %p7147_p13 }
 0x145   : > { %7157 = shalt.err (!%p7154_p11)
}
 0x146   : > { %s8757_s21 = smov 32   ;;  %s8758_s15 = smov 512  }
 0x147   : > { %6524 = dma.hbm_to_vmem [thread:$0]  (!%p8751_p6), %s7638_s27, 32768, %s952_s5, [#allocation32], %s8758_s15, %s8758_s15, %s8757_s21  }
 0x148   : > { %s1007_s22 = scalar_lea.vmem [#allocation12], %s7770_s14  ;;  %s5959_s11 = sshll.u32 %s7770_s14, 5 }
 0x149   : > { %s1014_s19 = sshll.u32 %s1007_s22, 4  ;;  %s7158_s25 = scalar_lea.hbm %s7901_s13, 16  ;;  %s1015_s19 = int_to_ptr.vmem [resolvable:$true] %s1014_s19 }
 0x14a   : > { %p7159_p1 = scmp.ne.s32.totalorder %s7901_s13, %s7158_s25  ;;  %p8759_p4 = scmp.ne.s32.totalorder %s8748_s16, 0 }
 0x14b   : > { %s7163_s7 = scalar_lea.hbm %s8756_s29, 32  ;;  %p7164_p10 = scmp.lt.s32.totalorder %s7901_s13, %s8756_s29 }
 0x14c   : > { %p7161_p7 = pnand %p7159_p1, %p8759_p4  ;;  %p7165_p9 = scmp.lt.s32.totalorder %s7163_s7, %s7158_s25 }
 0x14e   : > { %p7162_p0 = pneg %p7161_p7  ;;  %p7166_p3 = por %p7165_p9, %p7164_p10 }
 0x150   : > { %p7167_p12 = pnand %p7166_p3, %p7162_p0 }
 0x152   : > { %7170 = shalt.err (!%p7167_p12)
}
 0x153   : > { %s7171_s2 = scalar_lea.vmem %s1015_s19, 16  ;;  %s7471_s5 = smov [#allocation12]  }
 0x154   : > { %p7172_p13 = scmp.ne.s32.totalorder %s1015_s19, %s7171_s2  ;;  %s7176_s21 = sshll.u32 %s7471_s5, 4  ;;  %s7177_s21 = int_to_ptr.vmem [resolvable:$false] %s7176_s21 }
 0x155   : > { %s7178_s15 = scalar_lea.vmem %s7177_s21, 32  ;;  %p7179_p8 = scmp.lt.s32.totalorder %s1015_s19, %s7177_s21 }
 0x156   : > { %p7174_p6 = pnand %p7172_p13, %p8759_p4  ;;  %p7180_p5 = scmp.lt.s32.totalorder %s7178_s15, %s7171_s2 }
 0x158   : > { %p7175_p2 = pneg %p7174_p6  ;;  %p7181_p11 = por %p7180_p5, %p7179_p8 }
 0x15a   : > { %p7182_p1 = pnand %p7181_p11, %p7175_p2 }
 0x15c   : > { %7185 = shalt.err (!%p7182_p1)
}
 0x15d   : > { %p8760_p7 = scmp.ne.s32.totalorder %s8747_s8, 0  ;;  %s8761_s22 = scalar_lea.sflag [#allocation11], %s7767_s10 }
 0x15e   : > { %s8762_s25 = sld [smem:[#allocation59_spill]]  ;;  %s6090_s7 = sshll.u32 %s7420_s18, 9 }
 0x15f   : > { %6531 = dma.hbm_to_vmem [thread:$0]  (!%p8760_p7), %s7901_s13, 16, %s1015_s19, %s8761_s22  }
 0x160   : > { %s1042_s5 = scalar_lea.vmem [#allocation15], %s5959_s11 }
 0x161   : > { %s1049_s3 = sshll.u32 %s1042_s5, 4  ;;  %s1050_s3 = int_to_ptr.vmem [resolvable:$true] %s1049_s3 }
 0x164   : > { %s7929_s4 = scalar_lea.hbm %s8762_s25, %s6090_s7  ;;  %s7191_s21 = scalar_lea.hbm %s8762_s25, 1024 }
 0x165   : > { %s7186_s2 = scalar_lea.hbm %s7929_s4, 512  ;;  %p7192_p3 = scmp.lt.s32.totalorder %s7929_s4, %s8762_s25 }
 0x166   : > { %p7187_p0 = scmp.ne.s32.totalorder %s7929_s4, %s7186_s2  ;;  %p7193_p12 = scmp.lt.s32.totalorder %s7191_s21, %s7186_s2 }
 0x168   : > { %p7189_p10 = pnand %p7187_p0, %p8759_p4  ;;  %p7194_p13 = por %p7193_p12, %p7192_p3 }
 0x16a   : > { %p7190_p9 = pneg %p7189_p10 }
 0x16c   : > { %p7195_p6 = pnand %p7194_p13, %p7190_p9 }
 0x16e   : > { %7198 = shalt.err (!%p7195_p6)
}
 0x16f   : > { %s7199_s18 = scalar_lea.vmem %s1050_s3, 512  ;;  %s7472_s13 = smov [#allocation15]  }
 0x170   : > { %p7200_p2 = scmp.ne.s32.totalorder %s1050_s3, %s7199_s18  ;;  %s7204_s19 = sshll.u32 %s7472_s13, 4  ;;  %s7205_s19 = int_to_ptr.vmem [resolvable:$false] %s7204_s19 }
 0x171   : > { %s7206_s11 = scalar_lea.vmem %s7205_s19, 1024  ;;  %p7207_p11 = scmp.lt.s32.totalorder %s1050_s3, %s7205_s19 }
 0x172   : > { %p7202_p8 = pnand %p7200_p2, %p8759_p4  ;;  %p7208_p1 = scmp.lt.s32.totalorder %s7206_s11, %s7199_s18 }
 0x174   : > { %p7203_p5 = pneg %p7202_p8  ;;  %p7209_p0 = por %p7208_p1, %p7207_p11 }
 0x176   : > { %p7210_p10 = pnand %p7209_p0, %p7203_p5 }
 0x178   : > { %7213 = shalt.err (!%p7210_p10)
}
 0x179   : > { %s8763_s15 = scalar_lea.sflag [#allocation14], %s7767_s10  ;;  %s8764_s22 = sld [smem:[#allocation61_spill]] }
 0x17a   : > { %s8765_s7 = sld [smem:[#allocation62_spill]]  ;;  %s1087_s2 = scalar_lea.vmem [#allocation18], %s7770_s14 }
 0x17b   : > { %6537 = dma.hbm_to_vmem [thread:$0]  (!%p8760_p7), %s7929_s4, 512, %s1050_s3, %s8763_s15, %s8753_s12, %s8753_s12, %s8752_s24  }
 0x17c   : > { %s1094_s21 = sshll.u32 %s1087_s2, 4  ;;  %s1095_s21 = int_to_ptr.vmem [resolvable:$true] %s1094_s21 }
 0x17f   : > { %s7950_s5 = scalar_lea.hbm %s8764_s22, %s7773_s23  ;;  %s7219_s19 = scalar_lea.hbm %s8764_s22, 32 }
 0x180   : > { %s7955_s18 = scalar_lea.hbm %s8765_s7, %s7773_s23  ;;  %s7214_s13 = scalar_lea.hbm %s7950_s5, 16 }
 0x181   : > { %p7215_p9 = scmp.ne.s32.totalorder %s7950_s5, %s7214_s13  ;;  %p7220_p13 = scmp.lt.s32.totalorder %s7950_s5, %s8764_s22 }
 0x182   : > { %p7221_p6 = scmp.lt.s32.totalorder %s7219_s19, %s7214_s13 }
 0x183   : > { %p7217_p3 = pnand %p7215_p9, %p8759_p4 }
 0x184   : > { %p7222_p2 = por %p7221_p6, %p7220_p13 }
 0x185   : > { %p7218_p12 = pneg %p7217_p3 }
 0x187   : > { %p7223_p8 = pnand %p7222_p2, %p7218_p12 }
 0x189   : > { %7226 = shalt.err (!%p7223_p8)
}
 0x18a   : > { %s7227_s3 = scalar_lea.vmem %s1095_s21, 16  ;;  %s7473_s4 = smov [#allocation18]  }
 0x18b   : > { %p7228_p5 = scmp.ne.s32.totalorder %s1095_s21, %s7227_s3  ;;  %s7232_s23 = sshll.u32 %s7473_s4, 4  ;;  %s7233_s23 = int_to_ptr.vmem [resolvable:$false] %s7232_s23 }
 0x18c   : > { %s7234_s24 = scalar_lea.vmem %s7233_s23, 32  ;;  %p7235_p0 = scmp.lt.s32.totalorder %s1095_s21, %s7233_s23 }
 0x18d   : > { %p7230_p11 = pnand %p7228_p5, %p8759_p4  ;;  %p7236_p10 = scmp.lt.s32.totalorder %s7234_s24, %s7227_s3 }
 0x18f   : > { %p7231_p1 = pneg %p7230_p11  ;;  %p7237_p9 = por %p7236_p10, %p7235_p0 }
 0x191   : > { %p7238_p3 = pnand %p7237_p9, %p7231_p1 }
 0x193   : > { %7241 = shalt.err (!%p7238_p3)
}
 0x194   : > { %s8766_s12 = scalar_lea.sflag [#allocation17], %s7767_s10  ;;  %s1121_s11 = scalar_lea.vmem [#allocation21], %s7770_s14 }
 0x195   : > { %6543 = dma.hbm_to_vmem [thread:$0]  (!%p8760_p7), %s7950_s5, 16, %s1095_s21, %s8766_s12  }
 0x196   : > { %s1128_s15 = sshll.u32 %s1121_s11, 4  ;;  %s7242_s2 = scalar_lea.hbm %s7955_s18, 16  ;;  %s1129_s15 = int_to_ptr.vmem [resolvable:$true] %s1128_s15 }
 0x197   : > { %p7243_p12 = scmp.ne.s32.totalorder %s7955_s18, %s7242_s2  ;;  %s7247_s13 = scalar_lea.hbm %s8765_s7, 32 }
 0x198   : > { %p7248_p2 = scmp.lt.s32.totalorder %s7955_s18, %s8765_s7  ;;  %p7249_p8 = scmp.lt.s32.totalorder %s7247_s13, %s7242_s2 }
 0x199   : > { %p7245_p13 = pnand %p7243_p12, %p8759_p4 }
 0x19a   : > { %p7250_p5 = por %p7249_p8, %p7248_p2 }
 0x19b   : > { %p7246_p6 = pneg %p7245_p13 }
 0x19d   : > { %p7251_p11 = pnand %p7250_p5, %p7246_p6 }
 0x19f   : > { %7254 = shalt.err (!%p7251_p11)
}
 0x1a0   : > { %s7255_s19 = scalar_lea.vmem %s1129_s15, 16  ;;  %s7474_s14 = smov [#allocation21]  }
 0x1a1   : > { %p7256_p1 = scmp.ne.s32.totalorder %s1129_s15, %s7255_s19  ;;  %s7260_s5 = sshll.u32 %s7474_s14, 4  ;;  %s7261_s5 = int_to_ptr.vmem [resolvable:$false] %s7260_s5 }
 0x1a2   : > { %s7262_s21 = scalar_lea.vmem %s7261_s5, 32  ;;  %p7263_p9 = scmp.lt.s32.totalorder %s1129_s15, %s7261_s5 }
 0x1a3   : > { %p7258_p0 = pnand %p7256_p1, %p8759_p4  ;;  %p7264_p3 = scmp.lt.s32.totalorder %s7262_s21, %s7255_s19 }
 0x1a5   : > { %p7259_p10 = pneg %p7258_p0  ;;  %p7265_p12 = por %p7264_p3, %p7263_p9 }
 0x1a7   : > { %p7266_p13 = pnand %p7265_p12, %p7259_p10 }
 0x1a9   : > { %7269 = shalt.err (!%p7266_p13)
}
 0x1aa   : > { %s8767_s3 = scalar_lea.sflag [#allocation20], %s7767_s10  ;;  %p8768_p6 = scmp.ne.s32.totalorder %s8735_s28, 0 }
 0x1ab   : > { %6549 = dma.hbm_to_vmem [thread:$0]  (!%p8760_p7), %s7955_s18, 16, %s1129_s15, %s8767_s3  }
 0x1ac   : > { %1137 = sbr.rel (%p8768_p6) target bundleno = 4314 (0x10da), region = 132  ;;  %p8769_p4 = scmp.eq.s32.totalorder (!%p8768_p6), %s7676_s26, 0 }
 0x1b1   : > { %7359 = dma.done.wait (%p8769_p4), [#allocation5], 256   ;;  %p8770_p2 = pmov %p8769_p4 }
 0x1b3   : > { %7361 = vsyncadd (%p8770_p2), [#allocation5], 4294967040  ;;  %p8771_p8 = pmov %p8770_p2 }
 0x1b4   : > { %p8772_p5 = pmov %p8770_p2 }
 0x1b5   : > { %7363 = dma.done.wait (%p8771_p8), [#allocation8], 32  }
 0x1b6   : > { %7365 = vsyncadd (%p8772_p5), [#allocation8], 4294967264  ;;  %s1151_s8 = sand.u32 1, %s7676_s26   ;;  %s7998_s16 = sand.u32 1, %s7412_s0  }
 0x1b7   : > { %s1152_s28 = scalar_lea.sflag [#allocation11], %s1151_s8  ;;  %s1154_s10 = scalar_lea.vmem [#allocation10], %s7998_s16 }
 0x1b8   : > { %p8773_p7 = scmp.ne.s32.totalorder %s8746_s1, 0 }
 0x1ba   : > { %7367 = dma.done.wait (%p8773_p7), %s1152_s28, 32  }
 0x1bb   : > { %7369 = vsyncadd (%p8773_p7), %s1152_s28, 4294967264  ;;  %s1162_s18 = scalar_lea.vmem [#allocation12], %s7998_s16  ;;  %s1168_s4 = scalar_lea.sflag [#allocation14], %s1151_s8 }
 0x1bc   : > { %s1170_s23 = scalar_lea.vmem [#allocation13], %s7998_s16 }
 0x1bd   : > { %7371 = dma.done.wait (%p8773_p7), %s1168_s4, 528  }
 0x1be   : > { %7373 = vsyncadd (%p8773_p7), %s1168_s4, 4294966768  ;;  %s5970_s24 = sshll.u32 %s7998_s16, 5  ;;  %s1185_s11 = scalar_lea.sflag [#allocation17], %s1151_s8 }
 0x1bf   : > { %s8012_s12 = scalar_lea.vmem [#allocation15], %s5970_s24  ;;  %s1187_s15 = scalar_lea.vmem [#allocation16], %s7998_s16 }
 0x1c0   : > { %7375 = dma.done.wait (%p8773_p7), %s1185_s11, 32  }
 0x1c1   : > { %7377 = vsyncadd (%p8773_p7), %s1185_s11, 4294967264  ;;  %s1201_s13 = scalar_lea.sflag [#allocation20], %s1151_s8 }
 0x1c2   : > { %7379 = dma.done.wait (%p8773_p7), %s1201_s13, 32  }
 0x1c3   : > { %7381 = vsyncadd (%p8773_p7), %s1201_s13, 4294967264  ;;  %p8774_p11 = pmov %p8770_p2 }
 0x1c4   : > { %p8775_p1 = pmov %p8770_p2 }
 0x1c5   : > { %7383 = dma.done.wait (%p8774_p11), [#allocation23], 272  }
 0x1c6   : > { %7385 = vsyncadd (%p8775_p1), [#allocation23], 4294967024  ;;  %p8776_p0 = pmov %p8775_p1 }
 0x1c8   : > { %7387 = dma.done.wait (%p8776_p0), [#allocation26], 128   ;;  %p8777_p10 = pmov %p8776_p0 }
 0x1c9   : > { %p8778_p9 = pmov %p8776_p0 }
 0x1ca   : > { %7389 = vsyncadd (%p8777_p10), [#allocation26], 4294967168 }
 0x1cb   : > { %7391 = dma.done.wait (%p8778_p9), [#allocation29], 32832   ;;  %p8779_p3 = pmov %p8776_p0 }
 0x1cc   : > { %p8780_p12 = pmov %p8776_p0 }
 0x1cd   : > { %7393 = vsyncadd (%p8779_p3), [#allocation29], 4294934464 }
 0x1ce   : > { %7395 = dma.done.wait (%p8780_p12), [#allocation32], 32832   ;;  %p8781_p13 = pmov %p8776_p0 }
 0x1cf   : > { %s8782_s1 = sld [smem:[#allocation56_spill]]  ;;  %p1361_p6 = scmp.lt.s32.totalorder %s7676_s26, 1 }
 0x1d0   : > { %7397 = vsyncadd (%p8781_p13), [#allocation32], 4294934464  ;;  %s8783_s5 = sld [smem:[#allocation53_spill]]  ;;  %p8786_p4 = scmp.ne.s32.totalorder %s7676_s26, 0 }
 0x1d1   : > { %s8784_s21 = sld [smem:[#allocation55_spill]] }
 0x1d2   : > { %s8785_s3 = sld [smem:[#allocation60_spill]] }
 0x1d3   : > { %s8044_s8 = scalar_select %p1361_p6, %s7676_s26, 1 }
 0x1d4   : > { %1382 = sbr.rel (%p8786_p4) target bundleno = 678 (0x2a6), region = 212  ;;  %s8787_s19 = sld [smem:[#allocation50_spill]] (!%p8786_p4) }
 0x1d5   : > { %s6091_s28 = sshll.u32 %s8044_s8, 5  ;;  %s1373_s4 = scalar_lea.vmem %s8782_s1, %s8044_s8 }
 0x1d6   : > { %s8050_s24 = scalar_lea.vmem %s8783_s5, %s6091_s28  ;;  %s6093_s13 = sshll.u32 %s8044_s8, 6 }
 0x1d7   : > { %s8053_s11 = scalar_lea.vmem %s8784_s21, %s6091_s28  ;;  %s8788_s2 = sld [smem:[#allocation52_spill]] (!%p8786_p4) }
 0x1d8   : > { %s8057_s14 = scalar_lea.vmem %s8785_s3, %s6093_s13 }
 0x1d9   : > { %v1386_v0 = vld [vmem:[#allocation4 + $0x8] sm:$0xff]  ;;  %v1385_v1 = vld [vmem:[#allocation4] sm:$0xff]  ;;  %vm1394_vm0 = vcmask 130048   ;;  %v1481_v4 = vlaneseq  ;;  %v1477_v5 = vld [vmem:[#allocation9] sm:$0x1]  ;;  %vm1487_vm1 = vcmask 261120  }
 0x1da   : > { %v1383_v2 = vld [vmem:[%s8787_s19] sm:$0xff]  ;;  %6212 = vmatprep.subr.mxu0 %v1386_v0  ;;  %v1384_v3 = vld [vmem:[%s8787_s19 + $0x8] sm:$0xff]  ;;  %v5986_v11 = vld [vmem:[#allocation7] ss:$0 sm:$0xff] }
 0x1db   : > { %6216 = vmatprep.mubr.msk.f32.mxu0 %vm1394_vm0, %v1383_v2  ;;  %6213 = vmatpush3.msra.mxu0 %v1386_v0  ;;  %v1482_v7 = vshrl.u32 %v1481_v4, 7 }
 0x1dc   : > { %6214 = vmatprep.subr.mxu0 %v1385_v1 }
 0x1dd   : > { %6215 = vmatpush3.msra.mxu0 %v1385_v1  ;;  %v1478_v6 = vld [vmem:[%s8788_s2] sm:$0x1]  ;;  %v1483_v9 = vsub.s32 0, %v1482_v7  ;;  %v1476_v13 = vld [vmem:[%s8788_s2 + $0x1] sm:$0xff] }
 0x1de   : > { %6217 = vmatmul.mubr.msk.f32.vlgmr.msra.gmra.mxu0 %vm1394_vm0, %v1384_v3  ;;  %v1479_v8 = vadd.f32 %v1478_v6, %v1477_v5 }
 0x1e0   : > { %v1484_v10 = vrot.slane %v1479_v8, %v1483_v9 }
 0x1e2   : > { %1489 = vst.msk [vmem:[#allocation2 + $0x8] sm:$0xff] %vm1487_vm1, %v1484_v10  ;;  %1492 = vst.msk [vmem:[#allocation2 + $0x18] sm:$0xff] %vm1487_vm1, %v1484_v10 }
 0x29e   : > { %v6218_v12 = vpop.f32.mrf.mxu0 }
 0x29f   : > { %v1473_v14 = vadd.f32 %v6218_v12, %v5986_v11 }
 0x2a0   : > { %v1467_v15 = vpop.f32.mrf.mxu0 }
 0x2a1   : > { %v1490_v16 = vadd.f32 %v1476_v13, %v1473_v14  ;;  %v1468_v17 = vadd.f32 %v5986_v11, %v1467_v15 }
 0x2a3   : > { %1491 = vst.msk [vmem:[#allocation2 + $0x10] sm:$0xff] %vm1487_vm1, %v1490_v16  ;;  %v1486_v18 = vadd.f32 %v1476_v13, %v1468_v17 }
 0x2a5   : > { %1488 = vst.msk [vmem:[#allocation2] sm:$0xff] %vm1487_vm1, %v1486_v18 }
 0x2a6 PF: > { %v1500_v19 = vld [vmem:[%s8050_s24 + $0x18] sm:$0xff]  ;;  %v1499_v20 = vld [vmem:[%s8050_s24 + $0x10] sm:$0xff]  ;;  %vm1508_vm2 = vcmask 261120   ;;  %v1498_v22 = vld [vmem:[%s8050_s24 + $0x8] sm:$0xff]  ;;  %vm1638_vm3 = vcmask 64512   ;;  %s7475_s1 = smov 120   ;;  %v2347_v6 = vlaneseq }
 0x2a7   : > { %6219 = vmatprep.subr.mxu1 %v1500_v19  ;;  %v1497_v23 = vld [vmem:[%s8050_s24] sm:$0xff]  ;;  %v1494_v24 = vld [vmem:[#allocation2 + $0x8] sm:$0xff]  ;;  %v1496_v26 = vld [vmem:[#allocation2 + $0x18] sm:$0xff]  ;;  %s7477_s5 = smov 104   ;;  %s7478_s21 = smov 96   ;;  %vm2368_vm5 = vcmask 130048  }
 0x2a8   : > { %6220 = vmatpush3.msra.mxu1 %v1500_v19  ;;  %v5989_v27 = vld [vmem:[%s1154_s10] ss:$0 sm:$0xff]  ;;  %s7476_s10 = smov 112   ;;  %s7479_s3 = smov 64   ;;  %v8190_v7 = vand.u32 127, %v2347_v6  ;;  %vm3261_vm6 = vcmask 130112  }
 0x2a9   : > { %6221 = vmatprep.subr.mxu1 %v1499_v20  ;;  %s7480_s28 = smov 8   ;;  %s7481_s24 = smov 16   ;;  %vm3282_vm7 = vcmask 195712   ;;  %vm3303_vm8 = vcmask 261312   ;;  %vm3626_vm9 = vcmask 523264  }
 0x2aa   : > { %6222 = vmatpush3.msra.mxu1 %v1499_v20  ;;  %v1495_v25 = vld [vmem:[#allocation2 + $0x10] sm:$0xff]  ;;  %vm2349_vm4 = vcmp.le.s32.totalorder %v8190_v7, 8  ;;  %s7482_s13 = smov 24   ;;  %p6061_p2 = scmp.ne.s32.totalorder %s7676_s26, 1 }
 0x2ab   : > { %6223 = vmatprep.subr.mxu1 %v1498_v22 }
 0x2ac   : > { %v1493_v21 = vld [vmem:[#allocation2] sm:$0xff]  ;;  %6224 = vmatpush3.msra.mxu1 %v1498_v22 }
 0x2ad   : > { %6227 = vmatprep.mubr.msk.f32.mxu1 %vm1508_vm2, %v1493_v21  ;;  %6225 = vmatprep.subr.mxu1 %v1497_v23 }
 0x2ae   : > { %6226 = vmatpush3.msra.mxu1 %v1497_v23 }
 0x2af   : > { %6228 = vmatmul.mubr.msk.f32.vlgmr.msra.gmra.mxu1 %vm1508_vm2, %v1494_v24 }
 0x2b0   : > { %6230 = vmatprep.mubr.msk.f32.mxu1 %vm1508_vm2, %v1495_v25 }
 0x2b3   : > { %6231 = vmatmul.mubr.msk.f32.gmra.mxu1 %vm1508_vm2, %v1496_v26 }
 0x36f   : > { %v6229_v28 = vpop.f32.mrf.mxu1 }
 0x370   : > { %v8075_v29 = vadd.f32 %v6229_v28, %v5989_v27 }
 0x371   : > { %v1587_v30 = vpop.f32.mrf.mxu1 }
 0x372   : > { %v1588_v31 = vadd.f32 %v5989_v27, %v1587_v30  ;;  %1612 = vrot.lane.b32.xlu0 %v8075_v29, %s7475_s1 }
 0x373   : > { %v6232_v32 = vpop.f32.mrf.mxu1 }
 0x374   : > { %v8078_v33 = vadd.f32 %v6232_v32, %v5989_v27  ;;  %6237 = vmatprep.mubr.msk.f32.mxu1 %vm1638_vm3, %v1588_v31 }
 0x375   : > { %v1597_v34 = vpop.f32.mrf.mxu1 }
 0x376   : > { %v1598_v35 = vadd.f32 %v5989_v27, %v1597_v34  ;;  %1616 = vrot.lane.b32.xlu1 %v8078_v33, %s7475_s1  ;;  %1610 = vrot.lane.b32.xlu0 %v1588_v31, %s7475_s1 }
 0x378   : > { %6244 = vmatprep.mubr.msk.f32.mxu0 %vm1638_vm3, %v1598_v35 }
 0x37a   : > { %1614 = vrot.lane.b32.xlu1 %v1598_v35, %s7475_s1  ;;  %1620 = vrot.lane.b32.xlu0 %v8075_v29, %s7476_s10  ;;  %s7485_s1 = smov (!%p6061_p2), 16  }
 0x37e   : > { %1618 = vrot.lane.b32.xlu1 %v1588_v31, %s7476_s10  ;;  %1624 = vrot.lane.b32.xlu0 %v8078_v33, %s7476_s10 }
 0x382   : > { %1622 = vrot.lane.b32.xlu1 %v1598_v35, %s7476_s10  ;;  %1628 = vrot.lane.b32.xlu0 %v8075_v29, %s7477_s5  ;;  %s7486_s10 = smov (!%p6061_p2), 32  }
 0x386   : > { %1626 = vrot.lane.b32.xlu1 %v1588_v31, %s7477_s5  ;;  %1632 = vrot.lane.b32.xlu0 %v8078_v33, %s7477_s5 }
 0x38a   : > { %1630 = vrot.lane.b32.xlu1 %v1598_v35, %s7477_s5  ;;  %1636 = vrot.lane.b32.xlu0 %v8075_v29, %s7478_s21  ;;  %s7487_s5 = smov (!%p6061_p2), 48  }
 0x38e   : > { %1634 = vrot.lane.b32.xlu1 %v1588_v31, %s7478_s21  ;;  %1724 = vrot.lane.b32.xlu0 %v8078_v33, %s7478_s21 }
 0x392   : > { %1722 = vrot.lane.b32.xlu1 %v1598_v35, %s7478_s21 }
 0x3e4   : > { %v1613_v36 = vpop.permute.xlu0 %1612 }
 0x3e5   : > { %1811 = vrot.lane.b32.xlu0 %v1613_v36, %s7478_s21 }
 0x3e8   : > { %v8089_v37 = vpop.permute.xlu1 %1616  ;;  %v1611_v38 = vpop.permute.xlu0 %1610 }
 0x3e9   : > { %1898 = vrot.lane.b32.xlu0 %v8089_v37, %s7478_s21  ;;  %1809 = vrot.lane.b32.xlu1 %v1611_v38, %s7478_s21 }
 0x3ec   : > { %v1615_v39 = vpop.permute.xlu1 %1614  ;;  %v8092_v40 = vpop.permute.xlu0 %1620 }
 0x3ed   : > { %1896 = vrot.lane.b32.xlu1 %v1615_v39, %s7478_s21  ;;  %1985 = vrot.lane.b32.xlu0 %v8092_v40, %s7478_s21 }
 0x3f0   : > { %v1619_v41 = vpop.permute.xlu1 %1618  ;;  %v8095_v42 = vpop.permute.xlu0 %1624 }
 0x3f1   : > { %1983 = vrot.lane.b32.xlu1 %v1619_v41, %s7478_s21  ;;  %2072 = vrot.lane.b32.xlu0 %v8095_v42, %s7478_s21 }
 0x3f4   : > { %v8098_v43 = vpop.permute.xlu1 %1622  ;;  %v8100_v44 = vpop.permute.xlu0 %1628 }
 0x3f5   : > { %2070 = vrot.lane.b32.xlu1 %v8098_v43, %s7478_s21  ;;  %2159 = vrot.lane.b32.xlu0 %v8100_v44, %s7478_s21 }
 0x3f8   : > { %v8104_v45 = vpop.permute.xlu1 %1626  ;;  %v8106_v46 = vpop.permute.xlu0 %1632 }
 0x3f9   : > { %2157 = vrot.lane.b32.xlu1 %v8104_v45, %s7478_s21  ;;  %2246 = vrot.lane.b32.xlu0 %v8106_v46, %s7478_s21 }
 0x3fc   : > { %v8110_v47 = vpop.permute.xlu1 %1630  ;;  %v1637_v48 = vpop.permute.xlu0 %1636 }
 0x3fd   : > { %2244 = vrot.lane.b32.xlu1 %v8110_v47, %s7478_s21  ;;  %2545 = vrot.lane.b32.xlu0 %v1588_v31, %s7479_s3  ;;  %s7488_s21 = smov (!%p6061_p2), 80  }
 0x3fe   : > { %6233 = vmatprep.subr.msk.mxu1 %vm1638_vm3, %v1637_v48 }
 0x3ff   : > { %6234 = vmatpush3.xpose.msk.msra.mxu1 %vm1638_vm3, %v1637_v48 }
 0x400   : > { %v1635_v49 = vpop.permute.xlu1 %1634  ;;  %v1725_v50 = vpop.permute.xlu0 %1724 }
 0x401   : > { %2547 = vrot.lane.b32.xlu1 %v8075_v29, %s7479_s3  ;;  %2632 = vrot.lane.b32.xlu0 %v1598_v35, %s7479_s3 }
 0x402   : > { %6235 = vmatprep.subr.msk.mxu1 %vm1638_vm3, %v1635_v49  ;;  %6240 = vmatprep.subr.msk.mxu0 %vm1638_vm3, %v1725_v50 }
 0x403   : > { %6236 = vmatpush3.xpose.msk.msra.mxu1 %vm1638_vm3, %v1635_v49  ;;  %6241 = vmatpush3.xpose.msk.msra.mxu0 %vm1638_vm3, %v1725_v50 }
 0x404   : > { %v1723_v51 = vpop.permute.xlu1 %1722 }
 0x405   : > { %2634 = vrot.lane.b32.xlu1 %v8078_v33, %s7479_s3  ;;  %2808 = vrot.lane.b32.xlu0 %v8089_v37, %s7479_s3 }
 0x406   : > { %6238 = vmatmul.mubr.msk.f32.vlgmr.msra.gmra.mxu1 %vm1638_vm3, %v8075_v29  ;;  %6242 = vmatprep.subr.msk.mxu0 %vm1638_vm3, %v1723_v51 }
 0x407   : > { %6243 = vmatpush3.xpose.msk.msra.mxu0 %vm1638_vm3, %v1723_v51  ;;  %6251 = vmatprep.mubr.msk.f32.mxu1 %vm1638_vm3, %v1611_v38 }
 0x409   : > { %2721 = vrot.lane.b32.xlu1 %v1613_v36, %s7479_s3  ;;  %2806 = vrot.lane.b32.xlu0 %v1615_v39, %s7479_s3 }
 0x40a   : > { %6245 = vmatmul.mubr.msk.f32.vlgmr.msra.gmra.mxu0 %vm1638_vm3, %v8078_v33 }
 0x40b   : > { %6258 = vmatprep.mubr.msk.f32.mxu0 %vm1638_vm3, %v1615_v39 }
 0x40d   : > { %2719 = vrot.lane.b32.xlu1 %v1611_v38, %s7479_s3 }
 0x411   : > { %2895 = vrot.lane.b32.xlu1 %v8092_v40, %s7479_s3 }
 0x415   : > { %2893 = vrot.lane.b32.xlu1 %v1619_v41, %s7479_s3 }
 0x457   : > { %v1812_v52 = vpop.permute.xlu0 %1811 }
 0x458   : > { %6247 = vmatprep.subr.msk.mxu1 %vm1638_vm3, %v1812_v52 }
 0x459   : > { %6248 = vmatpush3.xpose.msk.msra.mxu1 %vm1638_vm3, %v1812_v52 }
 0x45b   : > { %v1810_v53 = vpop.permute.xlu1 %1809  ;;  %v1899_v54 = vpop.permute.xlu0 %1898 }
 0x45c   : > { %6249 = vmatprep.subr.msk.mxu1 %vm1638_vm3, %v1810_v53  ;;  %6254 = vmatprep.subr.msk.mxu0 %vm1638_vm3, %v1899_v54 }
 0x45d   : > { %6250 = vmatpush3.xpose.msk.msra.mxu1 %vm1638_vm3, %v1810_v53  ;;  %6255 = vmatpush3.xpose.msk.msra.mxu0 %vm1638_vm3, %v1899_v54 }
 0x45f   : > { %v1897_v55 = vpop.permute.xlu1 %1896  ;;  %v1986_v56 = vpop.permute.xlu0 %1985 }
 0x460   : > { %6252 = vmatmul.mubr.msk.f32.vlgmr.msra.gmra.mxu1 %vm1638_vm3, %v1613_v36  ;;  %6256 = vmatprep.subr.msk.mxu0 %vm1638_vm3, %v1897_v55 }
 0x461   : > { %6261 = vmatprep.subr.msk.mxu1 %vm1638_vm3, %v1986_v56  ;;  %6257 = vmatpush3.xpose.msk.msra.mxu0 %vm1638_vm3, %v1897_v55 }
 0x462   : > { %6262 = vmatpush3.xpose.msk.msra.mxu1 %vm1638_vm3, %v1986_v56  ;;  %6265 = vmatprep.mubr.msk.f32.mxu1 %vm1638_vm3, %v1619_v41 }
 0x463   : > { %v1984_v57 = vpop.permute.xlu1 %1983  ;;  %v2073_v58 = vpop.permute.xlu0 %2072 }
 0x464   : > { %6259 = vmatmul.mubr.msk.f32.vlgmr.msra.gmra.mxu0 %vm1638_vm3, %v8089_v37  ;;  %6263 = vmatprep.subr.msk.mxu1 %vm1638_vm3, %v1984_v57 }
 0x465   : > { %6268 = vmatprep.subr.msk.mxu0 %vm1638_vm3, %v2073_v58  ;;  %6272 = vmatprep.mubr.msk.f32.mxu0 %vm1638_vm3, %v8098_v43 }
 0x466   : > { %6264 = vmatpush3.xpose.msk.msra.mxu1 %vm1638_vm3, %v1984_v57  ;;  %6269 = vmatpush3.xpose.msk.msra.mxu0 %vm1638_vm3, %v2073_v58 }
 0x467   : > { %v2071_v59 = vpop.permute.xlu1 %2070  ;;  %v2160_v60 = vpop.permute.xlu0 %2159 }
 0x468   : > { %6270 = vmatprep.subr.msk.mxu0 %vm1638_vm3, %v2071_v59  ;;  %6275 = vmatprep.subr.msk.mxu1 %vm1638_vm3, %v2160_v60 }
 0x469   : > { %6266 = vmatmul.mubr.msk.f32.vlgmr.msra.gmra.mxu1 %vm1638_vm3, %v8092_v40 }
 0x46a   : > { %6271 = vmatpush3.xpose.msk.msra.mxu0 %vm1638_vm3, %v2071_v59  ;;  %6276 = vmatpush3.xpose.msk.msra.mxu1 %vm1638_vm3, %v2160_v60 }
 0x46b   : > { %6279 = vmatprep.mubr.msk.f32.mxu1 %vm1638_vm3, %v8104_v45  ;;  %v2158_v61 = vpop.permute.xlu1 %2157  ;;  %v2247_v62 = vpop.permute.xlu0 %2246 }
 0x46c   : > { %6277 = vmatprep.subr.msk.mxu1 %vm1638_vm3, %v2158_v61  ;;  %6282 = vmatprep.subr.msk.mxu0 %vm1638_vm3, %v2247_v62 }
 0x46d   : > { %6273 = vmatmul.mubr.msk.f32.vlgmr.msra.gmra.mxu0 %vm1638_vm3, %v8095_v42 }
 0x46e   : > { %6278 = vmatpush3.xpose.msk.msra.mxu1 %vm1638_vm3, %v2158_v61  ;;  %6283 = vmatpush3.xpose.msk.msra.mxu0 %vm1638_vm3, %v2247_v62 }
 0x46f   : > { %6286 = vmatprep.mubr.msk.f32.mxu0 %vm1638_vm3, %v8110_v47  ;;  %v2245_v63 = vpop.permute.xlu1 %2244  ;;  %v2546_v1 = vpop.permute.xlu0 %2545 }
 0x470   : > { %6284 = vmatprep.subr.msk.mxu0 %vm1638_vm3, %v2245_v63 }
 0x471   : > { %6280 = vmatmul.mubr.msk.f32.vlgmr.msra.gmra.mxu1 %vm1638_vm3, %v8100_v44 }
 0x472   : > { %6285 = vmatpush3.xpose.msk.msra.mxu0 %vm1638_vm3, %v2245_v63 }
 0x473   : > { %v2548_v0 = vpop.permute.xlu1 %2547 }
 0x474   : > { %6289 = vmatprep.subr.mxu1 %v2548_v0 }
 0x475   : > { %6287 = vmatmul.mubr.msk.f32.vlgmr.msra.gmra.mxu0 %vm1638_vm3, %v8106_v46  ;;  %6290 = vmatpush3.msra.mxu1 %v2548_v0 }
 0x476   : > { %6291 = vmatprep.subr.mxu1 %v2546_v1 }
 0x477   : > { %v8183_v2 = vpop.permute.xlu1 %2634  ;;  %6292 = vmatpush3.msra.mxu1 %v2546_v1 }
 0x478   : > { %6296 = vmatprep.subr.mxu1 %v8183_v2 }
 0x47b   : > { %v2722_v3 = vpop.permute.xlu1 %2721 }
 0x47c   : > { %6303 = vmatprep.subr.mxu0 %v2722_v3 }
 0x47d   : > { %6304 = vmatpush3.msra.mxu0 %v2722_v3 }
 0x47f   : > { %v2720_v4 = vpop.permute.xlu1 %2719 }
 0x480   : > { %6305 = vmatprep.subr.mxu0 %v2720_v4 }
 0x481   : > { %6306 = vmatpush3.msra.mxu0 %v2720_v4 }
 0x483   : > { %v8186_v5 = vpop.permute.xlu1 %2895 }
 0x484   : > { %6317 = vmatprep.subr.mxu0 %v8186_v5 }
 0x4c6   : > { %v6239_v8 = vpop.f32.mrf.mxu1 }
 0x4c7   : > { %v2332_v9 = vmul.f32 0.35355338, %v6239_v8 }
 0x4c8   : > { %v1713_v10 = vpop.f32.mrf.mxu1 }
 0x4c9   : > { %v2331_v11 = vmul.f32 0.35355338, %v1713_v10  ;;  %v8195_v12 = vsel %vm2349_vm4, %v2332_v9, -1e+30 }
 0x4ca   : > { %v6246_v13 = vpop.f32.mrf.mxu0  ;;  %v2372_v14 = vsel %vm2368_vm5, %v8195_v12, -inf }
 0x4cb   : > { %v2334_v15 = vmul.f32 0.35355338, %v6246_v13  ;;  %2373 = vmax.xlane.f32.xlu1 %v2372_v14  ;;  %v8201_v16 = vsel %vm2349_vm4, %v2331_v11, -1e+30 }
 0x4cc   : > { %v1800_v17 = vpop.f32.mrf.mxu0  ;;  %v2369_v18 = vsel %vm2368_vm5, %v8201_v16, -inf }
 0x4cd   : > { %v2333_v19 = vmul.f32 0.35355338, %v1800_v17  ;;  %2370 = vmax.xlane.f32.xlu0 %v2369_v18  ;;  %v8207_v20 = vsel %vm2349_vm4, %v2334_v15, -1e+30  ;;  %v8287_v15 = vpop.permute.xlu1 %2893 }
 0x4ce   : > { %v2378_v21 = vsel %vm2368_vm5, %v8207_v20, -inf }
 0x4cf   : > { %2379 = vmax.xlane.f32.xlu1 %v2378_v21  ;;  %v8213_v22 = vsel %vm2349_vm4, %v2333_v19, -1e+30 }
 0x4d0   : > { %v2375_v23 = vsel %vm2368_vm5, %v8213_v22, -inf }
 0x4d1   : > { %2376 = vmax.xlane.f32.xlu0 %v2375_v23 }
 0x520   : > { %v6253_v24 = vpop.f32.mrf.mxu1 }
 0x521   : > { %v2336_v25 = vmul.f32 0.35355338, %v6253_v24 }
 0x522   : > { %v1887_v26 = vpop.f32.mrf.mxu1 }
 0x523   : > { %v2335_v27 = vmul.f32 0.35355338, %v1887_v26  ;;  %v8219_v28 = vsel %vm2349_vm4, %v2336_v25, -1e+30  ;;  %v8300_v25 = vpop.permute.xlu0 %2632 }
 0x524   : > { %v6260_v29 = vpop.f32.mrf.mxu0  ;;  %v2384_v30 = vsel %vm2368_vm5, %v8219_v28, -inf }
 0x525   : > { %v2338_v31 = vmul.f32 0.35355338, %v6260_v29  ;;  %2385 = vmax.xlane.f32.xlu0 %v2384_v30  ;;  %v8225_v32 = vsel %vm2349_vm4, %v2335_v27, -1e+30 }
 0x526   : > { %v1974_v33 = vpop.f32.mrf.mxu0  ;;  %v2381_v37 = vsel %vm2368_vm5, %v8225_v32, -inf }
 0x527   : > { %v2337_v34 = vmul.f32 0.35355338, %v1974_v33  ;;  %v8229_v35 = vsel %vm2349_vm4, %v2338_v31, -1e+30 }
 0x528   : > { %v2390_v36 = vsel %vm2368_vm5, %v8229_v35, -inf }
 0x529   : > { %v6267_v38 = vpop.f32.mrf.mxu1  ;;  %2391 = vmax.xlane.f32.xlu1 %v2390_v36  ;;  %2382 = vmax.xlane.f32.xlu0 %v2381_v37  ;;  %v8237_v39 = vsel %vm2349_vm4, %v2337_v34, -1e+30 }
 0x52a   : > { %v2340_v40 = vmul.f32 0.35355338, %v6267_v38  ;;  %v2387_v49 = vsel %vm2368_vm5, %v8237_v39, -inf }
 0x52b   : > { %v2061_v41 = vpop.f32.mrf.mxu1 }
 0x52c   : > { %v2339_v48 = vmul.f32 0.35355338, %v2061_v41  ;;  %v8243_v50 = vsel %vm2349_vm4, %v2340_v40, -1e+30 }
 0x52d   : > { %v6274_v51 = vpop.f32.mrf.mxu0  ;;  %2388 = vmax.xlane.f32.xlu1 %v2387_v49  ;;  %v2396_v52 = vsel %vm2368_vm5, %v8243_v50, -inf }
 0x52e   : > { %v2342_v53 = vmul.f32 0.35355338, %v6274_v51  ;;  %2397 = vmax.xlane.f32.xlu0 %v2396_v52  ;;  %v8249_v54 = vsel %vm2349_vm4, %v2339_v48, -1e+30 }
 0x52f   : > { %v2148_v55 = vpop.f32.mrf.mxu0  ;;  %v2393_v60 = vsel %vm2368_vm5, %v8249_v54, -inf }
 0x530   : > { %v2341_v56 = vmul.f32 0.35355338, %v2148_v55  ;;  %v8253_v57 = vsel %vm2349_vm4, %v2342_v53, -1e+30 }
 0x531   : > { %v6281_v58 = vpop.f32.mrf.mxu1  ;;  %v2402_v59 = vsel %vm2368_vm5, %v8253_v57, -inf }
 0x532   : > { %v2344_v61 = vmul.f32 0.35355338, %v6281_v58  ;;  %2403 = vmax.xlane.f32.xlu1 %v2402_v59  ;;  %2394 = vmax.xlane.f32.xlu0 %v2393_v60  ;;  %v8261_v62 = vsel %vm2349_vm4, %v2341_v56, -1e+30 }
 0x533   : > { %v2235_v63 = vpop.f32.mrf.mxu1  ;;  %v2399_v4 = vsel %vm2368_vm5, %v8261_v62, -inf }
 0x534   : > { %v2343_v0 = vmul.f32 0.35355338, %v2235_v63  ;;  %v8265_v1 = vsel %vm2349_vm4, %v2344_v61, -1e+30 }
 0x535   : > { %v6288_v3 = vpop.f32.mrf.mxu0  ;;  %v2408_v8 = vsel %vm2368_vm5, %v8265_v1, -inf }
 0x536   : > { %v2346_v9 = vmul.f32 0.35355338, %v6288_v3  ;;  %2400 = vmax.xlane.f32.xlu1 %v2399_v4  ;;  %2409 = vmax.xlane.f32.xlu0 %v2408_v8  ;;  %v8273_v10 = vsel %vm2349_vm4, %v2343_v0, -1e+30 }
 0x537   : > { %v2405_v11 = vsel %vm2368_vm5, %v8273_v10, -inf  ;;  %v2322_v19 = vpop.f32.mrf.mxu0 }
 0x538   : > { %v8279_v13 = vsel %vm2349_vm4, %v2346_v9, -1e+30  ;;  %v2345_v23 = vmul.f32 0.35355338, %v2322_v19 }
 0x539   : > { %v2414_v14 = vsel %vm2368_vm5, %v8279_v13, -inf }
 0x53a   : > { %2406 = vmax.xlane.f32.xlu0 %v2405_v11  ;;  %v8294_v24 = vsel %vm2349_vm4, %v2345_v23, -1e+30 }
 0x53e   : > { %2415 = vmax.xlane.f32.xlu0 %v2414_v14 }
 0x547   : > { %3069 = vrot.lane.b32.xlu1 %v8100_v44, %s7479_s3  ;;  %v2411_v44 = vsel %vm2368_vm5, %v8294_v24, -inf }
 0x554   : > { %2982 = vrot.lane.b32.xlu0 %v8095_v42, %s7479_s3  ;;  %v2374_v17 = vpop.xlane.xlu1 %2373 }
 0x555   : > { %v2418_v18 = vsub.f32 %v8195_v12, %v2374_v17  ;;  %v8304_v12 = vpop.permute.xlu0 %2808 }
 0x557   : > { %v2435_v21 = vmul.f32 1.442695, %v2418_v18 }
 0x558   : > { %2980 = vrot.lane.b32.xlu0 %v8098_v43, %s7479_s3  ;;  %v2380_v29 = vpop.xlane.xlu1 %2379 }
 0x559   : > { %6676 = vpow2.f32 %v2435_v21  ;;  %v8308_v7 = vpop.permute.xlu0 %2806  ;;  %v2420_v31 = vsub.f32 %v8207_v20, %v2380_v29 }
 0x55b   : > { %v2439_v34 = vmul.f32 1.442695, %v2420_v31 }
 0x55d   : > { %v2371_v26 = vpop.xlane.xlu0 %2370 }
 0x55e   : > { %v2417_v27 = vsub.f32 %v8201_v16, %v2371_v26 }
 0x560   : > { %v2433_v30 = vmul.f32 1.442695, %v2417_v27 }
 0x561   : > { %v2377_v33 = vpop.xlane.xlu0 %2376 }
 0x562   : > { %6678 = vpow2.f32 %v2433_v30  ;;  %v2419_v36 = vsub.f32 %v8213_v22, %v2377_v33 }
 0x563   : > { %6680 = vpow2.f32 %v2439_v34 }
 0x564   : > { %v2437_v37 = vmul.f32 1.442695, %v2419_v36 }
 0x566   : > { %v8298_v42 = vpop.eup %6676  ;;  %6682 = vpow2.f32 %v2437_v37 }
 0x567   : > { %v2468_v43 = vsel %vm2368_vm5, %v8298_v42, 0.0 }
 0x56b   : > { %2412 = vmax.xlane.f32.xlu1 %v2411_v44 }
 0x56f   : > { %v8313_v38 = vpop.eup %6678 }
 0x570   : > { %v8317_v40 = vpop.eup %6680 }
 0x571   : > { %v2474_v16 = vsel %vm2368_vm5, %v8317_v40, 0.0 }
 0x573   : > { %v8321_v20 = vpop.eup %6682 }
 0x574   : > { %v2471_v22 = vsel %vm2368_vm5, %v8321_v20, 0.0 }
 0x577   : > { %2469 = vadd.xlane.f32.xlu0 %v2468_v43 }
 0x57c   : > { %3067 = vrot.lane.b32.xlu1 %v8104_v45, %s7479_s3  ;;  %v2465_v45 = vsel %vm2368_vm5, %v8313_v38, 0.0 }
 0x5a0   : > { %2466 = vadd.xlane.f32.xlu1 %v2465_v45 }
 0x5a4   : > { %2475 = vadd.xlane.f32.xlu1 %v2474_v16 }
 0x5a8   : > { %2472 = vadd.xlane.f32.xlu1 %v2471_v22 }
 0x5ae   : > { %v2386_v41 = vpop.xlane.xlu0 %2385 }
 0x5af   : > { %v2422_v48 = vsub.f32 %v8219_v28, %v2386_v41 }
 0x5b1   : > { %v2443_v49 = vmul.f32 1.442695, %v2422_v48 }
 0x5b2   : > { %v2392_v51 = vpop.xlane.xlu1 %2391  ;;  %v2383_v52 = vpop.xlane.xlu0 %2382 }
 0x5b3   : > { %6684 = vpow2.f32 %v2443_v49  ;;  %v2424_v53 = vsub.f32 %v8229_v35, %v2392_v51  ;;  %v2421_v55 = vsub.f32 %v8225_v32, %v2383_v52 }
 0x5b5   : > { %v2447_v56 = vmul.f32 1.442695, %v2424_v53  ;;  %v2441_v58 = vmul.f32 1.442695, %v2421_v55 }
 0x5b6   : > { %v2389_v59 = vpop.xlane.xlu1 %2388 }
 0x5b7   : > { %6686 = vpow2.f32 %v2447_v56  ;;  %v2423_v60 = vsub.f32 %v8237_v39, %v2389_v59  ;;  %v2398_v61 = vpop.xlane.xlu0 %2397 }
 0x5b8   : > { %6688 = vpow2.f32 %v2441_v58  ;;  %v2426_v63 = vsub.f32 %v8243_v50, %v2398_v61 }
 0x5b9   : > { %v2445_v0 = vmul.f32 1.442695, %v2423_v60 }
 0x5ba   : > { %v2451_v28 = vmul.f32 1.442695, %v2426_v63 }
 0x5bb   : > { %6690 = vpow2.f32 %v2445_v0  ;;  %v2404_v3 = vpop.xlane.xlu1 %2403  ;;  %v2395_v4 = vpop.xlane.xlu0 %2394 }
 0x5bc   : > { %6692 = vpow2.f32 %v2451_v28  ;;  %v2428_v35 = vsub.f32 %v8253_v57, %v2404_v3  ;;  %v2425_v32 = vsub.f32 %v8249_v54, %v2395_v4 }
 0x5be   : > { %v2455_v8 = vmul.f32 1.442695, %v2428_v35  ;;  %v2449_v9 = vmul.f32 1.442695, %v2425_v32 }
 0x5bf   : > { %v2401_v11 = vpop.xlane.xlu1 %2400  ;;  %v2410_v14 = vpop.xlane.xlu0 %2409 }
 0x5c0   : > { %v8332_v17 = vpop.eup %6684  ;;  %6694 = vpow2.f32 %v2455_v8  ;;  %v2427_v39 = vsub.f32 %v8261_v62, %v2401_v11  ;;  %v2430_v50 = vsub.f32 %v8265_v1, %v2410_v14 }
 0x5c1   : > { %6696 = vpow2.f32 %v2449_v9  ;;  %v2480_v18 = vsel %vm2368_vm5, %v8332_v17, 0.0 }
 0x5c2   : > { %v2453_v19 = vmul.f32 1.442695, %v2427_v39  ;;  %v2459_v21 = vmul.f32 1.442695, %v2430_v50  ;;  %2481 = vadd.xlane.f32.xlu0 %v2480_v18 }
 0x5c3   : > { %v2407_v57 = vpop.xlane.xlu0 %2406  ;;  %v8380_v53 = vpop.permute.xlu1 %3069 }
 0x5c4   : > { %v8338_v54 = vpop.eup %6686  ;;  %6698 = vpow2.f32 %v2453_v19  ;;  %v2429_v23 = vsub.f32 %v8273_v10, %v2407_v57 }
 0x5c5   : > { %v8341_v44 = vpop.eup %6688  ;;  %6700 = vpow2.f32 %v2459_v21  ;;  %v2486_v62 = vsel %vm2368_vm5, %v8338_v54, 0.0 }
 0x5c6   : > { %v2457_v1 = vmul.f32 1.442695, %v2429_v23  ;;  %2487 = vadd.xlane.f32.xlu1 %v2486_v62  ;;  %v2477_v43 = vsel %vm2368_vm5, %v8341_v44, 0.0 }
 0x5c7   : > { %2478 = vadd.xlane.f32.xlu0 %v2477_v43  ;;  %v2416_v26 = vpop.xlane.xlu0 %2415 }
 0x5c8   : > { %v8347_v27 = vpop.eup %6690  ;;  %6702 = vpow2.f32 %v2457_v1  ;;  %v2432_v29 = vsub.f32 %v8279_v13, %v2416_v26 }
 0x5c9   : > { %v8350_v30 = vpop.eup %6692  ;;  %v2483_v10 = vsel %vm2368_vm5, %v8347_v27, 0.0 }
 0x5ca   : > { %v2463_v31 = vmul.f32 1.442695, %v2432_v29  ;;  %2484 = vadd.xlane.f32.xlu1 %v2483_v10  ;;  %v2492_v33 = vsel %vm2368_vm5, %v8350_v30, 0.0 }
 0x5cb   : > { %2493 = vadd.xlane.f32.xlu0 %v2492_v33  ;;  %v8391_v61 = vpop.permute.xlu0 %2982 }
 0x5cc   : > { %6704 = vpow2.f32 %v2463_v31 }
 0x5cd   : > { %v8356_v34 = vpop.eup %6694 }
 0x5ce   : > { %v8358_v36 = vpop.eup %6696  ;;  %v2498_v37 = vsel %vm2368_vm5, %v8356_v34, 0.0 }
 0x5cf   : > { %2499 = vadd.xlane.f32.xlu1 %v2498_v37  ;;  %v2489_v13 = vsel %vm2368_vm5, %v8358_v36, 0.0  ;;  %v8393_v63 = vpop.permute.xlu0 %2980 }
 0x5d0   : > { %2490 = vadd.xlane.f32.xlu0 %v2489_v13 }
 0x5d1   : > { %v8364_v45 = vpop.eup %6698 }
 0x5d2   : > { %v8366_v16 = vpop.eup %6700  ;;  %v2495_v22 = vsel %vm2368_vm5, %v8364_v45, 0.0 }
 0x5d3   : > { %2496 = vadd.xlane.f32.xlu1 %v2495_v22  ;;  %v2504_v41 = vsel %vm2368_vm5, %v8366_v16, 0.0 }
 0x5d4   : > { %2505 = vadd.xlane.f32.xlu0 %v2504_v41 }
 0x5d5   : > { %v8372_v48 = vpop.eup %6702 }
 0x5d6   : > { %v2501_v49 = vsel %vm2368_vm5, %v8372_v48, 0.0 }
 0x5d8   : > { %2502 = vadd.xlane.f32.xlu0 %v2501_v49 }
 0x5d9   : > { %v8376_v51 = vpop.eup %6704 }
 0x5da   : > { %v2510_v52 = vsel %vm2368_vm5, %v8376_v51, 0.0 }
 0x5dc   : > { %2511 = vadd.xlane.f32.xlu0 %v2510_v52 }
 0x5f2   : > { %3156 = vrot.lane.b32.xlu0 %v8106_v46, %s7479_s3 }
 0x5f4   : > { %v2413_v55 = vpop.xlane.xlu1 %2412 }
 0x5f5   : > { %v2431_v56 = vsub.f32 %v8294_v24, %v2413_v55 }
 0x5f7   : > { %v2461_v58 = vmul.f32 1.442695, %v2431_v56 }
 0x5f8   : > { %v8395_v0 = vpop.permute.xlu1 %3067 }
 0x5f9   : > { %6706 = vpow2.f32 %v2461_v58 }
 0x600   : > { %v2470_v46 = vpop.xlane.xlu0 %2469 }
 0x601   : > { %6708 = vrcp.f32 %v2470_v46  ;;  %v3312_v46 = vld [vmem:[%s8053_s11] sm:$0xff] }
 0x606   : > { %v8385_v59 = vpop.eup %6706 }
 0x607   : > { %v2507_v60 = vsel %vm2368_vm5, %v8385_v59, 0.0 }
 0x608   : > { %2508 = vadd.xlane.f32.xlu1 %v2507_v60  ;;  %v3314_v60 = vld [vmem:[%s8053_s11 + $0x10] sm:$0xff] }
 0x60e   : > { %v6709_v4 = vpop.eup %6708 }
 0x619   : > { %3154 = vrot.lane.b32.xlu1 %v8110_v47, %s7479_s3  ;;  %v2530_v47 = vmul.f32 %v6709_v4, %v8298_v42  ;;  %s7489_s3 = smov (!%p6061_p2), 64  }
 0x629   : > { %v2467_v24 = vpop.xlane.xlu1 %2466 }
 0x62a   : > { %6710 = vrcp.f32 %v2467_v24 }
 0x62d   : > { %v2476_v28 = vpop.xlane.xlu1 %2475 }
 0x62e   : > { %6712 = vrcp.f32 %v2476_v28 }
 0x631   : > { %v2473_v3 = vpop.xlane.xlu1 %2472 }
 0x632   : > { %6714 = vrcp.f32 %v2473_v3 }
 0x637   : > { %v6711_v35 = vpop.eup %6710 }
 0x638   : > { %v2529_v32 = vmul.f32 %v6711_v35, %v8313_v38 }
 0x63a   : > { %6293 = vmatprep.mubr.msk.f32.mxu1 %vm2368_vm5, %v2529_v32 }
 0x63b   : > { %6294 = vmatmul.mubr.msk.f32.vlgmr.msra.gmra.mxu1 %vm2368_vm5, %v2530_v47  ;;  %v6713_v8 = vpop.eup %6712 }
 0x63c   : > { %6297 = vmatpush3.msra.mxu1 %v8183_v2  ;;  %v2532_v38 = vmul.f32 %v6713_v8, %v8317_v40 }
 0x63d   : > { %6298 = vmatprep.subr.mxu1 %v8300_v25 }
 0x63e   : > { %6299 = vmatpush3.msra.mxu1 %v8300_v25 }
 0x63f   : > { %v6715_v9 = vpop.eup %6714  ;;  %6310 = vmatprep.subr.mxu1 %v8304_v12 }
 0x640   : > { %v2531_v11 = vmul.f32 %v6715_v9, %v8321_v20 }
 0x642   : > { %6300 = vmatprep.mubr.msk.f32.mxu1 %vm2368_vm5, %v2531_v11 }
 0x643   : > { %6301 = vmatmul.mubr.msk.f32.vlgmr.msra.gmra.mxu1 %vm2368_vm5, %v2532_v38 }
 0x644   : > { %6311 = vmatpush3.msra.mxu1 %v8304_v12 }
 0x645   : > { %6312 = vmatprep.subr.mxu1 %v8308_v7 }
 0x646   : > { %6313 = vmatpush3.msra.mxu1 %v8308_v7 }
 0x647   : > { %6324 = vmatprep.subr.mxu1 %v8391_v61 }
 0x64b   : > { %v2482_v2 = vpop.xlane.xlu0 %2481 }
 0x64c   : > { %6716 = vrcp.f32 %v2482_v2 }
 0x64f   : > { %v2488_v42 = vpop.xlane.xlu1 %2487 }
 0x650   : > { %v2479_v25 = vpop.xlane.xlu0 %2478 }
 0x651   : > { %6718 = vrcp.f32 %v2479_v25 }
 0x652   : > { %6720 = vrcp.f32 %v2488_v42 }
 0x653   : > { %v2485_v20 = vpop.xlane.xlu1 %2484 }
 0x654   : > { %6722 = vrcp.f32 %v2485_v20  ;;  %v2494_v40 = vpop.xlane.xlu0 %2493 }
 0x655   : > { %6724 = vrcp.f32 %v2494_v40 }
 0x658   : > { %v2500_v14 = vpop.xlane.xlu1 %2499 }
 0x659   : > { %v2491_v39 = vpop.xlane.xlu0 %2490  ;;  %v6717_v50 = vpop.eup %6716 }
 0x65a   : > { %6726 = vrcp.f32 %v2491_v39  ;;  %v2534_v57 = vmul.f32 %v6717_v50, %v8332_v17 }
 0x65b   : > { %6728 = vrcp.f32 %v2500_v14 }
 0x65c   : > { %v2497_v12 = vpop.xlane.xlu1 %2496 }
 0x65d   : > { %6730 = vrcp.f32 %v2497_v12  ;;  %v2506_v7 = vpop.xlane.xlu0 %2505 }
 0x65e   : > { %v6719_v18 = vpop.eup %6718  ;;  %6732 = vrcp.f32 %v2506_v7 }
 0x65f   : > { %v2533_v19 = vmul.f32 %v6719_v18, %v8341_v44  ;;  %v6721_v21 = vpop.eup %6720 }
 0x660   : > { %v2536_v43 = vmul.f32 %v6721_v21, %v8338_v54 }
 0x661   : > { %v6723_v23 = vpop.eup %6722  ;;  %v2503_v62 = vpop.xlane.xlu0 %2502  ;;  %6307 = vmatprep.mubr.msk.f32.mxu0 %vm2368_vm5, %v2533_v19  ;;  %v6042_v19 = vld [vmem:[%s1373_s4] ss:$0 sm:$0xff]  ;;  %s8797_s4 = sld [smem:[#allocation64_spill]] (!%p6061_p2) }
 0x662   : > { %6734 = vrcp.f32 %v2503_v62  ;;  %6308 = vmatmul.mubr.msk.f32.vlgmr.msra.gmra.mxu0 %vm2368_vm5, %v2534_v57  ;;  %v2535_v1 = vmul.f32 %v6723_v23, %v8347_v27  ;;  %v6725_v44 = vpop.eup %6724 }
 0x663   : > { %6318 = vmatpush3.msra.mxu0 %v8186_v5  ;;  %v2538_v29 = vmul.f32 %v6725_v44, %v8350_v30  ;;  %v6757_v44 = vld [vmem:[#allocation2] sm:$0xff] }
 0x664   : > { %6319 = vmatprep.subr.mxu0 %v8287_v15  ;;  %6314 = vmatprep.mubr.msk.f32.mxu1 %vm2368_vm5, %v2535_v1  ;;  %v6756_v1 = vld [vmem:[#allocation2 + $0x8] sm:$0xff] }
 0x665   : > { %6320 = vmatpush3.msra.mxu0 %v8287_v15  ;;  %v2512_v17 = vpop.xlane.xlu0 %2511  ;;  %6315 = vmatmul.mubr.msk.f32.vlgmr.msra.gmra.mxu1 %vm2368_vm5, %v2536_v43 }
 0x666   : > { %6331 = vmatprep.subr.mxu0 %v8380_v53  ;;  %6325 = vmatpush3.msra.mxu1 %v8391_v61  ;;  %6736 = vrcp.f32 %v2512_v17 }
 0x667   : > { %v6727_v26 = vpop.eup %6726  ;;  %6326 = vmatprep.subr.mxu1 %v8393_v63 }
 0x668   : > { %6327 = vmatpush3.msra.mxu1 %v8393_v63  ;;  %v2537_v5 = vmul.f32 %v6727_v26, %v8358_v36  ;;  %v6729_v54 = vpop.eup %6728  ;;  %v3313_v63 = vld [vmem:[%s8053_s11 + $0x8] sm:$0xff] }
 0x669   : > { %v3157_v27 = vpop.permute.xlu0 %3156  ;;  %v2540_v31 = vmul.f32 %v6729_v54, %v8356_v34 }
 0x66a   : > { %v6731_v15 = vpop.eup %6730  ;;  %6321 = vmatprep.mubr.msk.f32.mxu0 %vm2368_vm5, %v2537_v5  ;;  %6338 = vmatprep.subr.mxu1 %v3157_v27 }
 0x66b   : > { %6322 = vmatmul.mubr.msk.f32.vlgmr.msra.gmra.mxu0 %vm2368_vm5, %v2538_v29  ;;  %v2539_v10 = vmul.f32 %v6731_v15, %v8364_v45  ;;  %v6733_v33 = vpop.eup %6732 }
 0x66c   : > { %6332 = vmatpush3.msra.mxu0 %v8380_v53  ;;  %v2542_v37 = vmul.f32 %v6733_v33, %v8366_v16 }
 0x66d   : > { %6333 = vmatprep.subr.mxu0 %v8395_v0  ;;  %6328 = vmatprep.mubr.msk.f32.mxu1 %vm2368_vm5, %v2539_v10  ;;  %v6758_v10 = vld [vmem:[#allocation2 + $0x10] sm:$0xff] }
 0x66e   : > { %6334 = vmatpush3.msra.mxu0 %v8395_v0  ;;  %6329 = vmatmul.mubr.msk.f32.vlgmr.msra.gmra.mxu1 %vm2368_vm5, %v2540_v31 }
 0x66f   : > { %v6735_v30 = vpop.eup %6734  ;;  %6339 = vmatpush3.msra.mxu1 %v3157_v27 }
 0x670   : > { %v2541_v36 = vmul.f32 %v6735_v30, %v8372_v48  ;;  %v6759_v30 = vld [vmem:[#allocation2 + $0x18] sm:$0xff] }
 0x672   : > { %6335 = vmatprep.mubr.msk.f32.mxu0 %vm2368_vm5, %v2541_v36 }
 0x673   : > { %6336 = vmatmul.mubr.msk.f32.vlgmr.msra.gmra.mxu0 %vm2368_vm5, %v2542_v37  ;;  %v6737_v45 = vpop.eup %6736 }
 0x674   : > { %v2544_v49 = vmul.f32 %v6737_v45, %v8376_v51 }
 0x691   : > { %v2509_v34 = vpop.xlane.xlu1 %2508 }
 0x692   : > { %6738 = vrcp.f32 %v2509_v34 }
 0x695   : > { %v3155_v13 = vpop.permute.xlu1 %3154 }
 0x696   : > { %6340 = vmatprep.subr.mxu1 %v3155_v13 }
 0x697   : > { %6341 = vmatpush3.msra.mxu1 %v3155_v13 }
 0x69f   : > { %v6739_v22 = vpop.eup %6738 }
 0x6a0   : > { %v2543_v41 = vmul.f32 %v6739_v22, %v8385_v59  ;;  %v3315_v59 = vld [vmem:[%s8053_s11 + $0x18] sm:$0xff] }
 0x6a1   : > { %6345 = vmatprep.subr.mxu0 %v3315_v59 }
 0x6a2   : > { %6342 = vmatprep.mubr.msk.f32.mxu1 %vm2368_vm5, %v2543_v41  ;;  %6346 = vmatpush3.msra.mxu0 %v3315_v59 }
 0x6a3   : > { %6343 = vmatmul.mubr.msk.f32.vlgmr.msra.gmra.mxu1 %vm2368_vm5, %v2544_v49  ;;  %6347 = vmatprep.subr.mxu0 %v3314_v60 }
 0x6a4   : > { %6348 = vmatpush3.msra.mxu0 %v3314_v60 }
 0x6a5   : > { %6349 = vmatprep.subr.mxu0 %v3313_v63 }
 0x6a6   : > { %6350 = vmatpush3.msra.mxu0 %v3313_v63 }
 0x6a7   : > { %6351 = vmatprep.subr.mxu0 %v3312_v46 }
 0x6a8   : > { %6352 = vmatpush3.msra.mxu0 %v3312_v46 }
 0x6fb   : > { %v6295_v16 = vpop.f32.mrf.mxu1 }
 0x6fc   : > { %3242 = vst.msk [vmem:[#allocation3 + $0x8] sm:$0xff] %vm1638_vm3, %v6295_v16 }
 0x6fd   : > { %v2623_v48 = vpop.f32.mrf.mxu1 }
 0x6fe   : > { %3241 = vst.msk [vmem:[#allocation3] sm:$0xff] %vm1638_vm3, %v2623_v48 }
 0x703   : > { %v6302_v52 = vpop.f32.mrf.mxu1 }
 0x704   : > { %3244 = vst.msk [vmem:[#allocation3 + $0x18] sm:$0xff] %vm1638_vm3, %v6302_v52 }
 0x705   : > { %v2710_v53 = vpop.f32.mrf.mxu1 }
 0x706   : > { %3243 = vst.msk [vmem:[#allocation3 + $0x10] sm:$0xff] %vm1638_vm3, %v2710_v53 }
 0x722   : > { %v6309_v51 = vpop.f32.mrf.mxu0 }
 0x723   : > { %3251 = vrot.lane.b32.xlu1 %v6309_v51, %s7480_s28  ;;  %v3502_v51 = vld [vmem:[%s8012_s12 + $0x18] sm:$0xff] }
 0x724   : > { %v2797_v55 = vpop.f32.mrf.mxu0  ;;  %6359 = vmatprep.subr.mxu1 %v3502_v51 }
 0x725   : > { %3249 = vrot.lane.b32.xlu0 %v2797_v55, %s7480_s28  ;;  %v6316_v56 = vpop.f32.mrf.mxu1  ;;  %v3501_v55 = vld [vmem:[%s8012_s12 + $0x10] sm:$0xff]  ;;  %6360 = vmatpush3.msra.mxu1 %v3502_v51 }
 0x726   : > { %6361 = vmatprep.subr.mxu1 %v3501_v55 }
 0x727   : > { %3255 = vrot.lane.b32.xlu1 %v6316_v56, %s7480_s28  ;;  %v2884_v58 = vpop.f32.mrf.mxu1  ;;  %v3500_v56 = vld [vmem:[%s8012_s12 + $0x8] sm:$0xff]  ;;  %6362 = vmatpush3.msra.mxu1 %v3501_v55 }
 0x728   : > { %6363 = vmatprep.subr.mxu1 %v3500_v56 }
 0x729   : > { %3253 = vrot.lane.b32.xlu0 %v2884_v58, %s7480_s28  ;;  %v3499_v58 = vld [vmem:[%s8012_s12] sm:$0xff]  ;;  %6364 = vmatpush3.msra.mxu1 %v3500_v56  ;;  %s8792_s12 = scalar_lea.vmem [#allocation21], %s7998_s16  ;;  %s7490_s28 = smov (!%p6061_p2), 96  }
 0x72a   : > { %6365 = vmatprep.subr.mxu1 %v3499_v58 }
 0x72b   : > { %v6323_v61 = vpop.f32.mrf.mxu0  ;;  %6366 = vmatpush3.msra.mxu1 %v3499_v58 }
 0x72c   : > { %3272 = vrot.lane.b32.xlu1 %v6323_v61, %s7481_s24 }
 0x72d   : > { %v2971_v0 = vpop.f32.mrf.mxu0 }
 0x72e   : > { %3270 = vrot.lane.b32.xlu0 %v2971_v0, %s7481_s24  ;;  %v6330_v24 = vpop.f32.mrf.mxu1 }
 0x730   : > { %3276 = vrot.lane.b32.xlu1 %v6330_v24, %s7481_s24  ;;  %v3058_v28 = vpop.f32.mrf.mxu1 }
 0x732   : > { %3274 = vrot.lane.b32.xlu0 %v3058_v28, %s7481_s24  ;;  %s7491_s24 = smov (!%p6061_p2), 112  }
 0x733   : > { %v6337_v3 = vpop.f32.mrf.mxu0 }
 0x734   : > { %3293 = vrot.lane.b32.xlu1 %v6337_v3, %s7482_s13 }
 0x735   : > { %v3145_v4 = vpop.f32.mrf.mxu0 }
 0x736   : > { %3291 = vrot.lane.b32.xlu0 %v3145_v4, %s7482_s13 }
 0x763   : > { %v6344_v35 = vpop.f32.mrf.mxu1 }
 0x764   : > { %3297 = vrot.lane.b32.xlu1 %v6344_v35, %s7482_s13  ;;  %v3618_v35 = vld [vmem:[%s8057_s14 + $0x38] sm:$0xff] }
 0x765   : > { %v3232_v32 = vpop.f32.mrf.mxu1  ;;  %6373 = vmatprep.subr.mxu0 %v3618_v35 }
 0x766   : > { %3295 = vrot.lane.b32.xlu0 %v3232_v32, %s7482_s13  ;;  %v3617_v32 = vld [vmem:[%s8057_s14 + $0x30] sm:$0xff] }
 0x795   : > { %v3252_v47 = vpop.permute.xlu1 %3251 }
 0x796   : > { %3263 = vst.msk [vmem:[#allocation3 + $0x8] sm:$0xff] %vm3261_vm6, %v3252_v47  ;;  %v3616_v47 = vld [vmem:[%s8057_s14 + $0x28] sm:$0xff] }
 0x797   : > { %v3250_v8 = vpop.permute.xlu0 %3249 }
 0x798   : > { %3262 = vst.msk [vmem:[#allocation3] sm:$0xff] %vm3261_vm6, %v3250_v8  ;;  %v3615_v8 = vld [vmem:[%s8057_s14 + $0x20] sm:$0xff] }
 0x799   : > { %v3256_v9 = vpop.permute.xlu1 %3255 }
 0x79a   : > { %3265 = vst.msk [vmem:[#allocation3 + $0x18] sm:$0xff] %vm3261_vm6, %v3256_v9 }
 0x79b   : > { %v3254_v11 = vpop.permute.xlu0 %3253 }
 0x79c   : > { %3264 = vst.msk [vmem:[#allocation3 + $0x10] sm:$0xff] %vm3261_vm6, %v3254_v11 }
 0x79e   : > { %v3273_v38 = vpop.permute.xlu1 %3272 }
 0x79f   : > { %3284 = vst.msk [vmem:[#allocation3 + $0x8] sm:$0xff] %vm3282_vm7, %v3273_v38 }
 0x7a0   : > { %v3271_v2 = vpop.permute.xlu0 %3270 }
 0x7a1   : > { %3283 = vst.msk [vmem:[#allocation3] sm:$0xff] %vm3282_vm7, %v3271_v2 }
 0x7a2   : > { %v3277_v42 = vpop.permute.xlu1 %3276 }
 0x7a3   : > { %3286 = vst.msk [vmem:[#allocation3 + $0x18] sm:$0xff] %vm3282_vm7, %v3277_v42 }
 0x7a4   : > { %v3275_v25 = vpop.permute.xlu0 %3274 }
 0x7a5   : > { %3285 = vst.msk [vmem:[#allocation3 + $0x10] sm:$0xff] %vm3282_vm7, %v3275_v25 }
 0x7a6   : > { %v3294_v20 = vpop.permute.xlu1 %3293 }
 0x7a7   : > { %3305 = vst.msk [vmem:[#allocation3 + $0x8] sm:$0xff] %vm3303_vm8, %v3294_v20 }
 0x7a8   : > { %v3292_v40 = vpop.permute.xlu0 %3291 }
 0x7a9   : > { %3304 = vst.msk [vmem:[#allocation3] sm:$0xff] %vm3303_vm8, %v3292_v40 }
 0x7ae   : > { %v3309_v39 = vld [vmem:[#allocation3 + $0x8] sm:$0xff] }
 0x7b0   : > { %v3308_v14 = vld [vmem:[#allocation3] sm:$0xff] }
 0x7b1   : > { %6353 = vmatprep.mubr.msk.f32.mxu0 %vm1508_vm2, %v3308_v14  ;;  %v6047_v14 = vld [vmem:[%s1162_s18] ss:$0 sm:$0xff]  ;;  %s8790_s18 = scalar_lea.vmem [#allocation18], %s7998_s16 }
 0x7b2   : > { %6354 = vmatmul.mubr.msk.f32.vlgmr.msra.gmra.mxu0 %vm1508_vm2, %v3309_v39  ;;  %v6054_v56 = vld [vmem:[%s8790_s18] ss:$0 sm:$0xff] }
 0x7b3   : > { %6374 = vmatpush3.msra.mxu0 %v3618_v35 }
 0x7b4   : > { %6375 = vmatprep.subr.mxu0 %v3617_v32 }
 0x7b5   : > { %6376 = vmatpush3.msra.mxu0 %v3617_v32 }
 0x7b6   : > { %6377 = vmatprep.subr.mxu0 %v3616_v47 }
 0x7b7   : > { %6378 = vmatpush3.msra.mxu0 %v3616_v47 }
 0x7b8   : > { %6379 = vmatprep.subr.mxu0 %v3615_v8 }
 0x7b9   : > { %6380 = vmatpush3.msra.mxu0 %v3615_v8 }
 0x7d6   : > { %v3298_v12 = vpop.permute.xlu1 %3297 }
 0x7d7   : > { %3307 = vst.msk [vmem:[#allocation3 + $0x18] sm:$0xff] %vm3303_vm8, %v3298_v12 }
 0x7d8   : > { %v3296_v50 = vpop.permute.xlu0 %3295 }
 0x7d9   : > { %3306 = vst.msk [vmem:[#allocation3 + $0x10] sm:$0xff] %vm3303_vm8, %v3296_v50 }
 0x7de   : > { %v3311_v18 = vld [vmem:[#allocation3 + $0x18] sm:$0xff] }
 0x7e0   : > { %v3310_v7 = vld [vmem:[#allocation3 + $0x10] sm:$0xff] }
 0x7e1   : > { %6356 = vmatprep.mubr.msk.f32.mxu0 %vm1508_vm2, %v3310_v7  ;;  %v6048_v7 = vld [vmem:[%s1170_s23] ss:$0 sm:$0xff]  ;;  %s8791_s23 = scalar_lea.vmem [#allocation19], %s7998_s16  ;;  %s8793_s16 = sld [smem:[#allocation66_spill]] (!%p6061_p2) }
 0x7e2   : > { %6357 = vmatmul.mubr.msk.f32.gmra.mxu0 %vm1508_vm2, %v3311_v18 }
 0x872   : > { %v6355_v21 = vpop.f32.mrf.mxu0 }
 0x873   : > { %v3407_v57 = vadd.f32 %v6355_v21, %v6042_v19 }
 0x874   : > { %v3401_v23 = vpop.f32.mrf.mxu0 }
 0x875   : > { %v3402_v62 = vadd.f32 %v6042_v19, %v3401_v23  ;;  %v3421_v43 = vadd.f32 %v6756_v1, %v3407_v57 }
 0x877   : > { %v3429_v17 = vsel %vm1508_vm2, %v3421_v43, 0.0  ;;  %v3420_v26 = vadd.f32 %v6757_v44, %v3402_v62 }
 0x878   : > { %3430 = vadd.xlane.f32.xlu1 %v3429_v17 }
 0x879   : > { %v3426_v5 = vsel %vm1508_vm2, %v3420_v26, 0.0 }
 0x87a   : > { %3427 = vadd.xlane.f32.xlu0 %v3426_v5 }
 0x8a2   : > { %v6358_v54 = vpop.f32.mrf.mxu0 }
 0x8a3   : > { %v3417_v29 = vadd.f32 %v6358_v54, %v6042_v19 }
 0x8a4   : > { %v3411_v27 = vpop.f32.mrf.mxu0 }
 0x8a5   : > { %v3412_v15 = vadd.f32 %v6042_v19, %v3411_v27  ;;  %v3423_v36 = vadd.f32 %v6759_v30, %v3417_v29  ;;  %v3612_v30 = vld [vmem:[%s8057_s14 + $0x8] sm:$0xff] }
 0x8a7   : > { %v3422_v31 = vadd.f32 %v6758_v10, %v3412_v15  ;;  %v3435_v37 = vsel %vm1508_vm2, %v3423_v36, 0.0 }
 0x8a9   : > { %v3432_v33 = vsel %vm1508_vm2, %v3422_v31, 0.0 }
 0x8aa   : > { %3433 = vadd.xlane.f32.xlu0 %v3432_v33  ;;  %v3613_v33 = vld [vmem:[%s8057_s14 + $0x10] sm:$0xff] }
 0x8ae   : > { %3436 = vadd.xlane.f32.xlu0 %v3435_v37  ;;  %v6049_v37 = vld [vmem:[%s1187_s15] ss:$0 sm:$0xff]  ;;  %s8795_s15 = sld [smem:[#allocation63_spill]] (!%p6061_p2) }
 0x8b4   : > { %s8796_s8 = smov (!%p6061_p2), %s8795_s15 }
 0x901   : > { %v3431_v34 = vpop.xlane.xlu1 %3430 }
 0x902   : > { %v3440_v13 = vmul.f32 0.03125, %v3431_v34 }
 0x903   : > { %v3428_v45 = vpop.xlane.xlu0 %3427 }
 0x904   : > { %v3444_v22 = vsub.f32 %v3421_v43, %v3440_v13  ;;  %v3439_v41 = vmul.f32 0.03125, %v3428_v45 }
 0x906   : > { %v3443_v49 = vsub.f32 %v3420_v26, %v3439_v41  ;;  %v3448_v16 = vmul.f32 %v3444_v22, %v3444_v22 }
 0x908   : > { %v3454_v48 = vsel %vm1508_vm2, %v3448_v16, 0.0  ;;  %v3447_v52 = vmul.f32 %v3443_v49, %v3443_v49 }
 0x909   : > { %3455 = vadd.xlane.f32.xlu0 %v3454_v48 }
 0x90a   : > { %v3451_v53 = vsel %vm1508_vm2, %v3447_v52, 0.0 }
 0x90b   : > { %3452 = vadd.xlane.f32.xlu1 %v3451_v53 }
 0x933   : > { %v3434_v59 = vpop.xlane.xlu0 %3433 }
 0x934   : > { %v3441_v60 = vmul.f32 0.03125, %v3434_v59 }
 0x936   : > { %v3445_v61 = vsub.f32 %v3422_v31, %v3441_v60  ;;  %v3614_v31 = vld [vmem:[%s8057_s14 + $0x18] sm:$0xff] }
 0x937   : > { %v3437_v63 = vpop.xlane.xlu0 %3436  ;;  %6381 = vmatprep.subr.mxu0 %v3614_v31 }
 0x938   : > { %v3442_v0 = vmul.f32 0.03125, %v3437_v63  ;;  %v3449_v46 = vmul.f32 %v3445_v61, %v3445_v61  ;;  %6382 = vmatpush3.msra.mxu0 %v3614_v31 }
 0x939   : > { %6383 = vmatprep.subr.mxu0 %v3613_v33 }
 0x93a   : > { %v3446_v24 = vsub.f32 %v3423_v36, %v3442_v0  ;;  %v3457_v28 = vsel %vm1508_vm2, %v3449_v46, 0.0  ;;  %6384 = vmatpush3.msra.mxu0 %v3613_v33  ;;  %v3611_v36 = vld [vmem:[%s8057_s14] sm:$0xff]  ;;  %s8794_s14 = smov (!%p6061_p2), %s8793_s16 }
 0x93b   : > { %3458 = vadd.xlane.f32.xlu1 %v3457_v28  ;;  %6385 = vmatprep.subr.mxu0 %v3612_v30  ;;  %v6060_v33 = vld [vmem:[%s8792_s12] ss:$0 sm:$0xff] }
 0x93c   : > { %v3450_v3 = vmul.f32 %v3446_v24, %v3446_v24  ;;  %6386 = vmatpush3.msra.mxu0 %v3612_v30 }
 0x93d   : > { %6387 = vmatprep.subr.mxu0 %v3611_v36 }
 0x93e   : > { %v3460_v4 = vsel %vm1508_vm2, %v3450_v3, 0.0  ;;  %6388 = vmatpush3.msra.mxu0 %v3611_v36 }
 0x93f   : > { %3461 = vadd.xlane.f32.xlu0 %v3460_v4 }
 0x992   : > { %v3456_v9 = vpop.xlane.xlu0 %3455 }
 0x993   : > { %v3464_v11 = vmul.f32 0.03125, %v3456_v9 }
 0x994   : > { %v3453_v38 = vpop.xlane.xlu1 %3452 }
 0x995   : > { %v3468_v2 = vadd.f32 1e-05, %v3464_v11  ;;  %v3463_v42 = vmul.f32 0.03125, %v3453_v38 }
 0x997   : > { %6740 = vrsqrt.f32 %v3468_v2  ;;  %v3467_v25 = vadd.f32 1e-05, %v3463_v42 }
 0x999   : > { %6742 = vrsqrt.f32 %v3467_v25 }
 0x9a4   : > { %v6741_v20 = vpop.eup %6740 }
 0x9a5   : > { %v3476_v40 = vmul.f32 %v6741_v20, %v3444_v22 }
 0x9a6   : > { %v6743_v39 = vpop.eup %6742 }
 0x9a7   : > { %v3475_v12 = vmul.f32 %v6743_v39, %v3443_v49  ;;  %v3486_v50 = vmul.f32 %v6047_v14, %v3476_v40 }
 0x9a9   : > { %v3485_v18 = vmul.f32 %v6047_v14, %v3475_v12  ;;  %v3496_v21 = vadd.f32 %v6048_v7, %v3486_v50 }
 0x9ab   : > { %v3495_v19 = vadd.f32 %v6048_v7, %v3485_v18 }
 0x9ad   : > { %6367 = vmatprep.mubr.msk.f32.mxu1 %vm1508_vm2, %v3495_v19 }
 0x9ae   : > { %6368 = vmatmul.mubr.msk.f32.vlgmr.msra.gmra.mxu1 %vm1508_vm2, %v3496_v21 }
 0x9c4   : > { %v3459_v57 = vpop.xlane.xlu1 %3458 }
 0x9c5   : > { %v3465_v23 = vmul.f32 0.03125, %v3459_v57 }
 0x9c7   : > { %v3469_v62 = vadd.f32 1e-05, %v3465_v23 }
 0x9c8   : > { %v3462_v1 = vpop.xlane.xlu0 %3461 }
 0x9c9   : > { %6744 = vrsqrt.f32 %v3469_v62  ;;  %v3466_v43 = vmul.f32 0.03125, %v3462_v1 }
 0x9cb   : > { %v3470_v17 = vadd.f32 1e-05, %v3466_v43 }
 0x9cd   : > { %6746 = vrsqrt.f32 %v3470_v17 }
 0x9d6   : > { %v6745_v44 = vpop.eup %6744 }
 0x9d7   : > { %v3477_v26 = vmul.f32 %v6745_v44, %v3445_v61 }
 0x9d9   : > { %v3487_v5 = vmul.f32 %v6047_v14, %v3477_v26 }
 0x9da   : > { %v6747_v54 = vpop.eup %6746 }
 0x9db   : > { %v3497_v27 = vadd.f32 %v6048_v7, %v3487_v5  ;;  %v3478_v29 = vmul.f32 %v6747_v54, %v3446_v24 }
 0x9dd   : > { %6370 = vmatprep.mubr.msk.f32.mxu1 %vm1508_vm2, %v3497_v27  ;;  %v3488_v15 = vmul.f32 %v6047_v14, %v3478_v29 }
 0x9df   : > { %v3498_v10 = vadd.f32 %v6048_v7, %v3488_v15  ;;  %v6059_v15 = vld [vmem:[%s8791_s23] ss:$0 sm:$0xff] }
 0x9e1   : > { %6371 = vmatmul.mubr.msk.f32.gmra.mxu1 %vm1508_vm2, %v3498_v10 }
 0xa6e   : > { %v6369_v34 = vpop.f32.mrf.mxu1 }
 0xa6f   : > { %v3594_v13 = vadd.f32 %v6369_v34, %v6049_v37 }
 0xa70   : > { %v3588_v45 = vpop.f32.mrf.mxu1 }
 0xa71   : > { %v3589_v22 = vadd.f32 %v6049_v37, %v3588_v45  ;;  %v3608_v49 = vmax.f32 %v3594_v13, 0.0 }
 0xa73   : > { %v3607_v41 = vmax.f32 %v3589_v22, 0.0 }
 0xa75   : > { %6389 = vmatprep.mubr.msk.f32.mxu0 %vm3626_vm9, %v3607_v41 }
 0xa76   : > { %6390 = vmatmul.mubr.msk.f32.vlgmr.msra.gmra.mxu0 %vm3626_vm9, %v3608_v49 }
 0xaa1   : > { %v6372_v16 = vpop.f32.mrf.mxu1 }
 0xaa2   : > { %v3604_v48 = vadd.f32 %v6372_v16, %v6049_v37 }
 0xaa3   : > { %v3598_v52 = vpop.f32.mrf.mxu1 }
 0xaa4   : > { %v3599_v53 = vadd.f32 %v6049_v37, %v3598_v52  ;;  %v3610_v55 = vmax.f32 %v3604_v48, 0.0 }
 0xaa6   : > { %v3609_v51 = vmax.f32 %v3599_v53, 0.0 }
 0xaa8   : > { %6392 = vmatprep.mubr.msk.f32.mxu0 %vm3626_vm9, %v3609_v51 }
 0xaa9   : > { %6393 = vmatmul.mubr.msk.f32.gmra.mxu0 %vm3626_vm9, %v3610_v55 }
 0xb36   : > { %v6391_v58 = vpop.f32.mrf.mxu0 }
 0xb37   : > { %v3711_v59 = vadd.f32 %v6391_v58, %v6054_v56 }
 0xb38   : > { %v3705_v60 = vpop.f32.mrf.mxu0 }
 0xb39   : > { %v3725_v61 = vadd.f32 %v3711_v59, %v3496_v21  ;;  %v3706_v63 = vadd.f32 %v6054_v56, %v3705_v60 }
 0xb3b   : > { %v3733_v0 = vsel %vm1508_vm2, %v3725_v61, 0.0  ;;  %v3724_v46 = vadd.f32 %v3706_v63, %v3495_v19 }
 0xb3c   : > { %3734 = vadd.xlane.f32.xlu0 %v3733_v0 }
 0xb3d   : > { %v3730_v24 = vsel %vm1508_vm2, %v3724_v46, 0.0 }
 0xb3e   : > { %3731 = vadd.xlane.f32.xlu1 %v3730_v24 }
 0xb69   : > { %v6394_v28 = vpop.f32.mrf.mxu0 }
 0xb6a   : > { %v3721_v3 = vadd.f32 %v6394_v28, %v6054_v56 }
 0xb6b   : > { %v3715_v4 = vpop.f32.mrf.mxu0 }
 0xb6c   : > { %v3727_v35 = vadd.f32 %v3721_v3, %v3498_v10  ;;  %v3716_v32 = vadd.f32 %v6054_v56, %v3715_v4 }
 0xb6e   : > { %v3739_v47 = vsel %vm1508_vm2, %v3727_v35, 0.0  ;;  %v3726_v8 = vadd.f32 %v3716_v32, %v3497_v27 }
 0xb6f   : > { %3740 = vadd.xlane.f32.xlu0 %v3739_v47 }
 0xb70   : > { %v3736_v9 = vsel %vm1508_vm2, %v3726_v8, 0.0 }
 0xb71   : > { %3737 = vadd.xlane.f32.xlu1 %v3736_v9 }
 0xbc5   : > { %v3735_v11 = vpop.xlane.xlu0 %3734 }
 0xbc6   : > { %v3743_v38 = vmul.f32 0.03125, %v3735_v11 }
 0xbc7   : > { %v3732_v2 = vpop.xlane.xlu1 %3731 }
 0xbc8   : > { %v3747_v42 = vsub.f32 %v3725_v61, %v3743_v38  ;;  %v3742_v25 = vmul.f32 0.03125, %v3732_v2 }
 0xbca   : > { %v3746_v20 = vsub.f32 %v3724_v46, %v3742_v25  ;;  %v3751_v40 = vmul.f32 %v3747_v42, %v3747_v42 }
 0xbcc   : > { %v3757_v14 = vsel %vm1508_vm2, %v3751_v40, 0.0  ;;  %v3750_v39 = vmul.f32 %v3746_v20, %v3746_v20 }
 0xbcd   : > { %3758 = vadd.xlane.f32.xlu0 %v3757_v14 }
 0xbce   : > { %v3754_v12 = vsel %vm1508_vm2, %v3750_v39, 0.0 }
 0xbcf   : > { %3755 = vadd.xlane.f32.xlu1 %v3754_v12 }
 0xbf8   : > { %v3741_v50 = vpop.xlane.xlu0 %3740 }
 0xbf9   : > { %v3745_v7 = vmul.f32 0.03125, %v3741_v50 }
 0xbfa   : > { %v3738_v18 = vpop.xlane.xlu1 %3737 }
 0xbfb   : > { %v3749_v19 = vsub.f32 %v3727_v35, %v3745_v7  ;;  %v3744_v21 = vmul.f32 0.03125, %v3738_v18 }
 0xbfd   : > { %v3748_v57 = vsub.f32 %v3726_v8, %v3744_v21  ;;  %v3753_v23 = vmul.f32 %v3749_v19, %v3749_v19 }
 0xbff   : > { %v3763_v62 = vsel %vm1508_vm2, %v3753_v23, 0.0  ;;  %v3752_v1 = vmul.f32 %v3748_v57, %v3748_v57 }
 0xc00   : > { %3764 = vadd.xlane.f32.xlu0 %v3763_v62 }
 0xc01   : > { %v3760_v43 = vsel %vm1508_vm2, %v3752_v1, 0.0 }
 0xc02   : > { %3761 = vadd.xlane.f32.xlu1 %v3760_v43 }
 0xc56   : > { %v3759_v17 = vpop.xlane.xlu0 %3758 }
 0xc57   : > { %v3767_v44 = vmul.f32 0.03125, %v3759_v17 }
 0xc58   : > { %v3756_v26 = vpop.xlane.xlu1 %3755 }
 0xc59   : > { %v3771_v5 = vadd.f32 1e-05, %v3767_v44  ;;  %v3766_v54 = vmul.f32 0.03125, %v3756_v26 }
 0xc5b   : > { %6748 = vrsqrt.f32 %v3771_v5  ;;  %v3770_v27 = vadd.f32 1e-05, %v3766_v54 }
 0xc5d   : > { %6750 = vrsqrt.f32 %v3770_v27 }
 0xc68   : > { %v6749_v29 = vpop.eup %6748 }
 0xc69   : > { %v3779_v10 = vmul.f32 %v6749_v29, %v3747_v42 }
 0xc6a   : > { %v6751_v31 = vpop.eup %6750 }
 0xc6b   : > { %v3789_v30 = vmul.f32 %v6059_v15, %v3779_v10  ;;  %v3778_v36 = vmul.f32 %v6751_v31, %v3746_v20 }
 0xc6d   : > { %v8506_v37 = vadd.f32 %v6060_v33, %v3789_v30  ;;  %v3788_v34 = vmul.f32 %v6059_v15, %v3778_v36 }
 0xc6f   : > { %3803 = vst.msk [vmem:[#allocation2 + $0x8] sm:$0xff] %vm1508_vm2, %v8506_v37  ;;  %v8510_v13 = vadd.f32 %v6060_v33, %v3788_v34 }
 0xc71   : > { %3802 = vst.msk [vmem:[#allocation2] sm:$0xff] %vm1508_vm2, %v8510_v13 }
 0xc89   : > { %v3765_v45 = vpop.xlane.xlu0 %3764 }
 0xc8a   : > { %v3769_v22 = vmul.f32 0.03125, %v3765_v45 }
 0xc8b   : > { %v3762_v41 = vpop.xlane.xlu1 %3761 }
 0xc8c   : > { %v3773_v49 = vadd.f32 1e-05, %v3769_v22  ;;  %v3768_v16 = vmul.f32 0.03125, %v3762_v41 }
 0xc8e   : > { %6752 = vrsqrt.f32 %v3773_v49  ;;  %v3772_v48 = vadd.f32 1e-05, %v3768_v16 }
 0xc90   : > { %6754 = vrsqrt.f32 %v3772_v48 }
 0xc9b   : > { %v6753_v52 = vpop.eup %6752 }
 0xc9c   : > { %v3781_v53 = vmul.f32 %v6753_v52, %v3749_v19 }
 0xc9d   : > { %v6755_v51 = vpop.eup %6754 }
 0xc9e   : > { %v3791_v55 = vmul.f32 %v6059_v15, %v3781_v53  ;;  %v3780_v56 = vmul.f32 %v6755_v51, %v3748_v57 }
 0xca0   : > { %v8514_v58 = vadd.f32 %v6060_v33, %v3791_v55  ;;  %v3790_v59 = vmul.f32 %v6059_v15, %v3780_v56  ;;  %3809 = sbr.rel (%p6061_p2) target bundleno = 4269 (0x10ad), region = 216 }
 0xca2   : > { %3805 = vst.msk [vmem:[#allocation2 + $0x18] sm:$0xff] %vm1508_vm2, %v8514_v58  ;;  %v8518_v60 = vadd.f32 %v6060_v33, %v3790_v59 }
 0xca4   : > { %3804 = vst.msk [vmem:[#allocation2 + $0x10] sm:$0xff] %vm1508_vm2, %v8518_v60 }
 0xca5   : > { %v3829_v61 = vld [vmem:[%s8793_s16 + $0x68] sm:$0xff]  ;;  %v3831_v63 = vld [vmem:[%s8794_s14 + $0x78] sm:$0xff]  ;;  %v3828_v0 = vld [vmem:[%s8794_s14 + $0x60] sm:$0xff]  ;;  %vm3810_vm10 = vcmask 253952   ;;  %vm3814_vm11 = vcmask 254976   ;;  %v7483_v42 = vmov 0.0  }
 0xca6   : > { %3859 = vmatprep.subr.mxu0 %v3829_v61  ;;  %3930 = vmatprep.subr.mxu1 %v3831_v63  ;;  %v3830_v46 = vld [vmem:[%s8794_s14 + $0x70] sm:$0xff]  ;;  %v3825_v24 = vld [vmem:[%s8794_s14 + $0x48] sm:$0xff]  ;;  %v3827_v28 = vld [vmem:[%s8794_s14 + $0x58] sm:$0xff]  ;;  %3811 = vst.msk [vmem:[#allocation3] sm:$0x1] %vm3810_vm10, %v8506_v37  ;;  %vm5410_vm12 = vcmask 122880  }
 0xca7   : > { %3812 = vst.msk [vmem:[#allocation3 + $0x1] sm:$0x1] %vm3810_vm10, %v8514_v58  ;;  %3860 = vmatpush1.msra.mxu0 %v3828_v0  ;;  %3931 = vmatpush1.msra.mxu1 %v3830_v46  ;;  %v3824_v3 = vld [vmem:[%s8794_s14 + $0x40] sm:$0xff]  ;;  %v3826_v4 = vld [vmem:[%s8794_s14 + $0x50] sm:$0xff]  ;;  %v3821_v35 = vld [vmem:[%s8794_s14 + $0x28] sm:$0xff]  ;;  %vm5423_vm13 = vcmask 254080  }
 0xca8   : > { %3861 = vmatprep.subr.mxu0 %v3825_v24  ;;  %3932 = vmatprep.subr.mxu1 %v3827_v28  ;;  %v3823_v32 = vld [vmem:[%s8794_s14 + $0x38] sm:$0xff]  ;;  %v3820_v47 = vld [vmem:[%s8794_s14 + $0x20] sm:$0xff]  ;;  %v3822_v8 = vld [vmem:[%s8794_s14 + $0x30] sm:$0xff]  ;;  %vm5430_vm14 = vcmask 385280   ;;  %vm5436_vm15 = vcmask 516480   ;;  %vm5443_vm0 = vcmask 647680  }
 0xca9   : > { %3862 = vmatpush1.msra.mxu0 %v3824_v3  ;;  %3933 = vmatpush1.msra.mxu1 %v3826_v4  ;;  %v3817_v9 = vld [vmem:[%s8794_s14 + $0x8] sm:$0xff]  ;;  %v3819_v11 = vld [vmem:[%s8794_s14 + $0x18] sm:$0xff]  ;;  %v3816_v38 = vld [vmem:[%s8794_s14] sm:$0xff]  ;;  %vm5456_vm1 = vcmask 778880   ;;  %vm5469_vm3 = vcmask 1041280  }
 0xcaa   : > { %3863 = vmatprep.subr.mxu0 %v3821_v35  ;;  %3934 = vmatprep.subr.mxu1 %v3823_v32  ;;  %v3818_v2 = vld [vmem:[%s8794_s14 + $0x10] sm:$0xff]  ;;  %v4094_v20 = vld [vmem:[#allocation28 + $0x1e8] sm:$0xff]  ;;  %v4093_v14 = vld [vmem:[#allocation28 + $0x1e0] sm:$0xff] }
 0xcab   : > { %3864 = vmatpush1.msra.mxu0 %v3820_v47  ;;  %3935 = vmatpush1.msra.mxu1 %v3822_v8  ;;  %v4222_v40 = vld [vmem:[#allocation28 + $0x5e8] sm:$0xff]  ;;  %v4221_v39 = vld [vmem:[#allocation28 + $0x5e0] sm:$0xff] }
 0xcac   : > { %3865 = vmatprep.subr.mxu0 %v3817_v9  ;;  %3936 = vmatprep.subr.mxu1 %v3819_v11  ;;  %v4090_v12 = vld [vmem:[#allocation28 + $0x1c8] sm:$0xff]  ;;  %v4089_v7 = vld [vmem:[#allocation28 + $0x1c0] sm:$0xff] }
 0xcad   : > { %3866 = vmatpush1.msra.mxu0 %v3816_v38  ;;  %3899 = vmatprep.mubr.f32.mxu0 %v7483_v42  ;;  %v4218_v50 = vld [vmem:[#allocation28 + $0x5c8] sm:$0xff]  ;;  %v4217_v18 = vld [vmem:[#allocation28 + $0x5c0] sm:$0xff] }
 0xcae   : > { %v3813_v25 = vld [vmem:[#allocation3] sm:$0x3]  ;;  %3937 = vmatpush1.msra.mxu1 %v3818_v2  ;;  %3970 = vmatprep.mubr.f32.mxu1 %v7483_v42  ;;  %v4086_v19 = vld [vmem:[#allocation28 + $0x1a8] sm:$0xff] }
 0xcaf   : > { %3815 = vst.msk [vmem:[#allocation37] sm:$0x3] %vm3814_vm11, %v3813_v25  ;;  %6062 = vmatmul.mubr.msk.f32.vlgmr.msra.gmra.mxu0 %vm1508_vm2, %v3813_v25  ;;  %6063 = vmatmul.mubr.msk.f32.vlgmr.msra.gmra.mxu1 %vm1508_vm2, %v3813_v25  ;;  %v4214_v21 = vld [vmem:[#allocation28 + $0x5a8] sm:$0xff]  ;;  %v4085_v57 = vld [vmem:[#allocation28 + $0x1a0] sm:$0xff] }
 0xcb0   : > { %4289 = vmatprep.subr.mxu0 %v4094_v20  ;;  %4360 = vmatprep.subr.mxu1 %v4222_v40  ;;  %v4213_v23 = vld [vmem:[#allocation28 + $0x5a0] sm:$0xff]  ;;  %v4082_v62 = vld [vmem:[#allocation28 + $0x188] sm:$0xff] }
 0xcb1   : > { %4290 = vmatpush1.msra.mxu0 %v4093_v14  ;;  %4361 = vmatpush1.msra.mxu1 %v4221_v39  ;;  %v4210_v1 = vld [vmem:[#allocation28 + $0x588] sm:$0xff]  ;;  %v4081_v43 = vld [vmem:[#allocation28 + $0x180] sm:$0xff] }
 0xcb2   : > { %4291 = vmatprep.subr.mxu0 %v4090_v12  ;;  %4362 = vmatprep.subr.mxu1 %v4218_v50  ;;  %v4209_v17 = vld [vmem:[#allocation28 + $0x580] sm:$0xff]  ;;  %v4078_v44 = vld [vmem:[#allocation28 + $0x168] sm:$0xff] }
 0xcb3   : > { %4292 = vmatpush1.msra.mxu0 %v4089_v7  ;;  %4363 = vmatpush1.msra.mxu1 %v4217_v18  ;;  %v4206_v26 = vld [vmem:[#allocation28 + $0x568] sm:$0xff]  ;;  %v4077_v5 = vld [vmem:[#allocation28 + $0x160] sm:$0xff] }
 0xcb4   : > { %4293 = vmatprep.subr.mxu0 %v4086_v19  ;;  %4364 = vmatprep.subr.mxu1 %v4214_v21  ;;  %v4205_v54 = vld [vmem:[#allocation28 + $0x560] sm:$0xff]  ;;  %v4074_v27 = vld [vmem:[#allocation28 + $0x148] sm:$0xff] }
 0xcb5   : > { %4294 = vmatpush1.msra.mxu0 %v4085_v57  ;;  %4365 = vmatpush1.msra.mxu1 %v4213_v23  ;;  %v4202_v29 = vld [vmem:[#allocation28 + $0x548] sm:$0xff]  ;;  %v4073_v15 = vld [vmem:[#allocation28 + $0x140] sm:$0xff] }
 0xcb6   : > { %4295 = vmatprep.subr.mxu0 %v4082_v62  ;;  %4366 = vmatprep.subr.mxu1 %v4210_v1  ;;  %v4201_v10 = vld [vmem:[#allocation28 + $0x540] sm:$0xff]  ;;  %v4070_v31 = vld [vmem:[#allocation28 + $0x128] sm:$0xff] }
 0xcb7   : > { %4296 = vmatpush1.msra.mxu0 %v4081_v43  ;;  %4367 = vmatpush1.msra.mxu1 %v4209_v17  ;;  %v4198_v33 = vld [vmem:[#allocation28 + $0x528] sm:$0xff]  ;;  %v4069_v30 = vld [vmem:[#allocation28 + $0x120] sm:$0xff] }
 0xcb8   : > { %4297 = vmatprep.subr.mxu0 %v4078_v44  ;;  %4368 = vmatprep.subr.mxu1 %v4206_v26  ;;  %v4197_v36 = vld [vmem:[#allocation28 + $0x520] sm:$0xff]  ;;  %v4066_v34 = vld [vmem:[#allocation28 + $0x108] sm:$0xff] }
 0xcb9   : > { %4298 = vmatpush1.msra.mxu0 %v4077_v5  ;;  %4369 = vmatpush1.msra.mxu1 %v4205_v54  ;;  %v4194_v45 = vld [vmem:[#allocation28 + $0x508] sm:$0xff]  ;;  %v4065_v22 = vld [vmem:[#allocation28 + $0x100] sm:$0xff] }
 0xcba   : > { %4299 = vmatprep.subr.mxu0 %v4074_v27  ;;  %4370 = vmatprep.subr.mxu1 %v4202_v29  ;;  %v4193_v41 = vld [vmem:[#allocation28 + $0x500] sm:$0xff]  ;;  %v4062_v49 = vld [vmem:[#allocation28 + $0xe8] sm:$0xff] }
 0xcbb   : > { %4300 = vmatpush1.msra.mxu0 %v4073_v15  ;;  %4371 = vmatpush1.msra.mxu1 %v4201_v10  ;;  %v4190_v16 = vld [vmem:[#allocation28 + $0x4e8] sm:$0xff]  ;;  %v4061_v48 = vld [vmem:[#allocation28 + $0xe0] sm:$0xff] }
 0xcbc   : > { %4301 = vmatprep.subr.mxu0 %v4070_v31  ;;  %4372 = vmatprep.subr.mxu1 %v4198_v33  ;;  %v4189_v52 = vld [vmem:[#allocation28 + $0x4e0] sm:$0xff]  ;;  %v4058_v53 = vld [vmem:[#allocation28 + $0xc8] sm:$0xff] }
 0xcbd   : > { %4302 = vmatpush1.msra.mxu0 %v4069_v30  ;;  %4373 = vmatpush1.msra.mxu1 %v4197_v36  ;;  %v4186_v51 = vld [vmem:[#allocation28 + $0x4c8] sm:$0xff]  ;;  %v4057_v55 = vld [vmem:[#allocation28 + $0xc0] sm:$0xff] }
 0xcbe   : > { %4303 = vmatprep.subr.mxu0 %v4066_v34  ;;  %4374 = vmatprep.subr.mxu1 %v4194_v45  ;;  %v4185_v56 = vld [vmem:[#allocation28 + $0x4c0] sm:$0xff]  ;;  %v4054_v59 = vld [vmem:[#allocation28 + $0xa8] sm:$0xff] }
 0xcbf   : > { %4304 = vmatpush1.msra.mxu0 %v4065_v22  ;;  %4375 = vmatpush1.msra.mxu1 %v4193_v41  ;;  %v4182_v61 = vld [vmem:[#allocation28 + $0x4a8] sm:$0xff]  ;;  %v4053_v63 = vld [vmem:[#allocation28 + $0xa0] sm:$0xff] }
 0xcc0   : > { %4305 = vmatprep.subr.mxu0 %v4062_v49  ;;  %4376 = vmatprep.subr.mxu1 %v4190_v16  ;;  %v4181_v0 = vld [vmem:[#allocation28 + $0x4a0] sm:$0xff]  ;;  %v4050_v46 = vld [vmem:[#allocation28 + $0x88] sm:$0xff] }
 0xcc1   : > { %4306 = vmatpush1.msra.mxu0 %v4061_v48  ;;  %4377 = vmatpush1.msra.mxu1 %v4189_v52  ;;  %v4178_v24 = vld [vmem:[#allocation28 + $0x488] sm:$0xff]  ;;  %v4049_v28 = vld [vmem:[#allocation28 + $0x80] sm:$0xff] }
 0xcc2   : > { %4307 = vmatprep.subr.mxu0 %v4058_v53  ;;  %4378 = vmatprep.subr.mxu1 %v4186_v51  ;;  %v4177_v3 = vld [vmem:[#allocation28 + $0x480] sm:$0xff]  ;;  %v4046_v4 = vld [vmem:[#allocation28 + $0x68] sm:$0xff] }
 0xcc3   : > { %4308 = vmatpush1.msra.mxu0 %v4057_v55  ;;  %4379 = vmatpush1.msra.mxu1 %v4185_v56  ;;  %v4174_v35 = vld [vmem:[#allocation28 + $0x468] sm:$0xff]  ;;  %v4045_v32 = vld [vmem:[#allocation28 + $0x60] sm:$0xff] }
 0xcc4   : > { %4309 = vmatprep.subr.mxu0 %v4054_v59  ;;  %4380 = vmatprep.subr.mxu1 %v4182_v61  ;;  %v4173_v47 = vld [vmem:[#allocation28 + $0x460] sm:$0xff]  ;;  %v4042_v8 = vld [vmem:[#allocation28 + $0x48] sm:$0xff] }
 0xcc5   : > { %4310 = vmatpush1.msra.mxu0 %v4053_v63  ;;  %4381 = vmatpush1.msra.mxu1 %v4181_v0  ;;  %v4170_v9 = vld [vmem:[#allocation28 + $0x448] sm:$0xff]  ;;  %v4041_v11 = vld [vmem:[#allocation28 + $0x40] sm:$0xff] }
 0xcc6   : > { %4311 = vmatprep.subr.mxu0 %v4050_v46  ;;  %4382 = vmatprep.subr.mxu1 %v4178_v24  ;;  %v4169_v38 = vld [vmem:[#allocation28 + $0x440] sm:$0xff]  ;;  %v4038_v2 = vld [vmem:[#allocation28 + $0x28] sm:$0xff] }
 0xcc7   : > { %4312 = vmatpush1.msra.mxu0 %v4049_v28  ;;  %4383 = vmatpush1.msra.mxu1 %v4177_v3  ;;  %v4166_v42 = vld [vmem:[#allocation28 + $0x428] sm:$0xff]  ;;  %v4037_v25 = vld [vmem:[#allocation28 + $0x20] sm:$0xff] }
 0xcc8   : > { %4313 = vmatprep.subr.mxu0 %v4046_v4  ;;  %4384 = vmatprep.subr.mxu1 %v4174_v35  ;;  %v4165_v20 = vld [vmem:[#allocation28 + $0x420] sm:$0xff]  ;;  %v4034_v40 = vld [vmem:[#allocation28 + $0x8] sm:$0xff] }
 0xcc9   : > { %4314 = vmatpush1.msra.mxu0 %v4045_v32  ;;  %4385 = vmatpush1.msra.mxu1 %v4173_v47  ;;  %v4162_v14 = vld [vmem:[#allocation28 + $0x408] sm:$0xff]  ;;  %v4033_v39 = vld [vmem:[#allocation28] sm:$0xff] }
 0xcca   : > { %4315 = vmatprep.subr.mxu0 %v4042_v8  ;;  %4386 = vmatprep.subr.mxu1 %v4170_v9  ;;  %v4161_v12 = vld [vmem:[#allocation28 + $0x400] sm:$0xff]  ;;  %v4158_v50 = vld [vmem:[#allocation28 + $0x3e8] sm:$0xff] }
 0xccb   : > { %4316 = vmatpush1.msra.mxu0 %v4041_v11  ;;  %4387 = vmatpush1.msra.mxu1 %v4169_v38  ;;  %v4286_v7 = vld [vmem:[#allocation28 + $0x7e8] sm:$0xff]  ;;  %v4157_v18 = vld [vmem:[#allocation28 + $0x3e0] sm:$0xff] }
 0xccc   : > { %4317 = vmatprep.subr.mxu0 %v4038_v2  ;;  %4388 = vmatprep.subr.mxu1 %v4166_v42  ;;  %v4285_v19 = vld [vmem:[#allocation28 + $0x7e0] sm:$0xff]  ;;  %v4154_v21 = vld [vmem:[#allocation28 + $0x3c8] sm:$0xff] }
 0xccd   : > { %4318 = vmatpush1.msra.mxu0 %v4037_v25  ;;  %4389 = vmatpush1.msra.mxu1 %v4165_v20  ;;  %v4282_v57 = vld [vmem:[#allocation28 + $0x7c8] sm:$0xff]  ;;  %v4153_v23 = vld [vmem:[#allocation28 + $0x3c0] sm:$0xff] }
 0xcce   : > { %4319 = vmatprep.subr.mxu0 %v4034_v40  ;;  %4390 = vmatprep.subr.mxu1 %v4162_v14  ;;  %v4281_v62 = vld [vmem:[#allocation28 + $0x7c0] sm:$0xff]  ;;  %v4150_v1 = vld [vmem:[#allocation28 + $0x3a8] sm:$0xff] }
 0xccf   : > { %4320 = vmatpush1.msra.mxu0 %v4033_v39  ;;  %4391 = vmatpush1.msra.mxu1 %v4161_v12  ;;  %v4278_v43 = vld [vmem:[#allocation28 + $0x7a8] sm:$0xff]  ;;  %v4149_v17 = vld [vmem:[#allocation28 + $0x3a0] sm:$0xff] }
 0xcd0   : > { %4321 = vmatprep.subr.mxu0 %v4158_v50  ;;  %4392 = vmatprep.subr.mxu1 %v4286_v7  ;;  %v4277_v44 = vld [vmem:[#allocation28 + $0x7a0] sm:$0xff]  ;;  %v4146_v26 = vld [vmem:[#allocation28 + $0x388] sm:$0xff] }
 0xcd1   : > { %4322 = vmatpush2.msra.mxu0 %v4157_v18  ;;  %4393 = vmatpush2.msra.mxu1 %v4285_v19  ;;  %v4274_v5 = vld [vmem:[#allocation28 + $0x788] sm:$0xff]  ;;  %v4145_v54 = vld [vmem:[#allocation28 + $0x380] sm:$0xff] }
 0xcd2   : > { %4323 = vmatprep.subr.mxu0 %v4154_v21  ;;  %4394 = vmatprep.subr.mxu1 %v4282_v57  ;;  %v4273_v27 = vld [vmem:[#allocation28 + $0x780] sm:$0xff]  ;;  %v4142_v29 = vld [vmem:[#allocation28 + $0x368] sm:$0xff]  ;;  %v4096_v57 = vld [vmem:[#allocation28 + $0x1f8] sm:$0xff] }
 0xcd3   : > { %4324 = vmatpush2.msra.mxu0 %v4153_v23  ;;  %4395 = vmatpush2.msra.mxu1 %v4281_v62  ;;  %v4270_v15 = vld [vmem:[#allocation28 + $0x768] sm:$0xff]  ;;  %v4141_v10 = vld [vmem:[#allocation28 + $0x360] sm:$0xff]  ;;  %v4224_v23 = vld [vmem:[#allocation28 + $0x5f8] sm:$0xff]  ;;  %v8544_v62 = vshrl.u32 %v2347_v6, 7 }
 0xcd4   : > { %4325 = vmatprep.subr.mxu0 %v4150_v1  ;;  %4396 = vmatprep.subr.mxu1 %v4278_v43  ;;  %v4269_v31 = vld [vmem:[#allocation28 + $0x760] sm:$0xff]  ;;  %v4138_v33 = vld [vmem:[#allocation28 + $0x348] sm:$0xff] }
 0xcd5   : > { %4326 = vmatpush2.msra.mxu0 %v4149_v17  ;;  %4397 = vmatpush2.msra.mxu1 %v4277_v44  ;;  %v4266_v30 = vld [vmem:[#allocation28 + $0x748] sm:$0xff]  ;;  %v4137_v36 = vld [vmem:[#allocation28 + $0x340] sm:$0xff]  ;;  %v8547_v1 = vsub.s32 0, %v8544_v62  ;;  %v8550_v43 = vsub.s32 2, %v8544_v62  ;;  %v3977_v17 = vld [vmem:[#allocation25] sm:$0xf] }
 0xcd6   : > { %4327 = vmatprep.subr.mxu0 %v4146_v26  ;;  %4398 = vmatprep.subr.mxu1 %v4274_v5  ;;  %v4265_v34 = vld [vmem:[#allocation28 + $0x740] sm:$0xff]  ;;  %v4134_v45 = vld [vmem:[#allocation28 + $0x328] sm:$0xff]  ;;  %v8553_v44 = vsub.s32 1, %v8544_v62  ;;  %v8556_v26 = vsub.s32 3, %v8544_v62 }
 0xcd7   : > { %4328 = vmatpush2.msra.mxu0 %v4145_v54  ;;  %4399 = vmatpush2.msra.mxu1 %v4273_v27  ;;  %v4262_v22 = vld [vmem:[#allocation28 + $0x728] sm:$0xff]  ;;  %v4133_v41 = vld [vmem:[#allocation28 + $0x320] sm:$0xff]  ;;  %v3982_v5 = vrot.slane %v3977_v17, %v8547_v1  ;;  %v4003_v54 = vld [vmem:[#allocation27] sm:$0xf]  ;;  %v3990_v27 = vrot.slane %v3977_v17, %v8550_v43 }
 0xcd8   : > { %4329 = vmatprep.subr.mxu0 %v4142_v29  ;;  %4400 = vmatprep.subr.mxu1 %v4270_v15  ;;  %v4261_v49 = vld [vmem:[#allocation28 + $0x720] sm:$0xff]  ;;  %v4130_v16 = vld [vmem:[#allocation28 + $0x308] sm:$0xff]  ;;  %v3986_v6 = vrot.slane %v3977_v17, %v8553_v44  ;;  %v3994_v29 = vrot.slane %v3977_v17, %v8556_v26  ;;  %v4195_v17 = vld [vmem:[#allocation28 + $0x510] sm:$0xff] }
 0xcd9   : > { %4330 = vmatpush2.msra.mxu0 %v4141_v10  ;;  %4401 = vmatpush2.msra.mxu1 %v4269_v31  ;;  %v4258_v48 = vld [vmem:[#allocation28 + $0x708] sm:$0xff]  ;;  %v4129_v52 = vld [vmem:[#allocation28 + $0x300] sm:$0xff]  ;;  %v4008_v10 = vrot.slane %v4003_v54, %v8547_v1 }
 0xcda   : > { %4331 = vmatprep.subr.mxu0 %v4138_v33  ;;  %4402 = vmatprep.subr.mxu1 %v4266_v30  ;;  %v4257_v53 = vld [vmem:[#allocation28 + $0x700] sm:$0xff]  ;;  %v4126_v51 = vld [vmem:[#allocation28 + $0x2e8] sm:$0xff]  ;;  %v4016_v33 = vrot.slane %v4003_v54, %v8550_v43 }
 0xcdb   : > { %4332 = vmatpush2.msra.mxu0 %v4137_v36  ;;  %4403 = vmatpush2.msra.mxu1 %v4265_v34  ;;  %v4254_v55 = vld [vmem:[#allocation28 + $0x6e8] sm:$0xff]  ;;  %v4125_v56 = vld [vmem:[#allocation28 + $0x2e0] sm:$0xff]  ;;  %v4012_v34 = vrot.slane %v4003_v54, %v8553_v44 }
 0xcdc   : > { %4333 = vmatprep.subr.mxu0 %v4134_v45  ;;  %4404 = vmatprep.subr.mxu1 %v4262_v22  ;;  %v4253_v59 = vld [vmem:[#allocation28 + $0x6e0] sm:$0xff]  ;;  %v4122_v61 = vld [vmem:[#allocation28 + $0x2c8] sm:$0xff]  ;;  %v4020_v45 = vrot.slane %v4003_v54, %v8556_v26  ;;  %v4192_v54 = vld [vmem:[#allocation28 + $0x4f8] sm:$0xff] }
 0xcdd   : > { %4334 = vmatpush2.msra.mxu0 %v4133_v41  ;;  %4405 = vmatpush2.msra.mxu1 %v4261_v49  ;;  %v4250_v63 = vld [vmem:[#allocation28 + $0x6c8] sm:$0xff]  ;;  %v4121_v0 = vld [vmem:[#allocation28 + $0x2c0] sm:$0xff] }
 0xcde   : > { %4335 = vmatprep.subr.mxu0 %v4130_v16  ;;  %4406 = vmatprep.subr.mxu1 %v4258_v48  ;;  %v4249_v46 = vld [vmem:[#allocation28 + $0x6c0] sm:$0xff]  ;;  %v4118_v24 = vld [vmem:[#allocation28 + $0x2a8] sm:$0xff] }
 0xcdf   : > { %4336 = vmatpush2.msra.mxu0 %v4129_v52  ;;  %4407 = vmatpush2.msra.mxu1 %v4257_v53  ;;  %v4246_v28 = vld [vmem:[#allocation28 + $0x6a8] sm:$0xff]  ;;  %v4117_v3 = vld [vmem:[#allocation28 + $0x2a0] sm:$0xff] }
 0xce0   : > { %4337 = vmatprep.subr.mxu0 %v4126_v51  ;;  %4408 = vmatprep.subr.mxu1 %v4254_v55  ;;  %v4245_v4 = vld [vmem:[#allocation28 + $0x6a0] sm:$0xff]  ;;  %v4114_v35 = vld [vmem:[#allocation28 + $0x288] sm:$0xff] }
 0xce1   : > { %4338 = vmatpush2.msra.mxu0 %v4125_v56  ;;  %4409 = vmatpush2.msra.mxu1 %v4253_v59  ;;  %v4242_v32 = vld [vmem:[#allocation28 + $0x688] sm:$0xff]  ;;  %v4113_v47 = vld [vmem:[#allocation28 + $0x280] sm:$0xff] }
 0xce2   : > { %4339 = vmatprep.subr.mxu0 %v4122_v61  ;;  %4410 = vmatprep.subr.mxu1 %v4250_v63  ;;  %v4241_v8 = vld [vmem:[#allocation28 + $0x680] sm:$0xff]  ;;  %v4110_v9 = vld [vmem:[#allocation28 + $0x268] sm:$0xff]  ;;  %v4095_v63 = vld [vmem:[#allocation28 + $0x1f0] sm:$0xff] }
 0xce3   : > { %4340 = vmatpush2.msra.mxu0 %v4121_v0  ;;  %4411 = vmatpush2.msra.mxu1 %v4249_v46  ;;  %v4238_v11 = vld [vmem:[#allocation28 + $0x668] sm:$0xff]  ;;  %v4109_v38 = vld [vmem:[#allocation28 + $0x260] sm:$0xff]  ;;  %v4223_v0 = vld [vmem:[#allocation28 + $0x5f0] sm:$0xff] }
 0xce4   : > { %4341 = vmatprep.subr.mxu0 %v4118_v24  ;;  %4412 = vmatprep.subr.mxu1 %v4246_v28  ;;  %v4237_v2 = vld [vmem:[#allocation28 + $0x660] sm:$0xff]  ;;  %v4106_v42 = vld [vmem:[#allocation28 + $0x248] sm:$0xff]  ;;  %v4092_v46 = vld [vmem:[#allocation28 + $0x1d8] sm:$0xff] }
 0xce5   : > { %4342 = vmatpush2.msra.mxu0 %v4117_v3  ;;  %4413 = vmatpush2.msra.mxu1 %v4245_v4  ;;  %v4234_v25 = vld [vmem:[#allocation28 + $0x648] sm:$0xff]  ;;  %v4105_v20 = vld [vmem:[#allocation28 + $0x240] sm:$0xff]  ;;  %v4220_v24 = vld [vmem:[#allocation28 + $0x5d8] sm:$0xff] }
 0xce6   : > { %4343 = vmatprep.subr.mxu0 %v4114_v35  ;;  %4414 = vmatprep.subr.mxu1 %v4242_v32  ;;  %v4233_v40 = vld [vmem:[#allocation28 + $0x640] sm:$0xff]  ;;  %v4102_v14 = vld [vmem:[#allocation28 + $0x228] sm:$0xff]  ;;  %v4091_v28 = vld [vmem:[#allocation28 + $0x1d0] sm:$0xff] }
 0xce7   : > { %4344 = vmatpush2.msra.mxu0 %v4113_v47  ;;  %4415 = vmatpush2.msra.mxu1 %v4241_v8  ;;  %v4230_v39 = vld [vmem:[#allocation28 + $0x628] sm:$0xff]  ;;  %v4101_v12 = vld [vmem:[#allocation28 + $0x220] sm:$0xff]  ;;  %v4219_v3 = vld [vmem:[#allocation28 + $0x5d0] sm:$0xff] }
 0xce8   : > { %4345 = vmatprep.subr.mxu0 %v4110_v9  ;;  %4416 = vmatprep.subr.mxu1 %v4238_v11  ;;  %v4229_v50 = vld [vmem:[#allocation28 + $0x620] sm:$0xff]  ;;  %v4098_v7 = vld [vmem:[#allocation28 + $0x208] sm:$0xff]  ;;  %v4088_v4 = vld [vmem:[#allocation28 + $0x1b8] sm:$0xff] }
 0xce9   : > { %4346 = vmatpush2.msra.mxu0 %v4109_v38  ;;  %4417 = vmatpush2.msra.mxu1 %v4237_v2  ;;  %v4226_v18 = vld [vmem:[#allocation28 + $0x608] sm:$0xff]  ;;  %v4097_v19 = vld [vmem:[#allocation28 + $0x200] sm:$0xff]  ;;  %v4216_v35 = vld [vmem:[#allocation28 + $0x5b8] sm:$0xff] }
 0xcea   : > { %4347 = vmatprep.subr.mxu0 %v4106_v42  ;;  %4418 = vmatprep.subr.mxu1 %v4234_v25  ;;  %v4225_v21 = vld [vmem:[#allocation28 + $0x600] sm:$0xff]  ;;  %v4087_v32 = vld [vmem:[#allocation28 + $0x1b0] sm:$0xff]  ;;  %v4084_v8 = vld [vmem:[#allocation28 + $0x198] sm:$0xff] }
 0xceb   : > { %4348 = vmatpush2.msra.mxu0 %v4105_v20  ;;  %4419 = vmatpush2.msra.mxu1 %v4233_v40  ;;  %v4215_v47 = vld [vmem:[#allocation28 + $0x5b0] sm:$0xff]  ;;  %v4212_v9 = vld [vmem:[#allocation28 + $0x598] sm:$0xff] }
 0xcec   : > { %4349 = vmatprep.subr.mxu0 %v4102_v14  ;;  %4420 = vmatprep.subr.mxu1 %v4230_v39  ;;  %v4083_v11 = vld [vmem:[#allocation28 + $0x190] sm:$0xff]  ;;  %v4080_v2 = vld [vmem:[#allocation28 + $0x178] sm:$0xff] }
 0xced   : > { %4350 = vmatpush2.msra.mxu0 %v4101_v12  ;;  %4421 = vmatpush2.msra.mxu1 %v4229_v50  ;;  %v4211_v38 = vld [vmem:[#allocation28 + $0x590] sm:$0xff]  ;;  %v4208_v42 = vld [vmem:[#allocation28 + $0x578] sm:$0xff] }
 0xcee   : > { %4351 = vmatprep.subr.mxu0 %v4098_v7  ;;  %4422 = vmatprep.subr.mxu1 %v4226_v18  ;;  %v4079_v25 = vld [vmem:[#allocation28 + $0x170] sm:$0xff]  ;;  %v4076_v40 = vld [vmem:[#allocation28 + $0x158] sm:$0xff] }
 0xcef   : > { %4352 = vmatpush2.msra.mxu0 %v4097_v19  ;;  %4423 = vmatpush2.msra.mxu1 %v4225_v21  ;;  %v4207_v20 = vld [vmem:[#allocation28 + $0x570] sm:$0xff]  ;;  %v4204_v14 = vld [vmem:[#allocation28 + $0x558] sm:$0xff] }
 0xcf0   : > { %4431 = vmatprep.subr.mxu0 %v4096_v57  ;;  %4502 = vmatprep.subr.mxu1 %v4224_v23  ;;  %v4075_v39 = vld [vmem:[#allocation28 + $0x150] sm:$0xff]  ;;  %v4072_v50 = vld [vmem:[#allocation28 + $0x138] sm:$0xff] }
 0xcf1   : > { %v4203_v12 = vld [vmem:[#allocation28 + $0x550] sm:$0xff]  ;;  %v4200_v7 = vld [vmem:[#allocation28 + $0x538] sm:$0xff] }
 0xcf2   : > { %v4071_v18 = vld [vmem:[#allocation28 + $0x130] sm:$0xff]  ;;  %v4068_v21 = vld [vmem:[#allocation28 + $0x118] sm:$0xff] }
 0xcf3   : > { %v4199_v19 = vld [vmem:[#allocation28 + $0x530] sm:$0xff]  ;;  %v4196_v57 = vld [vmem:[#allocation28 + $0x518] sm:$0xff] }
 0xcf4   : > { %v4067_v23 = vld [vmem:[#allocation28 + $0x110] sm:$0xff] }
 0xd6f   : > { %v3901_v15 = vpop.f32.mrf.mxu0  ;;  %v3972_v31 = vpop.f32.mrf.mxu1 }
 0xd70   : > { %v3999_v30 = vmul.f32 %v3982_v5, %v3901_v15  ;;  %v4001_v36 = vmul.f32 %v3990_v27, %v3972_v31  ;;  %v4064_v5 = vld [vmem:[#allocation28 + $0xf8] sm:$0xff]  ;;  %v4063_v27 = vld [vmem:[#allocation28 + $0xf0] sm:$0xff] }
 0xd71   : > { %v3903_v22 = vpop.f32.mrf.mxu0  ;;  %v3974_v41 = vpop.f32.mrf.mxu1  ;;  %v4188_v15 = vld [vmem:[#allocation28 + $0x4d8] sm:$0xff]  ;;  %v4187_v31 = vld [vmem:[#allocation28 + $0x4d0] sm:$0xff] }
 0xd72   : > { %v4000_v49 = vmul.f32 %v3986_v6, %v3903_v22  ;;  %v4002_v16 = vmul.f32 %v3994_v29, %v3974_v41  ;;  %v8566_v48 = vadd.f32 %v4008_v10, %v3999_v30  ;;  %v8568_v52 = vadd.f32 %v4016_v33, %v4001_v36  ;;  %v4191_v6 = vld [vmem:[#allocation28 + $0x4f0] sm:$0xff]  ;;  %v4060_v29 = vld [vmem:[#allocation28 + $0xd8] sm:$0xff] }
 0xd73   : > { %v4059_v10 = vld [vmem:[#allocation28 + $0xd0] sm:$0xff]  ;;  %v4056_v33 = vld [vmem:[#allocation28 + $0xb8] sm:$0xff] }
 0xd74   : > { %v4026_v53 = vadd.f32 %v4012_v34, %v4000_v49  ;;  %v4028_v51 = vadd.f32 %v4020_v45, %v4002_v16  ;;  %v4029_v59 = vmax.f32 %v8566_v48, 0.0  ;;  %v4031_v61 = vmax.f32 %v8568_v52, 0.0  ;;  %v4184_v30 = vld [vmem:[#allocation28 + $0x4b8] sm:$0xff]  ;;  %v4055_v36 = vld [vmem:[#allocation28 + $0xb0] sm:$0xff]  ;;  %v4669_v52 = vld [vmem:[#allocation33 + $0x140] sm:$0xff] }
 0xd75   : > { %v4183_v34 = vld [vmem:[#allocation28 + $0x4b0] sm:$0xff]  ;;  %v4052_v45 = vld [vmem:[#allocation28 + $0x98] sm:$0xff] }
 0xd76   : > { %v4030_v55 = vmax.f32 %v4026_v53, 0.0  ;;  %v4032_v56 = vmax.f32 %v4028_v51, 0.0  ;;  %v4180_v22 = vld [vmem:[#allocation28 + $0x498] sm:$0xff]  ;;  %v4051_v41 = vld [vmem:[#allocation28 + $0x90] sm:$0xff] }
 0xd77   : > { %v4179_v49 = vld [vmem:[#allocation28 + $0x490] sm:$0xff]  ;;  %v4048_v16 = vld [vmem:[#allocation28 + $0x78] sm:$0xff] }
 0xd78   : > { %4353 = vmatprep.mubr.f32.mxu0 %v4030_v55  ;;  %4424 = vmatprep.mubr.f32.mxu1 %v4032_v56  ;;  %v4176_v53 = vld [vmem:[#allocation28 + $0x478] sm:$0xff]  ;;  %v4047_v51 = vld [vmem:[#allocation28 + $0x70] sm:$0xff] }
 0xd79   : > { %4354 = vmatmul.mubr.f32.vlgmr.msra.gmra.mxu0 %v4029_v59  ;;  %4425 = vmatmul.mubr.f32.vlgmr.msra.gmra.mxu1 %v4031_v61  ;;  %v4818_v48 = vld [vmem:[#allocation33 + $0x5e8] sm:$0xff] }
 0xd7a   : > { %4432 = vmatpush1.msra.mxu0 %v4095_v63  ;;  %4503 = vmatpush1.msra.mxu1 %v4223_v0  ;;  %v4172_v63 = vld [vmem:[#allocation28 + $0x458] sm:$0xff]  ;;  %v4043_v0 = vld [vmem:[#allocation28 + $0x50] sm:$0xff] }
 0xd7b   : > { %4433 = vmatprep.subr.mxu0 %v4092_v46  ;;  %4495 = vmatprep.mubr.f32.mxu0 %v4030_v55  ;;  %v4175_v55 = vld [vmem:[#allocation28 + $0x470] sm:$0xff] }
 0xd7c   : > { %4504 = vmatprep.subr.mxu1 %v4220_v24  ;;  %4566 = vmatprep.mubr.f32.mxu1 %v4032_v56  ;;  %v4044_v56 = vld [vmem:[#allocation28 + $0x58] sm:$0xff]  ;;  %v4171_v46 = vld [vmem:[#allocation28 + $0x450] sm:$0xff] }
 0xd7d   : > { %4434 = vmatpush1.msra.mxu0 %v4091_v28  ;;  %4505 = vmatpush1.msra.mxu1 %v4219_v3  ;;  %v4040_v24 = vld [vmem:[#allocation28 + $0x38] sm:$0xff]  ;;  %v4039_v3 = vld [vmem:[#allocation28 + $0x30] sm:$0xff] }
 0xd7e   : > { %4435 = vmatprep.subr.mxu0 %v4088_v4  ;;  %4506 = vmatprep.subr.mxu1 %v4216_v35  ;;  %v4168_v28 = vld [vmem:[#allocation28 + $0x438] sm:$0xff]  ;;  %v4167_v4 = vld [vmem:[#allocation28 + $0x430] sm:$0xff] }
 0xd7f   : > { %4436 = vmatpush1.msra.mxu0 %v4087_v32  ;;  %4507 = vmatpush1.msra.mxu1 %v4215_v47  ;;  %v4036_v35 = vld [vmem:[#allocation28 + $0x18] sm:$0xff]  ;;  %v4035_v47 = vld [vmem:[#allocation28 + $0x10] sm:$0xff] }
 0xd80   : > { %4437 = vmatprep.subr.mxu0 %v4084_v8  ;;  %4508 = vmatprep.subr.mxu1 %v4212_v9  ;;  %v4164_v32 = vld [vmem:[#allocation28 + $0x418] sm:$0xff]  ;;  %v4163_v8 = vld [vmem:[#allocation28 + $0x410] sm:$0xff] }
 0xd81   : > { %4438 = vmatpush1.msra.mxu0 %v4083_v11  ;;  %4509 = vmatpush1.msra.mxu1 %v4211_v38  ;;  %v4160_v9 = vld [vmem:[#allocation28 + $0x3f8] sm:$0xff]  ;;  %v4159_v38 = vld [vmem:[#allocation28 + $0x3f0] sm:$0xff] }
 0xd82   : > { %4439 = vmatprep.subr.mxu0 %v4080_v2  ;;  %4510 = vmatprep.subr.mxu1 %v4208_v42  ;;  %v4288_v11 = vld [vmem:[#allocation28 + $0x7f8] sm:$0xff]  ;;  %v4287_v2 = vld [vmem:[#allocation28 + $0x7f0] sm:$0xff] }
 0xd83   : > { %4440 = vmatpush1.msra.mxu0 %v4079_v25  ;;  %4511 = vmatpush1.msra.mxu1 %v4207_v20  ;;  %v4156_v42 = vld [vmem:[#allocation28 + $0x3d8] sm:$0xff]  ;;  %v4155_v20 = vld [vmem:[#allocation28 + $0x3d0] sm:$0xff] }
 0xd84   : > { %4441 = vmatprep.subr.mxu0 %v4076_v40  ;;  %4512 = vmatprep.subr.mxu1 %v4204_v14  ;;  %v4284_v25 = vld [vmem:[#allocation28 + $0x7d8] sm:$0xff]  ;;  %v4283_v40 = vld [vmem:[#allocation28 + $0x7d0] sm:$0xff] }
 0xd85   : > { %4442 = vmatpush1.msra.mxu0 %v4075_v39  ;;  %4513 = vmatpush1.msra.mxu1 %v4203_v12  ;;  %v4152_v14 = vld [vmem:[#allocation28 + $0x3b8] sm:$0xff]  ;;  %v4151_v12 = vld [vmem:[#allocation28 + $0x3b0] sm:$0xff] }
 0xd86   : > { %4443 = vmatprep.subr.mxu0 %v4072_v50  ;;  %4514 = vmatprep.subr.mxu1 %v4200_v7  ;;  %v4280_v39 = vld [vmem:[#allocation28 + $0x7b8] sm:$0xff]  ;;  %v4279_v50 = vld [vmem:[#allocation28 + $0x7b0] sm:$0xff] }
 0xd87   : > { %4444 = vmatpush1.msra.mxu0 %v4071_v18  ;;  %4515 = vmatpush1.msra.mxu1 %v4199_v19  ;;  %v4148_v7 = vld [vmem:[#allocation28 + $0x398] sm:$0xff]  ;;  %v4147_v19 = vld [vmem:[#allocation28 + $0x390] sm:$0xff] }
 0xd88   : > { %4445 = vmatprep.subr.mxu0 %v4068_v21  ;;  %4516 = vmatprep.subr.mxu1 %v4196_v57  ;;  %v4276_v18 = vld [vmem:[#allocation28 + $0x798] sm:$0xff]  ;;  %v4275_v21 = vld [vmem:[#allocation28 + $0x790] sm:$0xff] }
 0xd89   : > { %4446 = vmatpush1.msra.mxu0 %v4067_v23  ;;  %4517 = vmatpush1.msra.mxu1 %v4195_v17  ;;  %v4144_v57 = vld [vmem:[#allocation28 + $0x378] sm:$0xff]  ;;  %v4143_v17 = vld [vmem:[#allocation28 + $0x370] sm:$0xff] }
 0xd8a   : > { %4447 = vmatprep.subr.mxu0 %v4064_v5  ;;  %4518 = vmatprep.subr.mxu1 %v4192_v54  ;;  %v4272_v23 = vld [vmem:[#allocation28 + $0x778] sm:$0xff]  ;;  %v4271_v5 = vld [vmem:[#allocation28 + $0x770] sm:$0xff] }
 0xd8b   : > { %4448 = vmatpush1.msra.mxu0 %v4063_v27  ;;  %4519 = vmatpush1.msra.mxu1 %v4191_v6  ;;  %v4140_v54 = vld [vmem:[#allocation28 + $0x358] sm:$0xff]  ;;  %v4139_v6 = vld [vmem:[#allocation28 + $0x350] sm:$0xff] }
 0xd8c   : > { %4449 = vmatprep.subr.mxu0 %v4060_v29  ;;  %4520 = vmatprep.subr.mxu1 %v4188_v15  ;;  %v4268_v27 = vld [vmem:[#allocation28 + $0x758] sm:$0xff]  ;;  %v4267_v29 = vld [vmem:[#allocation28 + $0x750] sm:$0xff] }
 0xd8d   : > { %4450 = vmatpush1.msra.mxu0 %v4059_v10  ;;  %4521 = vmatpush1.msra.mxu1 %v4187_v31  ;;  %v4136_v15 = vld [vmem:[#allocation28 + $0x338] sm:$0xff]  ;;  %v4135_v31 = vld [vmem:[#allocation28 + $0x330] sm:$0xff] }
 0xd8e   : > { %4451 = vmatprep.subr.mxu0 %v4056_v33  ;;  %4522 = vmatprep.subr.mxu1 %v4184_v30  ;;  %v4264_v10 = vld [vmem:[#allocation28 + $0x738] sm:$0xff]  ;;  %v4263_v33 = vld [vmem:[#allocation28 + $0x730] sm:$0xff] }
 0xd8f   : > { %4452 = vmatpush1.msra.mxu0 %v4055_v36  ;;  %4523 = vmatpush1.msra.mxu1 %v4183_v34  ;;  %v4132_v30 = vld [vmem:[#allocation28 + $0x318] sm:$0xff]  ;;  %v4131_v34 = vld [vmem:[#allocation28 + $0x310] sm:$0xff] }
 0xd90   : > { %4453 = vmatprep.subr.mxu0 %v4052_v45  ;;  %4524 = vmatprep.subr.mxu1 %v4180_v22  ;;  %v4260_v36 = vld [vmem:[#allocation28 + $0x718] sm:$0xff]  ;;  %v4259_v45 = vld [vmem:[#allocation28 + $0x710] sm:$0xff] }
 0xd91   : > { %4454 = vmatpush1.msra.mxu0 %v4051_v41  ;;  %4525 = vmatpush1.msra.mxu1 %v4179_v49  ;;  %v4128_v22 = vld [vmem:[#allocation28 + $0x2f8] sm:$0xff]  ;;  %v4127_v49 = vld [vmem:[#allocation28 + $0x2f0] sm:$0xff] }
 0xd92   : > { %4455 = vmatprep.subr.mxu0 %v4048_v16  ;;  %4526 = vmatprep.subr.mxu1 %v4176_v53  ;;  %v4256_v41 = vld [vmem:[#allocation28 + $0x6f8] sm:$0xff]  ;;  %v4255_v16 = vld [vmem:[#allocation28 + $0x6f0] sm:$0xff] }
 0xd93   : > { %4456 = vmatpush1.msra.mxu0 %v4047_v51  ;;  %4527 = vmatpush1.msra.mxu1 %v4175_v55  ;;  %v4124_v53 = vld [vmem:[#allocation28 + $0x2d8] sm:$0xff]  ;;  %v4123_v55 = vld [vmem:[#allocation28 + $0x2d0] sm:$0xff] }
 0xd94   : > { %4457 = vmatprep.subr.mxu0 %v4044_v56  ;;  %4528 = vmatprep.subr.mxu1 %v4172_v63  ;;  %v4252_v51 = vld [vmem:[#allocation28 + $0x6d8] sm:$0xff]  ;;  %v4251_v56 = vld [vmem:[#allocation28 + $0x6d0] sm:$0xff] }
 0xd95   : > { %4458 = vmatpush1.msra.mxu0 %v4043_v0  ;;  %4529 = vmatpush1.msra.mxu1 %v4171_v46  ;;  %v4120_v63 = vld [vmem:[#allocation28 + $0x2b8] sm:$0xff]  ;;  %v4119_v46 = vld [vmem:[#allocation28 + $0x2b0] sm:$0xff] }
 0xd96   : > { %4459 = vmatprep.subr.mxu0 %v4040_v24  ;;  %4530 = vmatprep.subr.mxu1 %v4168_v28  ;;  %v4248_v0 = vld [vmem:[#allocation28 + $0x6b8] sm:$0xff]  ;;  %v4247_v24 = vld [vmem:[#allocation28 + $0x6b0] sm:$0xff] }
 0xd97   : > { %4460 = vmatpush1.msra.mxu0 %v4039_v3  ;;  %4531 = vmatpush1.msra.mxu1 %v4167_v4  ;;  %v4116_v28 = vld [vmem:[#allocation28 + $0x298] sm:$0xff]  ;;  %v4115_v4 = vld [vmem:[#allocation28 + $0x290] sm:$0xff] }
 0xd98   : > { %4461 = vmatprep.subr.mxu0 %v4036_v35  ;;  %4532 = vmatprep.subr.mxu1 %v4164_v32  ;;  %v4244_v3 = vld [vmem:[#allocation28 + $0x698] sm:$0xff]  ;;  %v4243_v35 = vld [vmem:[#allocation28 + $0x690] sm:$0xff] }
 0xd99   : > { %4462 = vmatpush1.msra.mxu0 %v4035_v47  ;;  %4533 = vmatpush1.msra.mxu1 %v4163_v8  ;;  %v4112_v32 = vld [vmem:[#allocation28 + $0x278] sm:$0xff]  ;;  %v4111_v8 = vld [vmem:[#allocation28 + $0x270] sm:$0xff] }
 0xd9a   : > { %4463 = vmatprep.subr.mxu0 %v4160_v9  ;;  %4534 = vmatprep.subr.mxu1 %v4288_v11  ;;  %v4240_v47 = vld [vmem:[#allocation28 + $0x678] sm:$0xff]  ;;  %v4239_v9 = vld [vmem:[#allocation28 + $0x670] sm:$0xff] }
 0xd9b   : > { %4464 = vmatpush2.msra.mxu0 %v4159_v38  ;;  %4535 = vmatpush2.msra.mxu1 %v4287_v2  ;;  %v4108_v11 = vld [vmem:[#allocation28 + $0x258] sm:$0xff]  ;;  %v4107_v2 = vld [vmem:[#allocation28 + $0x250] sm:$0xff] }
 0xd9c   : > { %4465 = vmatprep.subr.mxu0 %v4156_v42  ;;  %4536 = vmatprep.subr.mxu1 %v4284_v25  ;;  %v4236_v38 = vld [vmem:[#allocation28 + $0x658] sm:$0xff]  ;;  %v4235_v42 = vld [vmem:[#allocation28 + $0x650] sm:$0xff] }
 0xd9d   : > { %4466 = vmatpush2.msra.mxu0 %v4155_v20  ;;  %4537 = vmatpush2.msra.mxu1 %v4283_v40  ;;  %v4104_v25 = vld [vmem:[#allocation28 + $0x238] sm:$0xff]  ;;  %v4103_v40 = vld [vmem:[#allocation28 + $0x230] sm:$0xff] }
 0xd9e   : > { %4467 = vmatprep.subr.mxu0 %v4152_v14  ;;  %4538 = vmatprep.subr.mxu1 %v4280_v39  ;;  %v4232_v20 = vld [vmem:[#allocation28 + $0x638] sm:$0xff]  ;;  %v4231_v14 = vld [vmem:[#allocation28 + $0x630] sm:$0xff] }
 0xd9f   : > { %4468 = vmatpush2.msra.mxu0 %v4151_v12  ;;  %4539 = vmatpush2.msra.mxu1 %v4279_v50  ;;  %v4100_v39 = vld [vmem:[#allocation28 + $0x218] sm:$0xff]  ;;  %v4099_v50 = vld [vmem:[#allocation28 + $0x210] sm:$0xff] }
 0xda0   : > { %4469 = vmatprep.subr.mxu0 %v4148_v7  ;;  %4540 = vmatprep.subr.mxu1 %v4276_v18  ;;  %v4228_v12 = vld [vmem:[#allocation28 + $0x618] sm:$0xff]  ;;  %v4227_v7 = vld [vmem:[#allocation28 + $0x610] sm:$0xff] }
 0xda1   : > { %4470 = vmatpush2.msra.mxu0 %v4147_v19  ;;  %4541 = vmatpush2.msra.mxu1 %v4275_v21  ;;  %v4690_v18 = vld [vmem:[#allocation33 + $0x1e8] sm:$0xff]  ;;  %v4689_v19 = vld [vmem:[#allocation33 + $0x1e0] sm:$0xff] }
 0xda2   : > { %4471 = vmatprep.subr.mxu0 %v4144_v57  ;;  %4542 = vmatprep.subr.mxu1 %v4272_v23  ;;  %v4686_v21 = vld [vmem:[#allocation33 + $0x1c8] sm:$0xff]  ;;  %v4685_v57 = vld [vmem:[#allocation33 + $0x1c0] sm:$0xff] }
 0xda3   : > { %4472 = vmatpush2.msra.mxu0 %v4143_v17  ;;  %4543 = vmatpush2.msra.mxu1 %v4271_v5  ;;  %v4682_v23 = vld [vmem:[#allocation33 + $0x1a8] sm:$0xff]  ;;  %v4681_v17 = vld [vmem:[#allocation33 + $0x1a0] sm:$0xff] }
 0xda4   : > { %4473 = vmatprep.subr.mxu0 %v4140_v54  ;;  %4544 = vmatprep.subr.mxu1 %v4268_v27  ;;  %v4678_v5 = vld [vmem:[#allocation33 + $0x188] sm:$0xff]  ;;  %v4677_v54 = vld [vmem:[#allocation33 + $0x180] sm:$0xff] }
 0xda5   : > { %4474 = vmatpush2.msra.mxu0 %v4139_v6  ;;  %4545 = vmatpush2.msra.mxu1 %v4267_v29  ;;  %v4674_v27 = vld [vmem:[#allocation33 + $0x168] sm:$0xff]  ;;  %v4673_v6 = vld [vmem:[#allocation33 + $0x160] sm:$0xff] }
 0xda6   : > { %4475 = vmatprep.subr.mxu0 %v4136_v15  ;;  %4546 = vmatprep.subr.mxu1 %v4264_v10  ;;  %v4817_v29 = vld [vmem:[#allocation33 + $0x5e0] sm:$0xff]  ;;  %v4814_v10 = vld [vmem:[#allocation33 + $0x5c8] sm:$0xff] }
 0xda7   : > { %4476 = vmatpush2.msra.mxu0 %v4135_v31  ;;  %4547 = vmatpush2.msra.mxu1 %v4263_v33  ;;  %v4665_v15 = vld [vmem:[#allocation33 + $0x120] sm:$0xff]  ;;  %v4662_v31 = vld [vmem:[#allocation33 + $0x108] sm:$0xff] }
 0xda8   : > { %4477 = vmatprep.subr.mxu0 %v4132_v30  ;;  %4548 = vmatprep.subr.mxu1 %v4260_v36  ;;  %v4813_v33 = vld [vmem:[#allocation33 + $0x5c0] sm:$0xff]  ;;  %v4810_v36 = vld [vmem:[#allocation33 + $0x5a8] sm:$0xff] }
 0xda9   : > { %4478 = vmatpush2.msra.mxu0 %v4131_v34  ;;  %4549 = vmatpush2.msra.mxu1 %v4259_v45  ;;  %v4661_v30 = vld [vmem:[#allocation33 + $0x100] sm:$0xff]  ;;  %v4658_v34 = vld [vmem:[#allocation33 + $0xe8] sm:$0xff] }
 0xdaa   : > { %4479 = vmatprep.subr.mxu0 %v4128_v22  ;;  %4550 = vmatprep.subr.mxu1 %v4256_v41  ;;  %v4809_v45 = vld [vmem:[#allocation33 + $0x5a0] sm:$0xff]  ;;  %v4806_v41 = vld [vmem:[#allocation33 + $0x588] sm:$0xff] }
 0xdab   : > { %4480 = vmatpush2.msra.mxu0 %v4127_v49  ;;  %4551 = vmatpush2.msra.mxu1 %v4255_v16  ;;  %v4657_v22 = vld [vmem:[#allocation33 + $0xe0] sm:$0xff]  ;;  %v4654_v49 = vld [vmem:[#allocation33 + $0xc8] sm:$0xff] }
 0xdac   : > { %4481 = vmatprep.subr.mxu0 %v4124_v53  ;;  %4552 = vmatprep.subr.mxu1 %v4252_v51  ;;  %v4805_v16 = vld [vmem:[#allocation33 + $0x580] sm:$0xff]  ;;  %v4802_v51 = vld [vmem:[#allocation33 + $0x568] sm:$0xff] }
 0xdad   : > { %4482 = vmatpush2.msra.mxu0 %v4123_v55  ;;  %4553 = vmatpush2.msra.mxu1 %v4251_v56  ;;  %v4653_v53 = vld [vmem:[#allocation33 + $0xc0] sm:$0xff]  ;;  %v4650_v55 = vld [vmem:[#allocation33 + $0xa8] sm:$0xff] }
 0xdae   : > { %4483 = vmatprep.subr.mxu0 %v4120_v63  ;;  %4554 = vmatprep.subr.mxu1 %v4248_v0  ;;  %v4801_v56 = vld [vmem:[#allocation33 + $0x560] sm:$0xff]  ;;  %v4798_v0 = vld [vmem:[#allocation33 + $0x548] sm:$0xff] }
 0xdaf   : > { %4484 = vmatpush2.msra.mxu0 %v4119_v46  ;;  %4555 = vmatpush2.msra.mxu1 %v4247_v24  ;;  %v4649_v63 = vld [vmem:[#allocation33 + $0xa0] sm:$0xff]  ;;  %v4646_v46 = vld [vmem:[#allocation33 + $0x88] sm:$0xff] }
 0xdb0   : > { %4485 = vmatprep.subr.mxu0 %v4116_v28  ;;  %4556 = vmatprep.subr.mxu1 %v4244_v3  ;;  %v4797_v24 = vld [vmem:[#allocation33 + $0x540] sm:$0xff]  ;;  %v4794_v3 = vld [vmem:[#allocation33 + $0x528] sm:$0xff] }
 0xdb1   : > { %4486 = vmatpush2.msra.mxu0 %v4115_v4  ;;  %4557 = vmatpush2.msra.mxu1 %v4243_v35  ;;  %v4645_v28 = vld [vmem:[#allocation33 + $0x80] sm:$0xff]  ;;  %v4642_v4 = vld [vmem:[#allocation33 + $0x68] sm:$0xff] }
 0xdb2   : > { %4487 = vmatprep.subr.mxu0 %v4112_v32  ;;  %4558 = vmatprep.subr.mxu1 %v4240_v47  ;;  %v4793_v35 = vld [vmem:[#allocation33 + $0x520] sm:$0xff]  ;;  %v4790_v47 = vld [vmem:[#allocation33 + $0x508] sm:$0xff] }
 0xdb3   : > { %4488 = vmatpush2.msra.mxu0 %v4111_v8  ;;  %4559 = vmatpush2.msra.mxu1 %v4239_v9  ;;  %v4641_v32 = vld [vmem:[#allocation33 + $0x60] sm:$0xff]  ;;  %v4638_v8 = vld [vmem:[#allocation33 + $0x48] sm:$0xff] }
 0xdb4   : > { %4489 = vmatprep.subr.mxu0 %v4108_v11  ;;  %4560 = vmatprep.subr.mxu1 %v4236_v38  ;;  %v4789_v9 = vld [vmem:[#allocation33 + $0x500] sm:$0xff]  ;;  %v4786_v38 = vld [vmem:[#allocation33 + $0x4e8] sm:$0xff] }
 0xdb5   : > { %4490 = vmatpush2.msra.mxu0 %v4107_v2  ;;  %4561 = vmatpush2.msra.mxu1 %v4235_v42  ;;  %v4637_v11 = vld [vmem:[#allocation33 + $0x40] sm:$0xff]  ;;  %v4634_v2 = vld [vmem:[#allocation33 + $0x28] sm:$0xff] }
 0xdb6   : > { %4491 = vmatprep.subr.mxu0 %v4104_v25  ;;  %4562 = vmatprep.subr.mxu1 %v4232_v20  ;;  %v4785_v42 = vld [vmem:[#allocation33 + $0x4e0] sm:$0xff]  ;;  %v4782_v20 = vld [vmem:[#allocation33 + $0x4c8] sm:$0xff] }
 0xdb7   : > { %4492 = vmatpush2.msra.mxu0 %v4103_v40  ;;  %4563 = vmatpush2.msra.mxu1 %v4231_v14  ;;  %v4633_v25 = vld [vmem:[#allocation33 + $0x20] sm:$0xff]  ;;  %v4630_v40 = vld [vmem:[#allocation33 + $0x8] sm:$0xff] }
 0xdb8   : > { %4493 = vmatprep.subr.mxu0 %v4100_v39  ;;  %4564 = vmatprep.subr.mxu1 %v4228_v12  ;;  %v4781_v14 = vld [vmem:[#allocation33 + $0x4c0] sm:$0xff]  ;;  %v4778_v12 = vld [vmem:[#allocation33 + $0x4a8] sm:$0xff] }
 0xdb9   : > { %4494 = vmatpush2.msra.mxu0 %v4099_v50  ;;  %4565 = vmatpush2.msra.mxu1 %v4227_v7  ;;  %v4629_v39 = vld [vmem:[#allocation33] sm:$0xff]  ;;  %v4754_v50 = vld [vmem:[#allocation33 + $0x3e8] sm:$0xff] }
 0xdba   : > { %4496 = vmatmul.mubr.f32.vlgmr.msra.gmra.mxu0 %v4029_v59  ;;  %4567 = vmatmul.mubr.f32.vlgmr.msra.gmra.mxu1 %v4031_v61  ;;  %v4670_v59 = vld [vmem:[#allocation33 + $0x148] sm:$0xff]  ;;  %v4777_v7 = vld [vmem:[#allocation33 + $0x4a0] sm:$0xff] }
 0xdbb   : > { %4885 = vmatprep.subr.mxu0 %v4690_v18  ;;  %4956 = vmatprep.subr.mxu1 %v4818_v48  ;;  %v4666_v61 = vld [vmem:[#allocation33 + $0x128] sm:$0xff]  ;;  %v4753_v18 = vld [vmem:[#allocation33 + $0x3e0] sm:$0xff] }
 0xdbc   : > { %4886 = vmatpush1.msra.mxu0 %v4689_v19  ;;  %4957 = vmatpush1.msra.mxu1 %v4817_v29  ;;  %v4774_v19 = vld [vmem:[#allocation33 + $0x488] sm:$0xff] }
 0xdbd   : > { %4887 = vmatprep.subr.mxu0 %v4686_v21  ;;  %4958 = vmatprep.subr.mxu1 %v4814_v10  ;;  %v4750_v21 = vld [vmem:[#allocation33 + $0x3c8] sm:$0xff]  ;;  %v4737_v10 = vld [vmem:[#allocation33 + $0x360] sm:$0xff] }
 0xdbe   : > { %4888 = vmatpush1.msra.mxu0 %v4685_v57  ;;  %4959 = vmatpush1.msra.mxu1 %v4813_v33  ;;  %v4773_v57 = vld [vmem:[#allocation33 + $0x480] sm:$0xff]  ;;  %v4742_v48 = vld [vmem:[#allocation33 + $0x388] sm:$0xff] }
 0xdbf   : > { %4889 = vmatprep.subr.mxu0 %v4682_v23  ;;  %4960 = vmatprep.subr.mxu1 %v4810_v36  ;;  %v4749_v23 = vld [vmem:[#allocation33 + $0x3c0] sm:$0xff]  ;;  %v4738_v29 = vld [vmem:[#allocation33 + $0x368] sm:$0xff] }
 0xdc0   : > { %4890 = vmatpush1.msra.mxu0 %v4681_v17  ;;  %4961 = vmatpush1.msra.mxu1 %v4809_v45  ;;  %v4770_v17 = vld [vmem:[#allocation33 + $0x468] sm:$0xff]  ;;  %v4733_v36 = vld [vmem:[#allocation33 + $0x340] sm:$0xff] }
 0xdc1   : > { %4891 = vmatprep.subr.mxu0 %v4678_v5  ;;  %4962 = vmatprep.subr.mxu1 %v4806_v41  ;;  %v4746_v5 = vld [vmem:[#allocation33 + $0x3a8] sm:$0xff]  ;;  %v4729_v41 = vld [vmem:[#allocation33 + $0x320] sm:$0xff] }
 0xdc2   : > { %4892 = vmatpush1.msra.mxu0 %v4677_v54  ;;  %4963 = vmatpush1.msra.mxu1 %v4805_v16  ;;  %v4769_v54 = vld [vmem:[#allocation33 + $0x460] sm:$0xff]  ;;  %v4734_v33 = vld [vmem:[#allocation33 + $0x348] sm:$0xff] }
 0xdc3   : > { %4893 = vmatprep.subr.mxu0 %v4674_v27  ;;  %4964 = vmatprep.subr.mxu1 %v4802_v51  ;;  %v4745_v27 = vld [vmem:[#allocation33 + $0x3a0] sm:$0xff]  ;;  %v4730_v45 = vld [vmem:[#allocation33 + $0x328] sm:$0xff] }
 0xdc4   : > { %4894 = vmatpush1.msra.mxu0 %v4673_v6  ;;  %4965 = vmatpush1.msra.mxu1 %v4801_v56  ;;  %v4766_v6 = vld [vmem:[#allocation33 + $0x448] sm:$0xff]  ;;  %v4725_v51 = vld [vmem:[#allocation33 + $0x300] sm:$0xff] }
 0xdc5   : > { %4895 = vmatprep.subr.mxu0 %v4670_v59  ;;  %4966 = vmatprep.subr.mxu1 %v4798_v0  ;;  %v4765_v59 = vld [vmem:[#allocation33 + $0x440] sm:$0xff]  ;;  %v4726_v16 = vld [vmem:[#allocation33 + $0x308] sm:$0xff] }
 0xdc6   : > { %4896 = vmatpush1.msra.mxu0 %v4669_v52  ;;  %4967 = vmatpush1.msra.mxu1 %v4797_v24  ;;  %v4741_v52 = vld [vmem:[#allocation33 + $0x380] sm:$0xff]  ;;  %v4722_v56 = vld [vmem:[#allocation33 + $0x2e8] sm:$0xff] }
 0xdc7   : > { %4897 = vmatprep.subr.mxu0 %v4666_v61  ;;  %4968 = vmatprep.subr.mxu1 %v4794_v3  ;;  %v4762_v61 = vld [vmem:[#allocation33 + $0x428] sm:$0xff]  ;;  %v4721_v0 = vld [vmem:[#allocation33 + $0x2e0] sm:$0xff] }
 0xdc8   : > { %4898 = vmatpush1.msra.mxu0 %v4665_v15  ;;  %4969 = vmatpush1.msra.mxu1 %v4793_v35  ;;  %v4761_v15 = vld [vmem:[#allocation33 + $0x420] sm:$0xff]  ;;  %v4718_v24 = vld [vmem:[#allocation33 + $0x2c8] sm:$0xff] }
 0xdc9   : > { %4899 = vmatprep.subr.mxu0 %v4662_v31  ;;  %4970 = vmatprep.subr.mxu1 %v4790_v47  ;;  %v4758_v31 = vld [vmem:[#allocation33 + $0x408] sm:$0xff]  ;;  %v4717_v3 = vld [vmem:[#allocation33 + $0x2c0] sm:$0xff] }
 0xdca   : > { %4900 = vmatpush1.msra.mxu0 %v4661_v30  ;;  %4971 = vmatpush1.msra.mxu1 %v4789_v9  ;;  %v4757_v30 = vld [vmem:[#allocation33 + $0x400] sm:$0xff]  ;;  %v4714_v35 = vld [vmem:[#allocation33 + $0x2a8] sm:$0xff] }
 0xdcb   : > { %4901 = vmatprep.subr.mxu0 %v4658_v34  ;;  %4972 = vmatprep.subr.mxu1 %v4786_v38  ;;  %v4882_v34 = vld [vmem:[#allocation33 + $0x7e8] sm:$0xff]  ;;  %v4713_v47 = vld [vmem:[#allocation33 + $0x2a0] sm:$0xff] }
 0xdcc   : > { %4902 = vmatpush1.msra.mxu0 %v4657_v22  ;;  %4973 = vmatpush1.msra.mxu1 %v4785_v42  ;;  %v4881_v22 = vld [vmem:[#allocation33 + $0x7e0] sm:$0xff]  ;;  %v4710_v9 = vld [vmem:[#allocation33 + $0x288] sm:$0xff] }
 0xdcd   : > { %4903 = vmatprep.subr.mxu0 %v4654_v49  ;;  %4974 = vmatprep.subr.mxu1 %v4782_v20  ;;  %v4878_v49 = vld [vmem:[#allocation33 + $0x7c8] sm:$0xff]  ;;  %v4709_v38 = vld [vmem:[#allocation33 + $0x280] sm:$0xff] }
 0xdce   : > { %4904 = vmatpush1.msra.mxu0 %v4653_v53  ;;  %4975 = vmatpush1.msra.mxu1 %v4781_v14  ;;  %v4877_v53 = vld [vmem:[#allocation33 + $0x7c0] sm:$0xff]  ;;  %v4706_v42 = vld [vmem:[#allocation33 + $0x268] sm:$0xff] }
 0xdcf   : > { %4905 = vmatprep.subr.mxu0 %v4650_v55  ;;  %4976 = vmatprep.subr.mxu1 %v4778_v12  ;;  %v4874_v55 = vld [vmem:[#allocation33 + $0x7a8] sm:$0xff]  ;;  %v4705_v20 = vld [vmem:[#allocation33 + $0x260] sm:$0xff] }
 0xdd0   : > { %4906 = vmatpush1.msra.mxu0 %v4649_v63  ;;  %4977 = vmatpush1.msra.mxu1 %v4777_v7  ;;  %v4873_v63 = vld [vmem:[#allocation33 + $0x7a0] sm:$0xff]  ;;  %v4702_v14 = vld [vmem:[#allocation33 + $0x248] sm:$0xff] }
 0xdd1   : > { %4907 = vmatprep.subr.mxu0 %v4646_v46  ;;  %4978 = vmatprep.subr.mxu1 %v4774_v19  ;;  %v4870_v46 = vld [vmem:[#allocation33 + $0x788] sm:$0xff]  ;;  %v4701_v12 = vld [vmem:[#allocation33 + $0x240] sm:$0xff] }
 0xdd2   : > { %4908 = vmatpush1.msra.mxu0 %v4645_v28  ;;  %4979 = vmatpush1.msra.mxu1 %v4773_v57  ;;  %v4869_v28 = vld [vmem:[#allocation33 + $0x780] sm:$0xff]  ;;  %v4698_v7 = vld [vmem:[#allocation33 + $0x228] sm:$0xff] }
 0xdd3   : > { %4909 = vmatprep.subr.mxu0 %v4642_v4  ;;  %4980 = vmatprep.subr.mxu1 %v4770_v17  ;;  %v4866_v4 = vld [vmem:[#allocation33 + $0x768] sm:$0xff]  ;;  %v4697_v19 = vld [vmem:[#allocation33 + $0x220] sm:$0xff] }
 0xdd4   : > { %4910 = vmatpush1.msra.mxu0 %v4641_v32  ;;  %4981 = vmatpush1.msra.mxu1 %v4769_v54  ;;  %v4865_v32 = vld [vmem:[#allocation33 + $0x760] sm:$0xff]  ;;  %v4694_v57 = vld [vmem:[#allocation33 + $0x208] sm:$0xff]  ;;  %v4692_v54 = vld [vmem:[#allocation33 + $0x1f8] sm:$0xff] }
 0xdd5   : > { %4911 = vmatprep.subr.mxu0 %v4638_v8  ;;  %4982 = vmatprep.subr.mxu1 %v4766_v6  ;;  %v4862_v8 = vld [vmem:[#allocation33 + $0x748] sm:$0xff]  ;;  %v4693_v17 = vld [vmem:[#allocation33 + $0x200] sm:$0xff] }
 0xdd6   : > { %4912 = vmatpush1.msra.mxu0 %v4637_v11  ;;  %4983 = vmatpush1.msra.mxu1 %v4765_v59  ;;  %v4861_v11 = vld [vmem:[#allocation33 + $0x740] sm:$0xff]  ;;  %v4838_v6 = vld [vmem:[#allocation33 + $0x688] sm:$0xff] }
 0xdd7   : > { %4913 = vmatprep.subr.mxu0 %v4634_v2  ;;  %4984 = vmatprep.subr.mxu1 %v4762_v61  ;;  %v4858_v2 = vld [vmem:[#allocation33 + $0x728] sm:$0xff] }
 0xdd8   : > { %4914 = vmatpush1.msra.mxu0 %v4633_v25  ;;  %4985 = vmatpush1.msra.mxu1 %v4761_v15  ;;  %v4857_v25 = vld [vmem:[#allocation33 + $0x720] sm:$0xff]  ;;  %v4834_v59 = vld [vmem:[#allocation33 + $0x668] sm:$0xff] }
 0xdd9   : > { %4915 = vmatprep.subr.mxu0 %v4630_v40  ;;  %4986 = vmatprep.subr.mxu1 %v4758_v31  ;;  %v4854_v40 = vld [vmem:[#allocation33 + $0x708] sm:$0xff] }
 0xdda   : > { %4916 = vmatpush1.msra.mxu0 %v4629_v39  ;;  %4987 = vmatpush1.msra.mxu1 %v4757_v30  ;;  %v4853_v39 = vld [vmem:[#allocation33 + $0x700] sm:$0xff]  ;;  %v4830_v61 = vld [vmem:[#allocation33 + $0x648] sm:$0xff]  ;;  %v4820_v30 = vld [vmem:[#allocation33 + $0x5f8] sm:$0xff] }
 0xddb   : > { %4917 = vmatprep.subr.mxu0 %v4754_v50  ;;  %4988 = vmatprep.subr.mxu1 %v4882_v34  ;;  %v4850_v50 = vld [vmem:[#allocation33 + $0x6e8] sm:$0xff] }
 0xddc   : > { %4918 = vmatpush2.msra.mxu0 %v4753_v18  ;;  %4989 = vmatpush2.msra.mxu1 %v4881_v22  ;;  %v4849_v18 = vld [vmem:[#allocation33 + $0x6e0] sm:$0xff]  ;;  %v4826_v15 = vld [vmem:[#allocation33 + $0x628] sm:$0xff] }
 0xddd   : > { %4919 = vmatprep.subr.mxu0 %v4750_v21  ;;  %4990 = vmatprep.subr.mxu1 %v4878_v49  ;;  %v4846_v21 = vld [vmem:[#allocation33 + $0x6c8] sm:$0xff] }
 0xdde   : > { %4920 = vmatpush2.msra.mxu0 %v4749_v23  ;;  %4991 = vmatpush2.msra.mxu1 %v4877_v53  ;;  %v4845_v23 = vld [vmem:[#allocation33 + $0x6c0] sm:$0xff]  ;;  %v4822_v31 = vld [vmem:[#allocation33 + $0x608] sm:$0xff] }
 0xddf   : > { %4921 = vmatprep.subr.mxu0 %v4746_v5  ;;  %4992 = vmatprep.subr.mxu1 %v4874_v55  ;;  %v4842_v5 = vld [vmem:[#allocation33 + $0x6a8] sm:$0xff] }
 0xde0   : > { %4922 = vmatpush2.msra.mxu0 %v4745_v27  ;;  %4993 = vmatpush2.msra.mxu1 %v4873_v63  ;;  %v4841_v27 = vld [vmem:[#allocation33 + $0x6a0] sm:$0xff] }
 0xde1   : > { %4923 = vmatprep.subr.mxu0 %v4742_v48  ;;  %4994 = vmatprep.subr.mxu1 %v4870_v46  ;;  %v4837_v48 = vld [vmem:[#allocation33 + $0x680] sm:$0xff] }
 0xde2   : > { %4924 = vmatpush2.msra.mxu0 %v4741_v52  ;;  %4995 = vmatpush2.msra.mxu1 %v4869_v28  ;;  %v4833_v52 = vld [vmem:[#allocation33 + $0x660] sm:$0xff] }
 0xde3   : > { %4925 = vmatprep.subr.mxu0 %v4738_v29  ;;  %4996 = vmatprep.subr.mxu1 %v4866_v4  ;;  %v4829_v29 = vld [vmem:[#allocation33 + $0x640] sm:$0xff] }
 0xde4   : > { %4926 = vmatpush2.msra.mxu0 %v4737_v10  ;;  %4997 = vmatpush2.msra.mxu1 %v4865_v32  ;;  %v4825_v10 = vld [vmem:[#allocation33 + $0x620] sm:$0xff]  ;;  %v4688_v32 = vld [vmem:[#allocation33 + $0x1d8] sm:$0xff] }
 0xde5   : > { %4927 = vmatprep.subr.mxu0 %v4734_v33  ;;  %4998 = vmatprep.subr.mxu1 %v4862_v8  ;;  %v4821_v33 = vld [vmem:[#allocation33 + $0x600] sm:$0xff]  ;;  %v4683_v8 = vld [vmem:[#allocation33 + $0x1b0] sm:$0xff] }
 0xde6   : > { %4928 = vmatpush2.msra.mxu0 %v4733_v36  ;;  %4999 = vmatpush2.msra.mxu1 %v4861_v11  ;;  %v8580_v36 = vld [vmem:[#allocation30] sm:$0xf] }
 0xde7   : > { %4929 = vmatprep.subr.mxu0 %v4730_v45  ;;  %5000 = vmatprep.subr.mxu1 %v4858_v2  ;;  %v4578_v34 = vrot.slane %v8580_v36, %v8547_v1  ;;  %v8584_v45 = vld [vmem:[#allocation31] sm:$0xf] }
 0xde8   : > { %4930 = vmatpush2.msra.mxu0 %v4729_v41  ;;  %5001 = vmatpush2.msra.mxu1 %v4857_v25  ;;  %v4604_v53 = vrot.slane %v8584_v45, %v8547_v1  ;;  %v4687_v1 = vld [vmem:[#allocation33 + $0x1d0] sm:$0xff]  ;;  %v4676_v11 = vld [vmem:[#allocation33 + $0x178] sm:$0xff] }
 0xde9   : > { %4931 = vmatprep.subr.mxu0 %v4726_v16  ;;  %5002 = vmatprep.subr.mxu1 %v4854_v40  ;;  %v4582_v16 = vrot.slane %v8580_v36, %v8553_v44  ;;  %v4672_v2 = vld [vmem:[#allocation33 + $0x158] sm:$0xff] }
 0xdea   : > { %4932 = vmatpush2.msra.mxu0 %v4725_v51  ;;  %5003 = vmatpush2.msra.mxu1 %v4853_v39  ;;  %v4668_v25 = vld [vmem:[#allocation33 + $0x138] sm:$0xff] }
 0xdeb   : > { %4933 = vmatprep.subr.mxu0 %v4722_v56  ;;  %5004 = vmatprep.subr.mxu1 %v4850_v50  ;;  %v4664_v40 = vld [vmem:[#allocation33 + $0x118] sm:$0xff] }
 0xdec   : > { %4934 = vmatpush2.msra.mxu0 %v4721_v0  ;;  %5005 = vmatpush2.msra.mxu1 %v4849_v18  ;;  %v4608_v0 = vrot.slane %v8584_v45, %v8553_v44  ;;  %v4680_v44 = vld [vmem:[#allocation33 + $0x198] sm:$0xff] }
 0xded   : > { %4935 = vmatprep.subr.mxu0 %v4718_v24  ;;  %5006 = vmatprep.subr.mxu1 %v4846_v21  ;;  %v4660_v39 = vld [vmem:[#allocation33 + $0xf8] sm:$0xff] }
 0xdee   : > { %4936 = vmatpush2.msra.mxu0 %v4717_v3  ;;  %5007 = vmatpush2.msra.mxu1 %v4845_v23  ;;  %v4656_v50 = vld [vmem:[#allocation33 + $0xd8] sm:$0xff] }
 0xdef   : > { %4937 = vmatprep.subr.mxu0 %v4714_v35  ;;  %5008 = vmatprep.subr.mxu1 %v4842_v5  ;;  %v4691_v35 = vld [vmem:[#allocation33 + $0x1f0] sm:$0xff]  ;;  %v4652_v18 = vld [vmem:[#allocation33 + $0xb8] sm:$0xff] }
 0xdf0   : > { %4938 = vmatpush2.msra.mxu0 %v4713_v47  ;;  %5009 = vmatpush2.msra.mxu1 %v4841_v27  ;;  %v4684_v47 = vld [vmem:[#allocation33 + $0x1b8] sm:$0xff] }
 0xdf1   : > { %4939 = vmatprep.subr.mxu0 %v4710_v9  ;;  %5010 = vmatprep.subr.mxu1 %v4838_v6  ;;  %v4679_v9 = vld [vmem:[#allocation33 + $0x190] sm:$0xff]  ;;  %v4648_v21 = vld [vmem:[#allocation33 + $0x98] sm:$0xff] }
 0xdf2   : > { %4940 = vmatpush2.msra.mxu0 %v4709_v38  ;;  %5011 = vmatpush2.msra.mxu1 %v4837_v48  ;;  %v4675_v38 = vld [vmem:[#allocation33 + $0x170] sm:$0xff]  ;;  %v4644_v23 = vld [vmem:[#allocation33 + $0x78] sm:$0xff] }
 0xdf3   : > { %4941 = vmatprep.subr.mxu0 %v4706_v42  ;;  %5012 = vmatprep.subr.mxu1 %v4834_v59  ;;  %v4671_v42 = vld [vmem:[#allocation33 + $0x150] sm:$0xff]  ;;  %v4640_v5 = vld [vmem:[#allocation33 + $0x58] sm:$0xff] }
 0xdf4   : > { %4942 = vmatpush2.msra.mxu0 %v4705_v20  ;;  %5013 = vmatpush2.msra.mxu1 %v4833_v52  ;;  %v4667_v20 = vld [vmem:[#allocation33 + $0x130] sm:$0xff]  ;;  %v4636_v27 = vld [vmem:[#allocation33 + $0x38] sm:$0xff] }
 0xdf5   : > { %4943 = vmatprep.subr.mxu0 %v4702_v14  ;;  %5014 = vmatprep.subr.mxu1 %v4830_v61  ;;  %v4663_v14 = vld [vmem:[#allocation33 + $0x110] sm:$0xff]  ;;  %v4632_v48 = vld [vmem:[#allocation33 + $0x18] sm:$0xff] }
 0xdf6   : > { %4944 = vmatpush2.msra.mxu0 %v4701_v12  ;;  %5015 = vmatpush2.msra.mxu1 %v4829_v29  ;;  %v4659_v12 = vld [vmem:[#allocation33 + $0xf0] sm:$0xff]  ;;  %v4756_v52 = vld [vmem:[#allocation33 + $0x3f8] sm:$0xff] }
 0xdf7   : > { %4945 = vmatprep.subr.mxu0 %v4698_v7  ;;  %5016 = vmatprep.subr.mxu1 %v4826_v15  ;;  %v4655_v7 = vld [vmem:[#allocation33 + $0xd0] sm:$0xff]  ;;  %v4752_v29 = vld [vmem:[#allocation33 + $0x3d8] sm:$0xff] }
 0xdf8   : > { %4946 = vmatpush2.msra.mxu0 %v4697_v19  ;;  %5017 = vmatpush2.msra.mxu1 %v4825_v10  ;;  %v4651_v19 = vld [vmem:[#allocation33 + $0xb0] sm:$0xff]  ;;  %v4748_v10 = vld [vmem:[#allocation33 + $0x3b8] sm:$0xff] }
 0xdf9   : > { %4947 = vmatprep.subr.mxu0 %v4694_v57  ;;  %5018 = vmatprep.subr.mxu1 %v4822_v31  ;;  %v4647_v57 = vld [vmem:[#allocation33 + $0x90] sm:$0xff] }
 0xdfa   : > { %4948 = vmatpush2.msra.mxu0 %v4693_v17  ;;  %5019 = vmatpush2.msra.mxu1 %v4821_v33  ;;  %v4643_v17 = vld [vmem:[#allocation33 + $0x70] sm:$0xff]  ;;  %v4744_v33 = vld [vmem:[#allocation33 + $0x398] sm:$0xff] }
 0xdfb   : > { %5027 = vmatprep.subr.mxu0 %v4692_v54  ;;  %5098 = vmatprep.subr.mxu1 %v4820_v30  ;;  %v4639_v54 = vld [vmem:[#allocation33 + $0x50] sm:$0xff] }
 0xdfc   : > { %v4635_v6 = vld [vmem:[#allocation33 + $0x30] sm:$0xff] }
 0xdfd   : > { %v4631_v59 = vld [vmem:[#allocation33 + $0x10] sm:$0xff] }
 0xdfe   : > { %v4755_v61 = vld [vmem:[#allocation33 + $0x3f0] sm:$0xff] }
 0xdff   : > { %v4751_v15 = vld [vmem:[#allocation33 + $0x3d0] sm:$0xff] }
 0xe00   : > { %v4747_v31 = vld [vmem:[#allocation33 + $0x3b0] sm:$0xff] }
 0xe01   : > { %v4743_v30 = vld [vmem:[#allocation33 + $0x390] sm:$0xff] }
 0xe39   : > { %v4355_v22 = vpop.f32.mrf.mxu0  ;;  %v4426_v41 = vpop.f32.mrf.mxu1 }
 0xe3a   : > { %v4427_v49 = vadd.f32 %v4426_v41, %v4355_v22  ;;  %v4739_v22 = vld [vmem:[#allocation33 + $0x370] sm:$0xff]  ;;  %v4736_v41 = vld [vmem:[#allocation33 + $0x358] sm:$0xff] }
 0xe3b   : > { %v4357_v51 = vpop.f32.mrf.mxu0  ;;  %v4428_v55 = vpop.f32.mrf.mxu1 }
 0xe3c   : > { %v4595_v56 = vmul.f32 %v4578_v34, %v4427_v49  ;;  %v4429_v63 = vadd.f32 %v4428_v55, %v4357_v51  ;;  %v4740_v34 = vld [vmem:[#allocation33 + $0x378] sm:$0xff]  ;;  %v4735_v49 = vld [vmem:[#allocation33 + $0x350] sm:$0xff] }
 0xe3d   : > { %v4728_v51 = vld [vmem:[#allocation33 + $0x318] sm:$0xff]  ;;  %v4727_v55 = vld [vmem:[#allocation33 + $0x310] sm:$0xff] }
 0xe3e   : > { %v4596_v46 = vmul.f32 %v4582_v16, %v4429_v63  ;;  %v8592_v24 = vadd.f32 %v4604_v53, %v4595_v56  ;;  %v4732_v16 = vld [vmem:[#allocation33 + $0x338] sm:$0xff]  ;;  %v4731_v53 = vld [vmem:[#allocation33 + $0x330] sm:$0xff] }
 0xe3f   : > { %v4724_v56 = vld [vmem:[#allocation33 + $0x2f8] sm:$0xff]  ;;  %v4723_v63 = vld [vmem:[#allocation33 + $0x2f0] sm:$0xff] }
 0xe40   : > { %v4622_v28 = vadd.f32 %v4608_v0, %v4596_v46  ;;  %v4625_v4 = vmax.f32 %v8592_v24, 0.0  ;;  %v4720_v0 = vld [vmem:[#allocation33 + $0x2d8] sm:$0xff]  ;;  %v4719_v46 = vld [vmem:[#allocation33 + $0x2d0] sm:$0xff] }
 0xe41   : > { %v4807_v24 = vld [vmem:[#allocation33 + $0x590] sm:$0xff] }
 0xe42   : > { %v4626_v3 = vmax.f32 %v4622_v28, 0.0  ;;  %v4716_v28 = vld [vmem:[#allocation33 + $0x2b8] sm:$0xff] }
 0xe44   : > { %4949 = vmatprep.mubr.f32.mxu0 %v4626_v3 }
 0xe45   : > { %4950 = vmatmul.mubr.f32.vlgmr.msra.gmra.mxu0 %v4625_v4 }
 0xe46   : > { %5028 = vmatpush1.msra.mxu0 %v4691_v35  ;;  %5091 = vmatprep.mubr.f32.mxu0 %v4626_v3  ;;  %v4715_v3 = vld [vmem:[#allocation33 + $0x2b0] sm:$0xff]  ;;  %v4712_v35 = vld [vmem:[#allocation33 + $0x298] sm:$0xff] }
 0xe47   : > { %5029 = vmatprep.subr.mxu0 %v4688_v32  ;;  %v4586_v32 = vrot.slane %v8580_v36, %v8550_v43 }
 0xe48   : > { %5030 = vmatpush1.msra.mxu0 %v4687_v1  ;;  %v4711_v1 = vld [vmem:[#allocation33 + $0x290] sm:$0xff] }
 0xe49   : > { %5031 = vmatprep.subr.mxu0 %v4684_v47 }
 0xe4a   : > { %5032 = vmatpush1.msra.mxu0 %v4683_v8 }
 0xe4b   : > { %5033 = vmatprep.subr.mxu0 %v4680_v44  ;;  %v4708_v44 = vld [vmem:[#allocation33 + $0x278] sm:$0xff] }
 0xe4c   : > { %5034 = vmatpush1.msra.mxu0 %v4679_v9 }
 0xe4d   : > { %5035 = vmatprep.subr.mxu0 %v4676_v11  ;;  %v4590_v11 = vrot.slane %v8580_v36, %v8556_v26 }
 0xe4e   : > { %5036 = vmatpush1.msra.mxu0 %v4675_v38  ;;  %v4707_v38 = vld [vmem:[#allocation33 + $0x270] sm:$0xff] }
 0xe4f   : > { %5037 = vmatprep.subr.mxu0 %v4672_v2  ;;  %v4612_v2 = vrot.slane %v8584_v45, %v8550_v43  ;;  %v4696_v43 = vld [vmem:[#allocation33 + $0x218] sm:$0xff] }
 0xe50   : > { %5038 = vmatpush1.msra.mxu0 %v4671_v42 }
 0xe51   : > { %5039 = vmatprep.subr.mxu0 %v4668_v25 }
 0xe52   : > { %5040 = vmatpush1.msra.mxu0 %v4667_v20  ;;  %v4704_v20 = vld [vmem:[#allocation33 + $0x258] sm:$0xff] }
 0xe53   : > { %5041 = vmatprep.subr.mxu0 %v4664_v40 }
 0xe54   : > { %5042 = vmatpush1.msra.mxu0 %v4663_v14 }
 0xe55   : > { %5043 = vmatprep.subr.mxu0 %v4660_v39  ;;  %v4703_v39 = vld [vmem:[#allocation33 + $0x250] sm:$0xff] }
 0xe56   : > { %5044 = vmatpush1.msra.mxu0 %v4659_v12  ;;  %v4616_v12 = vrot.slane %v8584_v45, %v8556_v26  ;;  %v4819_v26 = vld [vmem:[#allocation33 + $0x5f0] sm:$0xff]  ;;  %v4816_v45 = vld [vmem:[#allocation33 + $0x5d8] sm:$0xff] }
 0xe57   : > { %5045 = vmatprep.subr.mxu0 %v4656_v50  ;;  %v4700_v50 = vld [vmem:[#allocation33 + $0x238] sm:$0xff] }
 0xe58   : > { %5046 = vmatpush1.msra.mxu0 %v4655_v7  ;;  %v4699_v7 = vld [vmem:[#allocation33 + $0x230] sm:$0xff] }
 0xe59   : > { %5047 = vmatprep.subr.mxu0 %v4652_v18 }
 0xe5a   : > { %5048 = vmatpush1.msra.mxu0 %v4651_v19 }
 0xe5b   : > { %5049 = vmatprep.subr.mxu0 %v4648_v21  ;;  %v4695_v21 = vld [vmem:[#allocation33 + $0x210] sm:$0xff] }
 0xe5c   : > { %5050 = vmatpush1.msra.mxu0 %v4647_v57 }
 0xe5d   : > { %5051 = vmatprep.subr.mxu0 %v4644_v23  ;;  %v5195_v23 = vld [vmem:[%s8795_s15 + $0x18] sm:$0xff] }
 0xe5e   : > { %5052 = vmatpush1.msra.mxu0 %v4643_v17 }
 0xe5f   : > { %5053 = vmatprep.subr.mxu0 %v4640_v5  ;;  %v4815_v5 = vld [vmem:[#allocation33 + $0x5d0] sm:$0xff] }
 0xe60   : > { %5054 = vmatpush1.msra.mxu0 %v4639_v54  ;;  %v5194_v54 = vld [vmem:[%s8796_s8 + $0x10] sm:$0xff] }
 0xe61   : > { %5055 = vmatprep.subr.mxu0 %v4636_v27  ;;  %v4812_v27 = vld [vmem:[#allocation33 + $0x5b8] sm:$0xff] }
 0xe62   : > { %5056 = vmatpush1.msra.mxu0 %v4635_v6  ;;  %v4811_v6 = vld [vmem:[#allocation33 + $0x5b0] sm:$0xff] }
 0xe63   : > { %5057 = vmatprep.subr.mxu0 %v4632_v48  ;;  %v5193_v48 = vld [vmem:[%s8796_s8 + $0x8] sm:$0xff] }
 0xe64   : > { %5058 = vmatpush1.msra.mxu0 %v4631_v59  ;;  %v4808_v59 = vld [vmem:[#allocation33 + $0x598] sm:$0xff] }
 0xe65   : > { %5059 = vmatprep.subr.mxu0 %v4756_v52  ;;  %v4804_v52 = vld [vmem:[#allocation33 + $0x578] sm:$0xff] }
 0xe66   : > { %5060 = vmatpush2.msra.mxu0 %v4755_v61  ;;  %v4803_v61 = vld [vmem:[#allocation33 + $0x570] sm:$0xff] }
 0xe67   : > { %5061 = vmatprep.subr.mxu0 %v4752_v29  ;;  %v4800_v29 = vld [vmem:[#allocation33 + $0x558] sm:$0xff] }
 0xe68   : > { %5062 = vmatpush2.msra.mxu0 %v4751_v15  ;;  %v4799_v15 = vld [vmem:[#allocation33 + $0x550] sm:$0xff] }
 0xe69   : > { %5063 = vmatprep.subr.mxu0 %v4748_v10  ;;  %v4796_v10 = vld [vmem:[#allocation33 + $0x538] sm:$0xff] }
 0xe6a   : > { %5064 = vmatpush2.msra.mxu0 %v4747_v31  ;;  %v4795_v31 = vld [vmem:[#allocation33 + $0x530] sm:$0xff] }
 0xe6b   : > { %5065 = vmatprep.subr.mxu0 %v4744_v33  ;;  %v4792_v33 = vld [vmem:[#allocation33 + $0x518] sm:$0xff] }
 0xe6c   : > { %5066 = vmatpush2.msra.mxu0 %v4743_v30  ;;  %v4791_v30 = vld [vmem:[#allocation33 + $0x510] sm:$0xff] }
 0xe6d   : > { %5067 = vmatprep.subr.mxu0 %v4740_v34  ;;  %v4788_v34 = vld [vmem:[#allocation33 + $0x4f8] sm:$0xff] }
 0xe6e   : > { %5068 = vmatpush2.msra.mxu0 %v4739_v22  ;;  %v4784_v22 = vld [vmem:[#allocation33 + $0x4d8] sm:$0xff] }
 0xe6f   : > { %5069 = vmatprep.subr.mxu0 %v4736_v41  ;;  %v4780_v41 = vld [vmem:[#allocation33 + $0x4b8] sm:$0xff] }
 0xe70   : > { %5070 = vmatpush2.msra.mxu0 %v4735_v49  ;;  %v4779_v49 = vld [vmem:[#allocation33 + $0x4b0] sm:$0xff] }
 0xe71   : > { %5071 = vmatprep.subr.mxu0 %v4732_v16  ;;  %v4775_v16 = vld [vmem:[#allocation33 + $0x490] sm:$0xff] }
 0xe72   : > { %5072 = vmatpush2.msra.mxu0 %v4731_v53  ;;  %v4772_v53 = vld [vmem:[#allocation33 + $0x478] sm:$0xff] }
 0xe73   : > { %5073 = vmatprep.subr.mxu0 %v4728_v51  ;;  %v4771_v51 = vld [vmem:[#allocation33 + $0x470] sm:$0xff] }
 0xe74   : > { %5074 = vmatpush2.msra.mxu0 %v4727_v55  ;;  %v4767_v55 = vld [vmem:[#allocation33 + $0x450] sm:$0xff] }
 0xe75   : > { %5075 = vmatprep.subr.mxu0 %v4724_v56  ;;  %v4764_v56 = vld [vmem:[#allocation33 + $0x438] sm:$0xff] }
 0xe76   : > { %5076 = vmatpush2.msra.mxu0 %v4723_v63  ;;  %v4763_v63 = vld [vmem:[#allocation33 + $0x430] sm:$0xff] }
 0xe77   : > { %5077 = vmatprep.subr.mxu0 %v4720_v0  ;;  %v4760_v0 = vld [vmem:[#allocation33 + $0x418] sm:$0xff] }
 0xe78   : > { %5078 = vmatpush2.msra.mxu0 %v4719_v46  ;;  %v4759_v46 = vld [vmem:[#allocation33 + $0x410] sm:$0xff] }
 0xe79   : > { %5079 = vmatprep.subr.mxu0 %v4716_v28  ;;  %v4884_v28 = vld [vmem:[#allocation33 + $0x7f8] sm:$0xff] }
 0xe7a   : > { %v4497_v47 = vpop.f32.mrf.mxu0  ;;  %v4568_v8 = vpop.f32.mrf.mxu1  ;;  %5080 = vmatpush2.msra.mxu0 %v4715_v3  ;;  %v4883_v3 = vld [vmem:[#allocation33 + $0x7f0] sm:$0xff] }
 0xe7b   : > { %v4569_v9 = vadd.f32 %v4568_v8, %v4497_v47  ;;  %5081 = vmatprep.subr.mxu0 %v4712_v35  ;;  %v4880_v35 = vld [vmem:[#allocation33 + $0x7d8] sm:$0xff]  ;;  %v4875_v47 = vld [vmem:[#allocation33 + $0x7b0] sm:$0xff] }
 0xe7c   : > { %v4499_v42 = vpop.f32.mrf.mxu0  ;;  %v4570_v25 = vpop.f32.mrf.mxu1  ;;  %5082 = vmatpush2.msra.mxu0 %v4711_v1  ;;  %v4876_v1 = vld [vmem:[#allocation33 + $0x7b8] sm:$0xff] }
 0xe7d   : > { %v4597_v40 = vmul.f32 %v4586_v32, %v4569_v9  ;;  %v4571_v14 = vadd.f32 %v4570_v25, %v4499_v42  ;;  %5083 = vmatprep.subr.mxu0 %v4708_v44  ;;  %v4879_v32 = vld [vmem:[#allocation33 + $0x7d0] sm:$0xff]  ;;  %v4872_v8 = vld [vmem:[#allocation33 + $0x798] sm:$0xff] }
 0xe7e   : > { %5084 = vmatpush2.msra.mxu0 %v4707_v38  ;;  %v4871_v44 = vld [vmem:[#allocation33 + $0x790] sm:$0xff]  ;;  %v4868_v9 = vld [vmem:[#allocation33 + $0x778] sm:$0xff] }
 0xe7f   : > { %v4598_v36 = vmul.f32 %v4590_v11, %v4571_v14  ;;  %5085 = vmatprep.subr.mxu0 %v4704_v20  ;;  %v8605_v18 = vadd.f32 %v4612_v2, %v4597_v40  ;;  %v4867_v11 = vld [vmem:[#allocation33 + $0x770] sm:$0xff]  ;;  %v4864_v38 = vld [vmem:[#allocation33 + $0x758] sm:$0xff] }
 0xe80   : > { %5086 = vmatpush2.msra.mxu0 %v4703_v39  ;;  %v4863_v2 = vld [vmem:[#allocation33 + $0x750] sm:$0xff]  ;;  %v4860_v42 = vld [vmem:[#allocation33 + $0x738] sm:$0xff] }
 0xe81   : > { %5087 = vmatprep.subr.mxu0 %v4700_v50  ;;  %v4624_v19 = vadd.f32 %v4616_v12, %v4598_v36  ;;  %v4627_v17 = vmax.f32 %v8605_v18, 0.0  ;;  %v4859_v25 = vld [vmem:[#allocation33 + $0x730] sm:$0xff]  ;;  %v4856_v20 = vld [vmem:[#allocation33 + $0x718] sm:$0xff] }
 0xe82   : > { %5088 = vmatpush2.msra.mxu0 %v4699_v7  ;;  %v4855_v40 = vld [vmem:[#allocation33 + $0x710] sm:$0xff]  ;;  %v4852_v14 = vld [vmem:[#allocation33 + $0x6f8] sm:$0xff] }
 0xe83   : > { %5089 = vmatprep.subr.mxu0 %v4696_v43  ;;  %v4628_v57 = vmax.f32 %v4624_v19, 0.0  ;;  %v4851_v39 = vld [vmem:[#allocation33 + $0x6f0] sm:$0xff]  ;;  %v4848_v12 = vld [vmem:[#allocation33 + $0x6d8] sm:$0xff] }
 0xe84   : > { %5090 = vmatpush2.msra.mxu0 %v4695_v21  ;;  %v4847_v50 = vld [vmem:[#allocation33 + $0x6d0] sm:$0xff]  ;;  %v4844_v36 = vld [vmem:[#allocation33 + $0x6b8] sm:$0xff] }
 0xe85   : > { %5020 = vmatprep.mubr.f32.mxu1 %v4628_v57  ;;  %5092 = vmatmul.mubr.f32.vlgmr.msra.gmra.mxu0 %v4625_v4  ;;  %v5192_v4 = vld [vmem:[%s8796_s8] sm:$0xff]  ;;  %v4843_v7 = vld [vmem:[#allocation33 + $0x6b0] sm:$0xff] }
 0xe86   : > { %5021 = vmatmul.mubr.f32.vlgmr.msra.gmra.mxu1 %v4627_v17  ;;  %6395 = vmatprep.subr.mxu0 %v5195_v23  ;;  %v4840_v43 = vld [vmem:[#allocation33 + $0x698] sm:$0xff]  ;;  %v4839_v19 = vld [vmem:[#allocation33 + $0x690] sm:$0xff] }
 0xe87   : > { %5099 = vmatpush1.msra.mxu1 %v4819_v26  ;;  %5162 = vmatprep.mubr.f32.mxu1 %v4628_v57  ;;  %v4836_v21 = vld [vmem:[#allocation33 + $0x678] sm:$0xff]  ;;  %v4835_v57 = vld [vmem:[#allocation33 + $0x670] sm:$0xff] }
 0xe88   : > { %5100 = vmatprep.subr.mxu1 %v4816_v45  ;;  %6396 = vmatpush3.msra.mxu0 %v5195_v23  ;;  %v4832_v23 = vld [vmem:[#allocation33 + $0x658] sm:$0xff]  ;;  %v4831_v26 = vld [vmem:[#allocation33 + $0x650] sm:$0xff] }
 0xe89   : > { %5101 = vmatpush1.msra.mxu1 %v4815_v5  ;;  %6397 = vmatprep.subr.mxu0 %v5194_v54  ;;  %v4828_v45 = vld [vmem:[#allocation33 + $0x638] sm:$0xff]  ;;  %v4827_v5 = vld [vmem:[#allocation33 + $0x630] sm:$0xff] }
 0xe8a   : > { %5102 = vmatprep.subr.mxu1 %v4812_v27  ;;  %6398 = vmatpush3.msra.mxu0 %v5194_v54  ;;  %v4824_v54 = vld [vmem:[#allocation33 + $0x618] sm:$0xff]  ;;  %v4823_v27 = vld [vmem:[#allocation33 + $0x610] sm:$0xff] }
 0xe8b   : > { %5103 = vmatpush1.msra.mxu1 %v4811_v6  ;;  %6399 = vmatprep.subr.mxu0 %v5193_v48  ;;  %v5305_v6 = vld [vmem:[#allocation22 + $0x8] sm:$0xff] }
 0xe8c   : > { %5104 = vmatprep.subr.mxu1 %v4808_v59  ;;  %6400 = vmatpush3.msra.mxu0 %v5193_v48  ;;  %v5304_v48 = vld [vmem:[#allocation22] sm:$0xff] }
 0xe8d   : > { %5105 = vmatpush1.msra.mxu1 %v4807_v24  ;;  %6401 = vmatprep.subr.mxu0 %v5192_v4 }
 0xe8e   : > { %5106 = vmatprep.subr.mxu1 %v4804_v52  ;;  %6402 = vmatpush3.msra.mxu0 %v5192_v4 }
 0xe8f   : > { %6403 = vmatprep.mubr.msk.f32.mxu0 %vm1508_vm2, %v8510_v13  ;;  %5107 = vmatpush1.msra.mxu1 %v4803_v61  ;;  %v4787_v13 = vld [vmem:[#allocation33 + $0x4f0] sm:$0xff]  ;;  %v6064_v61 = vld [vmem:[%s8797_s4] ss:$0 sm:$0xff] }
 0xe90   : > { %6404 = vmatmul.mubr.msk.f32.vlgmr.msra.gmra.mxu0 %vm1508_vm2, %v8506_v37  ;;  %5108 = vmatprep.subr.mxu1 %v4800_v29  ;;  %v4783_v37 = vld [vmem:[#allocation33 + $0x4d0] sm:$0xff] }
 0xe91   : > { %5109 = vmatpush1.msra.mxu1 %v4799_v15  ;;  %6406 = vmatprep.mubr.msk.f32.mxu0 %vm1508_vm2, %v8518_v60  ;;  %v4776_v60 = vld [vmem:[#allocation33 + $0x498] sm:$0xff] }
 0xe92   : > { %5110 = vmatprep.subr.mxu1 %v4796_v10 }
 0xe93   : > { %5111 = vmatpush1.msra.mxu1 %v4795_v31 }
 0xe94   : > { %6407 = vmatmul.mubr.msk.f32.gmra.mxu0 %vm1508_vm2, %v8514_v58  ;;  %5112 = vmatprep.subr.mxu1 %v4792_v33  ;;  %v4768_v58 = vld [vmem:[#allocation33 + $0x458] sm:$0xff]  ;;  %vm5463_vm2 = vcmask 910080  }
 0xe95   : > { %5113 = vmatpush1.msra.mxu1 %v4791_v30 }
 0xe96   : > { %5114 = vmatprep.subr.mxu1 %v4788_v34 }
 0xe97   : > { %5115 = vmatpush1.msra.mxu1 %v4787_v13 }
 0xe98   : > { %5116 = vmatprep.subr.mxu1 %v4784_v22 }
 0xe99   : > { %5117 = vmatpush1.msra.mxu1 %v4783_v37 }
 0xe9a   : > { %5118 = vmatprep.subr.mxu1 %v4780_v41 }
 0xe9b   : > { %5119 = vmatpush1.msra.mxu1 %v4779_v49  ;;  %v7484_v49 = vmov 1983009808  }
 0xe9c   : > { %5120 = vmatprep.subr.mxu1 %v4776_v60  ;;  %v5176_v60 = vunpack.c.l.s4 %v7484_v49 }
 0xe9d   : > { %5121 = vmatpush1.msra.mxu1 %v4775_v16 }
 0xe9e   : > { %5122 = vmatprep.subr.mxu1 %v4772_v53 }
 0xe9f   : > { %5123 = vmatpush1.msra.mxu1 %v4771_v51  ;;  %v5177_v51 = vunpack.c.0.s8 %v5176_v60 }
 0xea0   : > { %5124 = vmatprep.subr.mxu1 %v4768_v58 }
 0xea1   : > { %5125 = vmatpush1.msra.mxu1 %v4767_v55 }
 0xea2   : > { %5126 = vmatprep.subr.mxu1 %v4764_v56 }
 0xea3   : > { %5127 = vmatpush1.msra.mxu1 %v4763_v63 }
 0xea4   : > { %5128 = vmatprep.subr.mxu1 %v4760_v0  ;;  %v5180_v0 = vsub.s32 %v5177_v51, %v8544_v62 }
 0xea5   : > { %5129 = vmatpush1.msra.mxu1 %v4759_v46 }
 0xea6   : > { %5130 = vmatprep.subr.mxu1 %v4884_v28 }
 0xea7   : > { %5131 = vmatpush2.msra.mxu1 %v4883_v3 }
 0xea8   : > { %5132 = vmatprep.subr.mxu1 %v4880_v35 }
 0xea9   : > { %5133 = vmatpush2.msra.mxu1 %v4879_v32 }
 0xeaa   : > { %5134 = vmatprep.subr.mxu1 %v4876_v1 }
 0xeab   : > { %5135 = vmatpush2.msra.mxu1 %v4875_v47  ;;  %v6069_v47 = vld [vmem:[#allocation24] ss:$0 sm:$0xff] }
 0xeac   : > { %5136 = vmatprep.subr.mxu1 %v4872_v8 }
 0xead   : > { %5137 = vmatpush2.msra.mxu1 %v4871_v44 }
 0xeae   : > { %5138 = vmatprep.subr.mxu1 %v4868_v9 }
 0xeaf   : > { %5139 = vmatpush2.msra.mxu1 %v4867_v11 }
 0xeb0   : > { %5140 = vmatprep.subr.mxu1 %v4864_v38 }
 0xeb1   : > { %5141 = vmatpush2.msra.mxu1 %v4863_v2 }
 0xeb2   : > { %5142 = vmatprep.subr.mxu1 %v4860_v42 }
 0xeb3   : > { %5143 = vmatpush2.msra.mxu1 %v4859_v25 }
 0xeb4   : > { %5144 = vmatprep.subr.mxu1 %v4856_v20 }
 0xeb5   : > { %5145 = vmatpush2.msra.mxu1 %v4855_v40 }
 0xeb6   : > { %5146 = vmatprep.subr.mxu1 %v4852_v14 }
 0xeb7   : > { %5147 = vmatpush2.msra.mxu1 %v4851_v39 }
 0xeb8   : > { %5148 = vmatprep.subr.mxu1 %v4848_v12 }
 0xeb9   : > { %5149 = vmatpush2.msra.mxu1 %v4847_v50 }
 0xeba   : > { %5150 = vmatprep.subr.mxu1 %v4844_v36 }
 0xebb   : > { %5151 = vmatpush2.msra.mxu1 %v4843_v7 }
 0xebc   : > { %5152 = vmatprep.subr.mxu1 %v4840_v43 }
 0xebd   : > { %5153 = vmatpush2.msra.mxu1 %v4839_v19 }
 0xebe   : > { %5154 = vmatprep.subr.mxu1 %v4836_v21 }
 0xebf   : > { %5155 = vmatpush2.msra.mxu1 %v4835_v57 }
 0xec0   : > { %5156 = vmatprep.subr.mxu1 %v4832_v23 }
 0xec1   : > { %5157 = vmatpush2.msra.mxu1 %v4831_v26 }
 0xec2   : > { %5158 = vmatprep.subr.mxu1 %v4828_v45 }
 0xec3   : > { %5159 = vmatpush2.msra.mxu1 %v4827_v5 }
 0xec4   : > { %5160 = vmatprep.subr.mxu1 %v4824_v54 }
 0xec5   : > { %5161 = vmatpush2.msra.mxu1 %v4823_v27 }
 0xec6   : > { %5163 = vmatmul.mubr.f32.vlgmr.msra.gmra.mxu1 %v4627_v17  ;;  %6409 = vmatprep.subr.mxu1 %v5305_v6 }
 0xec7   : > { %6410 = vmatpush3.msra.mxu1 %v5305_v6 }
 0xec8   : > { %6411 = vmatprep.subr.mxu1 %v5304_v48 }
 0xec9   : > { %6412 = vmatpush3.msra.mxu1 %v5304_v48 }
 0xf05   : > { %v4951_v59 = vpop.f32.mrf.mxu0 }
 0xf07   : > { %v4953_v24 = vpop.f32.mrf.mxu0 }
 0xf45   : > { %v5093_v4 = vpop.f32.mrf.mxu0 }
 0xf46   : > { %v5022_v41 = vpop.f32.mrf.mxu1 }
 0xf47   : > { %v5095_v52 = vpop.f32.mrf.mxu0  ;;  %v5023_v55 = vadd.f32 %v5022_v41, %v4951_v59 }
 0xf48   : > { %v5024_v16 = vpop.f32.mrf.mxu1 }
 0xf49   : > { %v5025_v53 = vadd.f32 %v5024_v16, %v4953_v24 }
 0xf4b   : > { %v5173_v63 = vcombine.low %v5023_v55, %v5025_v53 }
 0xf4d   : > { %v5181_v35 = vrot.slane %v5173_v63, %v5180_v0 }
 0xf50   : > { %v6405_v29 = vpop.f32.mrf.mxu0 }
 0xf51   : > { %v5287_v15 = vadd.f32 %v6405_v29, %v6064_v61 }
 0xf52   : > { %v5281_v10 = vpop.f32.mrf.mxu0 }
 0xf53   : > { %v5282_v31 = vadd.f32 %v6064_v61, %v5281_v10  ;;  %v5301_v34 = vmax.f32 %v5287_v15, 0.0 }
 0xf54   : > { %v6408_v33 = vpop.f32.mrf.mxu0 }
 0xf55   : > { %v5300_v30 = vmax.f32 %v5282_v31, 0.0  ;;  %v5297_v18 = vadd.f32 %v6408_v33, %v6064_v61 }
 0xf56   : > { %v5291_v17 = vpop.f32.mrf.mxu0 }
 0xf57   : > { %v5292_v13 = vadd.f32 %v6064_v61, %v5291_v17  ;;  %6413 = vmatprep.mubr.msk.f32.mxu1 %vm2368_vm5, %v5300_v30  ;;  %v5303_v37 = vmax.f32 %v5297_v18, 0.0 }
 0xf58   : > { %6414 = vmatmul.mubr.msk.f32.vlgmr.msra.gmra.mxu1 %vm2368_vm5, %v5301_v34 }
 0xf59   : > { %v5302_v22 = vmax.f32 %v5292_v13, 0.0 }
 0xf5b   : > { %6416 = vmatprep.mubr.msk.f32.mxu1 %vm2368_vm5, %v5302_v22 }
 0xf5c   : > { %6417 = vmatmul.mubr.msk.f32.gmra.mxu1 %vm2368_vm5, %v5303_v37 }
 0xf86   : > { %v5164_v58 = vpop.f32.mrf.mxu1 }
 0xf87   : > { %v5165_v46 = vadd.f32 %v5164_v58, %v5093_v4 }
 0xf88   : > { %v5166_v56 = vpop.f32.mrf.mxu1 }
 0xf89   : > { %v5167_v28 = vadd.f32 %v5166_v56, %v5095_v52 }
 0xf8b   : > { %v5174_v3 = vcombine.low %v5165_v46, %v5167_v28 }
 0xf8d   : > { %v5188_v32 = vrot.slane %v5174_v3, %v5180_v0 }
 0xf8f   : > { %v5189_v1 = vcombine.low %v5181_v35, %v5188_v32 }
 0xf91   : > { %5191 = vst [vmem:[#allocation34] sm:$0xff] %v5189_v1 }
0x1018   : > { %v6415_v8 = vpop.f32.mrf.mxu1 }
0x1019   : > { %v5397_v44 = vadd.f32 %v6415_v8, %v6069_v47 }
0x101a   : > { %v5391_v9 = vpop.f32.mrf.mxu1 }
0x101b   : > { %5411 = vst.msk [vmem:[#allocation35] sm:$0x1] %vm5410_vm12, %v5397_v44  ;;  %v5392_v11 = vadd.f32 %v6069_v47, %v5391_v9 }
0x101c   : > { %v6418_v38 = vpop.f32.mrf.mxu1 }
0x101d   : > { %v5419_v2 = vrot.slane %v5392_v11, %v5180_v0  ;;  %v5445_v42 = vcombine.high %v5392_v11, %v5392_v11  ;;  %v5407_v25 = vadd.f32 %v6418_v38, %v6069_v47 }
0x101e   : > { %v5401_v62 = vpop.f32.mrf.mxu1 }
0x101f   : > { %5475 = vst.msk [vmem:[#allocation35 + $0x1] sm:$0x1] %vm5410_vm12, %v5407_v25  ;;  %v5402_v20 = vadd.f32 %v6069_v47, %v5401_v62  ;;  %5420 = vrot.lane.b32.xlu0 %v5419_v2, %s7485_s1  ;;  %v6074_v40 = vrot.slane %v5419_v2, 9  ;;  %v5452_v14 = vrot.slane %v5445_v42, %v5180_v0  ;;  %v5432_v50 = vcombine.high %v5419_v2, %v5419_v2 }
0x1021   : > { %v5483_v39 = vrot.slane %v5402_v20, %v5180_v0  ;;  %v5505_v12 = vcombine.high %v5402_v20, %v5402_v20  ;;  %5427 = vrot.lane.b32.xlu1 %v6074_v40, %s7486_s10  ;;  %v5465_v36 = vcombine.high %v5452_v14, %v5452_v14  ;;  %v6075_v26 = vrot.slane %v5432_v50, 9 }
0x1022   : > { %v6076_v5 = vrot.slane %v5452_v14, 9 }
0x1023   : > { %5433 = vrot.lane.b32.xlu0 %v5432_v50, %s7487_s5  ;;  %v6078_v7 = vrot.slane %v5483_v39, 9  ;;  %v5512_v43 = vrot.slane %v5505_v12, %v5180_v0  ;;  %v6077_v19 = vrot.slane %v5465_v36, 9  ;;  %v5494_v57 = vcombine.high %v5483_v39, %v5483_v39 }
0x1025   : > { %5490 = vrot.lane.b32.xlu1 %v6078_v7, %s7486_s10  ;;  %v5523_v21 = vcombine.high %v5512_v43, %v5512_v43  ;;  %5474 = vst.msk [vmem:[#allocation35 + $0x2] sm:$0x1] %vm5410_vm12, %v6077_v19  ;;  %v6079_v45 = vrot.slane %v5494_v57, 9  ;;  %v6080_v54 = vrot.slane %v5512_v43, 9 }
0x1027   : > { %5453 = vrot.lane.b32.xlu0 %v5452_v14, %s7488_s21  ;;  %v6081_v23 = vrot.slane %v5523_v21, 9 }
0x1029   : > { %5495 = vrot.lane.b32.xlu1 %v5494_v57, %s7487_s5  ;;  %5531 = vst.msk [vmem:[#allocation35 + $0x3] sm:$0x1] %vm5410_vm12, %v6081_v23 }
0x102b   : > { %5484 = vrot.lane.b32.xlu0 %v5483_v39, %s7485_s1 }
0x102d   : > { %5513 = vrot.lane.b32.xlu1 %v5512_v43, %s7488_s21 }
0x102f   : > { %5440 = vrot.lane.b32.xlu0 %v6075_v26, %s7489_s3 }
0x1031   : > { %5501 = vrot.lane.b32.xlu1 %v6079_v45, %s7489_s3 }
0x1033   : > { %5460 = vrot.lane.b32.xlu0 %v6076_v5, %s7490_s28 }
0x1035   : > { %5519 = vrot.lane.b32.xlu1 %v6080_v54, %s7490_s28 }
0x1037   : > { %5466 = vrot.lane.b32.xlu0 %v5465_v36, %s7491_s24 }
0x1039   : > { %5524 = vrot.lane.b32.xlu1 %v5523_v21, %s7491_s24 }
0x1091   : > { %v5421_v27 = vpop.permute.xlu0 %5420 }
0x1092   : > { %5424 = vst.msk [vmem:[#allocation35] sm:$0x1] %vm5423_vm13, %v5421_v27 }
0x1093   : > { %v5428_v6 = vpop.permute.xlu1 %5427 }
0x1094   : > { %5431 = vst.msk [vmem:[#allocation35] sm:$0x1] %vm5430_vm14, %v5428_v6 }
0x1095   : > { %v5434_v48 = vpop.permute.xlu0 %5433 }
0x1096   : > { %5437 = vst.msk [vmem:[#allocation35] sm:$0x1] %vm5436_vm15, %v5434_v48 }
0x1097   : > { %v5491_v59 = vpop.permute.xlu1 %5490 }
0x1099   : > { %v5454_v24 = vpop.permute.xlu0 %5453 }
0x109b   : > { %v5496_v4 = vpop.permute.xlu1 %5495 }
0x109d   : > { %v5485_v52 = vpop.permute.xlu0 %5484 }
0x109e   : > { %5487 = vst.msk [vmem:[#allocation35 + $0x1] sm:$0x1] %vm5423_vm13, %v5485_v52 }
0x109f   : > { %5493 = vst.msk [vmem:[#allocation35 + $0x1] sm:$0x1] %vm5430_vm14, %v5491_v59  ;;  %v5514_v61 = vpop.permute.xlu1 %5513 }
0x10a0   : > { %5498 = vst.msk [vmem:[#allocation35 + $0x1] sm:$0x1] %vm5436_vm15, %v5496_v4 }
0x10a1   : > { %v5441_v29 = vpop.permute.xlu0 %5440 }
0x10a2   : > { %5444 = vst.msk [vmem:[#allocation35] sm:$0x1] %vm5443_vm0, %v5441_v29 }
0x10a3   : > { %v5502_v15 = vpop.permute.xlu1 %5501  ;;  %5457 = vst.msk [vmem:[#allocation35] sm:$0x1] %vm5456_vm1, %v5454_v24 }
0x10a4   : > { %5504 = vst.msk [vmem:[#allocation35 + $0x1] sm:$0x1] %vm5443_vm0, %v5502_v15 }
0x10a5   : > { %v5461_v10 = vpop.permute.xlu0 %5460  ;;  %5516 = vst.msk [vmem:[#allocation35 + $0x1] sm:$0x1] %vm5456_vm1, %v5514_v61 }
0x10a6   : > { %5464 = vst.msk [vmem:[#allocation35] sm:$0x1] %vm5463_vm2, %v5461_v10 }
0x10a7   : > { %v5520_v31 = vpop.permute.xlu1 %5519 }
0x10a8   : > { %5522 = vst.msk [vmem:[#allocation35 + $0x1] sm:$0x1] %vm5463_vm2, %v5520_v31 }
0x10a9   : > { %v5467_v33 = vpop.permute.xlu0 %5466 }
0x10aa   : > { %5470 = vst.msk [vmem:[#allocation35] sm:$0x1] %vm5469_vm3, %v5467_v33 }
0x10ab   : > { %v5525_v30 = vpop.permute.xlu1 %5524 }
0x10ac   : > { %5527 = vst.msk [vmem:[#allocation35 + $0x1] sm:$0x1] %vm5469_vm3, %v5525_v30 }
0x10ad PF: > { %p6573_p8 = scmp.eq.s32.totalorder %s7676_s26, 1  ;;  %s7492_s13 = smov [#allocation35]  }
0x10ae   : > { %s5550_s11 = sshll.u32 %s7492_s13, 4  ;;  %s7493_s18 = smov [#allocation34]   ;;  %s5551_s11 = int_to_ptr.vmem [resolvable:$true] %s5550_s11 }
0x10af   : > { %s5539_s23 = sshll.u32 %s7493_s18, 4  ;;  %s7270_s12 = scalar_lea.vmem %s5551_s11, 64  ;;  %s5540_s23 = int_to_ptr.vmem [resolvable:$true] %s5539_s23 }
0x10b0   : > { %p7271_p5 = scmp.ne.s32.totalorder %s5551_s11, %s7270_s12  ;;  %p7277_p1 = scmp.lt.s32.totalorder %s5551_s11, %s5551_s11 }
0x10b1   : > { %p7278_p0 = scmp.lt.s32.totalorder %s7270_s12, %s7270_s12 }
0x10b2   : > { %p7272_p7 = pnand %p7271_p5, %p6573_p8 }
0x10b3   : > { %p7279_p10 = por %p7278_p0, %p7277_p1 }
0x10b4   : > { %p7273_p11 = pneg %p7272_p7 }
0x10b6   : > { %p7280_p9 = pnand %p7279_p10, %p7273_p11 }
0x10b8   : > { %7283 = shalt.err (!%p7280_p9)
}
0x10b9   : > { %s8798_s16 = sld [smem:[#allocation73_spill]]  ;;  %s7294_s15 = scalar_lea.vmem %s5540_s23, 128 }
0x10ba   : > { %p7295_p3 = scmp.ne.s32.totalorder %s5540_s23, %s7294_s15  ;;  %p7301_p6 = scmp.lt.s32.totalorder %s5540_s23, %s5540_s23 }
0x10bb   : > { %p7302_p4 = scmp.lt.s32.totalorder %s7294_s15, %s7294_s15 }
0x10bc   : > { %p7296_p12 = pnand %p7295_p3, %p6573_p8 }
0x10bd   : > { %p7303_p2 = por %p7302_p4, %p7301_p6 }
0x10be   : > { %p7297_p13 = pneg %p7296_p12 }
0x10bf   : > { %6482 = dma.vmem_to_hbm [thread:$0]  (%p6573_p8), %s5551_s11, 64, %s8798_s16, [#allocation36]  }
0x10c0   : > { %p7304_p5 = pnand %p7303_p2, %p7297_p13 }
0x10c2   : > { %7307 = shalt.err (!%p7304_p5)
}
0x10c3   : > { %s8799_s4 = sld [smem:[#allocation72_spill]]  ;;  %s7494_s1 = smov [#allocation37]  }
0x10c4   : > { %s5561_s10 = sshll.u32 %s7494_s1, 4  ;;  %s5562_s10 = int_to_ptr.vmem [resolvable:$true] %s5561_s10 }
0x10c5   : > { %s7318_s5 = scalar_lea.vmem %s5562_s10, 32  ;;  %p7325_p0 = scmp.lt.s32.totalorder %s5562_s10, %s5562_s10 }
0x10c6   : > { %p7319_p7 = scmp.ne.s32.totalorder %s5562_s10, %s7318_s5  ;;  %p7326_p10 = scmp.lt.s32.totalorder %s7318_s5, %s7318_s5 }
0x10c8   : > { %p7320_p11 = pnand %p7319_p7, %p6573_p8  ;;  %p7327_p9 = por %p7326_p10, %p7325_p0 }
0x10c9   : > { %6480 = dma.vmem_to_hbm [thread:$0]  (%p6573_p8), %s5540_s23, 128, %s8799_s4, [#allocation6]  }
0x10ca   : > { %p7321_p1 = pneg %p7320_p11 }
0x10cc   : > { %p7328_p3 = pnand %p7327_p9, %p7321_p1 }
0x10ce   : > { %7331 = shalt.err (!%p7328_p3)
}
0x10cf   : > { %s8800_s21 = sld [smem:[#allocation74_spill]] }
0x10d5   : > { %6484 = dma.vmem_to_hbm [thread:$0]  (%p6573_p8), %s5562_s10, 32, %s8800_s21, [#allocation36]  }
0x10d6   : > { %7399 = dma.done.wait (%p6573_p8), [#allocation6], 128  }
0x10d7   : > { %7401 = vsyncadd (%p6573_p8), [#allocation6], 4294967168 }
0x10d8   : > { %7403 = dma.done.wait (%p6573_p8), [#allocation36], 96  }
0x10d9   : > { %7405 = vsyncadd (%p6573_p8), [#allocation36], 4294967200 }
0x10da PF: > { %s8801_s18 = sld [smem:[#allocation76_spill]]  ;;  %s8804_s15 = smov %s7412_s0 }
0x10db   : > { %s8802_s3 = sld [smem:[#allocation75_spill]] }
0x10dc   : > { %s8803_s16 = sld [smem:[#allocation77_spill]] }
0x10e0   : > { %p89_p12 = scmp.ge.s32.totalorder %s8801_s18, 4  }
0x10e1   : > { %s8805_s0 = smov %s8802_s3 }
0x10e2   :  { %91 = sbr.rel (!%p89_p12) target bundleno = 77 (0x4d), region = 363 }
0x10e7   :  { %5582 = vsyncpa [#allocation5], 1 }
0x10e8   :  { %5584 = vsyncpa [#allocation5 + $0x1], 1 }
0x10e9   :  { %5585 = vsyncpa [#allocation8], 1 }
0x10ea   :  { %5586 = vsyncpa [#allocation11], 1 }
0x10eb   :  { %5588 = vsyncpa [#allocation11 + $0x1], 1 }
0x10ec   :  { %5589 = vsyncpa [#allocation14], 1 }
0x10ed   :  { %5591 = vsyncpa [#allocation14 + $0x1], 1 }
0x10ee   :  { %5592 = vsyncpa [#allocation17], 1 }
0x10ef   :  { %5594 = vsyncpa [#allocation17 + $0x1], 1 }
0x10f0   :  { %5595 = vsyncpa [#allocation20], 1 }
0x10f1   :  { %5597 = vsyncpa [#allocation20 + $0x1], 1 }
0x10f2   :  { %5598 = vsyncpa [#allocation23], 1 }
0x10f3   :  { %5599 = vsyncpa [#allocation26], 1 }
0x10f4   :  { %5600 = vsyncpa [#allocation29], 1 }
0x10f5   :  { %5601 = vsyncpa [#allocation32], 1 }
0x10f6   :  { %5602 = vsyncpa [#allocation6], 1 }
0x10f7   :  { %5604 = vsyncpa [#allocation6 + $0x1], 1 }
0x10f8   :  { %5605 = vsyncpa [#allocation36], 1 }

</bundles_post_ra>
